<compile_context>
chip_gen: v6e
topology: v6e:2x2x1
jax: 0.10.0
libtpu: 0.0.40
codegen_flags: <defaults>
</compile_context>

<pallas_src>
import functools
import math

import jax
import jax.numpy as jnp
from jax.experimental import pallas as pl
from jax.experimental.pallas import tpu as pltpu


def _layernorm(x, gamma, beta, eps=1e-6):
    # PyTorch nn.LayerNorm(dim, eps=1e-06): biased variance over last dim.
    mean = jnp.mean(x, axis=-1, keepdims=True)
    var = jnp.mean((x - mean) ** 2, axis=-1, keepdims=True)
    return (x - mean) * jax.lax.rsqrt(var + eps) * gamma + beta


def _gelu_exact(x):
    # nn.GELU() default (erf-based, not tanh approximation).
    return 0.5 * x * (1.0 + jax.lax.erf(x * (1.0 / math.sqrt(2.0))))


def encoder_block_kernel(n_heads, head_dim, q_tile,
                         x_ref,
                         ln1_g_ref, ln1_b_ref,
                         qkv_w_ref, qkv_b_ref,
                         pw_h_ref, pb_ref,
                         ln2_g_ref, ln2_b_ref,
                         f1w_ref, f1b_ref, f2w_ref, f2b_ref,
                         o_ref,
                         kh_ref, vh_ref):
    dim = n_heads * head_dim
    scale = head_dim ** (-0.5)
    qi = pl.program_id(1)

    ln1_g = ln1_g_ref[0]
    ln1_b = ln1_b_ref[0]

    # ---- K/V for the full sequence: computed once per batch element and
    # cached in VMEM scratch for all query tiles (qi grid axis is "arbitrary").
    @pl.when(qi == 0)
    def _():
        x_kv = x_ref[0].astype(jnp.float32)                       # (N, D)
        xn_kv = _layernorm(x_kv, ln1_g, ln1_b).astype(jnp.bfloat16)
        kv = (jnp.dot(xn_kv, qkv_w_ref[:, dim:],
                      preferred_element_type=jnp.float32)
              + qkv_b_ref[0, dim:])                               # (N, 2D) f32
        for h in range(n_heads):
            lo = h * head_dim
            kh_ref[h] = kv[:, lo:lo + head_dim].astype(jnp.bfloat16)
            vh_ref[h] = kv[:, dim + lo:dim + lo + head_dim].astype(jnp.bfloat16)

    # ---- query / residual tile, sliced from the resident (N, D) block ----
    row0 = pl.multiple_of(qi * q_tile, q_tile)
    x_q = x_ref[0, pl.ds(row0, q_tile), :].astype(jnp.float32)    # (tq, D)
    xn_q = _layernorm(x_q, ln1_g, ln1_b).astype(jnp.bfloat16)
    q = (jnp.dot(xn_q, qkv_w_ref[:, :dim],
                 preferred_element_type=jnp.float32) + qkv_b_ref[0, :dim])
    q = q * scale           # fold 1/sqrt(head_dim) into q (tq, D), not scores

    # ---- per-head attention; output-projection head-sum fused into the
    # accumulation (live scores bounded to (tq, N); no (H, tq, D) temporary).
    attn = None
    for h in range(n_heads):
        lo = h * head_dim
        qh = q[:, lo:lo + head_dim].astype(jnp.bfloat16)          # (tq, hd)
        s = jax.lax.dot_general(qh, kh_ref[h], (((1,), (1,)), ((), ())),
                                preferred_element_type=jnp.float32)  # (tq, N)
        s = s - jnp.max(s, axis=-1, keepdims=True)
        p = jnp.exp(s)                                            # unnormalized
        denom = jnp.sum(p, axis=-1, keepdims=True)                # (tq, 1)
        o_h = jnp.dot(p.astype(jnp.bfloat16), vh_ref[h],
                      preferred_element_type=jnp.float32)         # (tq, hd)
        o_h = o_h * pl.reciprocal(denom, approx=True)             # post-PV norm
        c = jnp.dot(o_h.astype(jnp.bfloat16), pw_h_ref[h],
                    preferred_element_type=jnp.float32)           # (tq, D)
        attn = c if attn is None else attn + c
    attn = attn + pb_ref[0]
    # TODO(synk): for very long N, tile the KV axis with an online-softmax
    # (flash-style) inner loop instead of holding (tq, N) scores per head.

    x1 = x_q + attn                                               # residual 1

    # ---- LayerNorm 2 + MLP (fc1 -> GELU -> fc2) + residual ----
    xn2 = _layernorm(x1, ln2_g_ref[0], ln2_b_ref[0]).astype(jnp.bfloat16)
    hdn = (jnp.dot(xn2, f1w_ref[...], preferred_element_type=jnp.float32)
           + f1b_ref[0])
    hdn = _gelu_exact(hdn).astype(jnp.bfloat16)
    mlp = (jnp.dot(hdn, f2w_ref[...], preferred_element_type=jnp.float32)
           + f2b_ref[0])

    o_ref[0] = (x1 + mlp).astype(o_ref.dtype)


def _vmem_capacity_bytes():
    try:
        return int(pltpu.get_tpu_info().vmem_capacity_bytes)
    except Exception:
        return 64 * 1024 * 1024      # conservative (v7x-sized) fallback


def encoder_block(x, params, n_heads, *, q_tile=None, weight_buffer_count=1):
    B, N, D = x.shape
    assert D % n_heads == 0
    head_dim = D // n_heads
    hidden = params["f1w"].shape[1]

    vmem_cap = _vmem_capacity_bytes()

    if q_tile is None:
        if N <= 128:
            q_tile = N
        elif vmem_cap >= 100 * 1024 * 1024 and N % 256 == 0:
            q_tile = 256   # v5e / v6e (128 MiB VMEM): biggest tile that fits
        else:
            q_tile = 128   # v7x (64 MiB VMEM): keep the query tile at 128
    assert N % q_tile == 0, "token count must be divisible by the query tile"
    nq = N // q_tile

    weights = [
        params["ln1_g"], params["ln1_b"],
        params["qkv_w"], params["qkv_b"],
        params["pw_h"], params["pb"],
        params["ln2_g"], params["ln2_b"],
        params["f1w"], params["f1b"], params["f2w"], params["f2b"],
    ]

    kernel = functools.partial(encoder_block_kernel, n_heads, head_dim, q_tile)

    def weight_spec(w):
        idx = lambda b, qi, _nd=w.ndim: (0,) * _nd   # grid-invariant block
        if weight_buffer_count is None:
            return pl.BlockSpec(w.shape, idx)
        # Grid-invariant weights: single VMEM buffer (no double buffering).
        return pl.BlockSpec(w.shape, idx,
                            pipeline_mode=pl.Buffered(weight_buffer_count))

    in_specs = [pl.BlockSpec((1, N, D), lambda b, qi: (b, 0, 0))]  # resident x
    in_specs += [weight_spec(w) for w in weights]

    # Leave headroom below physical VMEM for Mosaic-internal scratch/semaphores.
    vmem_limit = max(min(vmem_cap - 16 * 1024 * 1024, 112 * 1024 * 1024),
                     32 * 1024 * 1024)

    # Advisory cost estimate (whole call, all grid steps).
    flops = B * (24 * N * D * D + 4 * N * N * D)
    transcendentals = B * (n_heads * N * N + N * hidden)
    weight_bytes = int(sum(int(w.size) * w.dtype.itemsize for w in weights))
    bytes_accessed = 2 * B * N * D * x.dtype.itemsize + weight_bytes
    cost = pl.CostEstimate(flops=flops, transcendentals=transcendentals,
                           bytes_accessed=bytes_accessed)

    return pl.pallas_call(
        kernel,
        out_shape=jax.ShapeDtypeStruct((B, N, D), x.dtype),
        grid=(B, nq),
        in_specs=in_specs,
        out_specs=pl.BlockSpec((1, q_tile, D), lambda b, qi: (b, qi, 0)),
        scratch_shapes=[
            pltpu.VMEM((n_heads, N, head_dim), jnp.bfloat16),   # cached K heads
            pltpu.VMEM((n_heads, N, head_dim), jnp.bfloat16),   # cached V heads
        ],
        compiler_params=pltpu.CompilerParams(
            # qi reuses the per-batch K/V scratch -> must run in order on one
            # core; the batch axis may be split across megacore TensorCores.
            dimension_semantics=("parallel", "arbitrary"),
            vmem_limit_bytes=vmem_limit,
        ),
        cost_estimate=cost,
    )(x, *weights)


def make_params(key, dim, n_heads, mlp_ratio=4.0):
    hidden = int(dim * mlp_ratio)
    head_dim = dim // n_heads
    keys = jax.random.split(key, 8)
    s = 0.02
    # PyTorch Linear stores (out, in); pre-transpose to (in, out) for x @ W.
    qkv_w = jax.random.normal(keys[0], (3 * dim, dim), jnp.float32) * s
    qkv_b = jax.random.normal(keys[1], (3 * dim,), jnp.float32) * s
    proj_w = jax.random.normal(keys[2], (dim, dim), jnp.float32) * s
    proj_b = jax.random.normal(keys[3], (dim,), jnp.float32) * s
    fc1_w = jax.random.normal(keys[4], (hidden, dim), jnp.float32) * s
    fc1_b = jax.random.normal(keys[5], (hidden,), jnp.float32) * s
    fc2_w = jax.random.normal(keys[6], (dim, hidden), jnp.float32) * s
    fc2_b = jax.random.normal(keys[7], (dim,), jnp.float32) * s

    bf16 = jnp.bfloat16
    return {
        "ln1_g": jnp.ones((1, dim), jnp.float32),
        "ln1_b": jnp.zeros((1, dim), jnp.float32),
        "ln2_g": jnp.ones((1, dim), jnp.float32),
        "ln2_b": jnp.zeros((1, dim), jnp.float32),
        # fused QKV weight, (D, 3D), bf16 MXU operand
        "qkv_w": qkv_w.T.astype(bf16),
        "qkv_b": qkv_b.reshape(1, 3 * dim),
        # output projection pre-split per head: (H, head_dim, D)
        "pw_h": proj_w.T.reshape(n_heads, head_dim, dim).astype(bf16),
        "pb": proj_b.reshape(1, dim),
        "f1w": fc1_w.T.astype(bf16), "f1b": fc1_b.reshape(1, hidden),
        "f2w": fc2_w.T.astype(bf16), "f2b": fc2_b.reshape(1, dim),
    }


def reference_encoder_block(x, params, n_heads):
    """Pure-JAX f32 reference mirroring the PyTorch forward (dropout p=0)."""
    B, N, D = x.shape
    hd = D // n_heads

    def ln(v, g, b, eps=1e-6):
        m = jnp.mean(v, -1, keepdims=True)
        var = jnp.mean((v - m) ** 2, -1, keepdims=True)
        return (v - m) / jnp.sqrt(var + eps) * g + b

    qkv_w = params["qkv_w"].astype(jnp.float32)
    qkv_b = params["qkv_b"][0]
    pw = params["pw_h"].astype(jnp.float32).reshape(D, D)
    pb = params["pb"][0]
    f1w = params["f1w"].astype(jnp.float32)
    f2w = params["f2w"].astype(jnp.float32)

    xn = ln(x, params["ln1_g"][0], params["ln1_b"][0])
    qkv = xn @ qkv_w + qkv_b
    q, k, v = jnp.split(qkv, 3, axis=-1)

    def heads(t):
        return t.reshape(B, N, n_heads, hd).transpose(0, 2, 1, 3)

    q, k, v = heads(q), heads(k), heads(v)
    s = jnp.einsum("bhqd,bhkd->bhqk", q, k) * hd ** (-0.5)
    p = jax.nn.softmax(s, axis=-1)
    wa = jnp.einsum("bhqk,bhkd->bhqd", p, v).transpose(0, 2, 1, 3).reshape(B, N, D)
    x1 = x + (wa @ pw + pb)
    xn2 = ln(x1, params["ln2_g"][0], params["ln2_b"][0])
    h = jax.nn.gelu(xn2 @ f1w + params["f1b"][0], approximate=False)
    return x1 + (h @ f2w + params["f2b"][0])


if __name__ == "__main__":
    B, N, D = 2, 16, 128          # D multiple of 128 -> lane-dense output stores
    n_heads = 4

    key = jax.random.PRNGKey(0)
    kx, kp = jax.random.split(key)
    x = jax.random.normal(kx, (B, N, D), jnp.float32)
    params = make_params(kp, D, n_heads)

    try:
        out = jax.block_until_ready(encoder_block(x, params, n_heads))
    except Exception:
        # Fallback if this JAX build rejects pipeline_mode=pl.Buffered(1):
        # identical kernel with default (double-buffered) weight pipelining.
        out = jax.block_until_ready(
            encoder_block(x, params, n_heads, weight_buffer_count=None))

    ref = reference_encoder_block(x, params, n_heads)

    assert out.shape == (B, N, D)
    # bf16 matmul operands + approx softmax reciprocal -> looser tolerance.
    assert jnp.allclose(out, ref, atol=2e-2, rtol=2e-2), "mismatch vs reference"
    print("KERNEL_OK")
</pallas_src>

<mosaic_0001>
module attributes {stable_mosaic.version = 11 : i64} {
  func.func @encoder_block_kernel(%arg0: i32, %arg1: i32, %arg2: memref<1x16x128xf32, #tpu.memory_space<vmem>>, %arg3: memref<1x128xf32, #tpu.memory_space<vmem>>, %arg4: memref<1x128xf32, #tpu.memory_space<vmem>>, %arg5: memref<128x384xbf16, #tpu.memory_space<vmem>>, %arg6: memref<1x384xf32, #tpu.memory_space<vmem>>, %arg7: memref<4x32x128xbf16, #tpu.memory_space<vmem>>, %arg8: memref<1x128xf32, #tpu.memory_space<vmem>>, %arg9: memref<1x128xf32, #tpu.memory_space<vmem>>, %arg10: memref<1x128xf32, #tpu.memory_space<vmem>>, %arg11: memref<128x512xbf16, #tpu.memory_space<vmem>>, %arg12: memref<1x512xf32, #tpu.memory_space<vmem>>, %arg13: memref<512x128xbf16, #tpu.memory_space<vmem>>, %arg14: memref<1x128xf32, #tpu.memory_space<vmem>>, %arg15: memref<1x16x128xf32, #tpu.memory_space<vmem>>, %arg16: memref<4x16x32xbf16, #tpu.memory_space<vmem>>, %arg17: memref<4x16x32xbf16, #tpu.memory_space<vmem>>) attributes {dimension_semantics = [#tpu.dimension_semantics<parallel>, #tpu.dimension_semantics<arbitrary>], iteration_bounds = array<i64: 2, 1>, scalar_prefetch = 0 : i64, scratch_operands = 2 : i64, tpu.core_type = #tpu.core_type<tc>, window_params = [{transform_indices = @transform_0, window_bounds = array<i64: 1, 16, 128>}, {pipeline_mode = #tpu.pipeline_mode<synchronous>, transform_indices = @transform_1, window_bounds = array<i64: 1, 128>}, {pipeline_mode = #tpu.pipeline_mode<synchronous>, transform_indices = @transform_2, window_bounds = array<i64: 1, 128>}, {pipeline_mode = #tpu.pipeline_mode<synchronous>, transform_indices = @transform_3, window_bounds = array<i64: 128, 384>}, {pipeline_mode = #tpu.pipeline_mode<synchronous>, transform_indices = @transform_4, window_bounds = array<i64: 1, 384>}, {pipeline_mode = #tpu.pipeline_mode<synchronous>, transform_indices = @transform_5, window_bounds = array<i64: 4, 32, 128>}, {pipeline_mode = #tpu.pipeline_mode<synchronous>, transform_indices = @transform_6, window_bounds = array<i64: 1, 128>}, {pipeline_mode = #tpu.pipeline_mode<synchronous>, transform_indices = @transform_7, window_bounds = array<i64: 1, 128>}, {pipeline_mode = #tpu.pipeline_mode<synchronous>, transform_indices = @transform_8, window_bounds = array<i64: 1, 128>}, {pipeline_mode = #tpu.pipeline_mode<synchronous>, transform_indices = @transform_9, window_bounds = array<i64: 128, 512>}, {pipeline_mode = #tpu.pipeline_mode<synchronous>, transform_indices = @transform_10, window_bounds = array<i64: 1, 512>}, {pipeline_mode = #tpu.pipeline_mode<synchronous>, transform_indices = @transform_11, window_bounds = array<i64: 512, 128>}, {pipeline_mode = #tpu.pipeline_mode<synchronous>, transform_indices = @transform_12, window_bounds = array<i64: 1, 128>}, {transform_indices = @transform_13, window_bounds = array<i64: 1, 16, 128>}]} {
    %c0 = arith.constant 0 : index
    %c0_0 = arith.constant 0 : index
    %0 = vector.load %arg3[%c0, %c0_0] : memref<1x128xf32, #tpu.memory_space<vmem>>, vector<1x128xf32>
    %1 = vector.shape_cast %0 : vector<1x128xf32> to vector<128xf32>
    %c0_1 = arith.constant 0 : index
    %c0_2 = arith.constant 0 : index
    %2 = vector.load %arg4[%c0_1, %c0_2] : memref<1x128xf32, #tpu.memory_space<vmem>>, vector<1x128xf32>
    %3 = vector.shape_cast %2 : vector<1x128xf32> to vector<128xf32>
    %c0_i32 = arith.constant 0 : i32
    %4 = arith.cmpi eq, %arg1, %c0_i32 : i32
    %5 = arith.extui %4 : i1 to i32
    %c0_i32_3 = arith.constant 0 : i32
    %6 = arith.cmpi ne, %5, %c0_i32_3 : i32
    scf.if %6 {
      %c0_96 = arith.constant 0 : index
      %c0_97 = arith.constant 0 : index
      %c0_98 = arith.constant 0 : index
      %203 = vector.load %arg2[%c0_96, %c0_97, %c0_98] : memref<1x16x128xf32, #tpu.memory_space<vmem>>, vector<1x16x128xf32>
      %204 = vector.shape_cast %203 : vector<1x16x128xf32> to vector<16x128xf32>
      %cst_99 = arith.constant dense<0.000000e+00> : vector<16xf32>
      %205 = vector.multi_reduction <add>, %204, %cst_99 [1] : vector<16x128xf32> to vector<16xf32>
      %206 = vector.shape_cast %205 : vector<16xf32> to vector<16x1xf32>
      %cst_100 = arith.constant 1.280000e+02 : f32
      %207 = vector.broadcast %cst_100 : f32 to vector<16x1xf32>
      %208 = arith.divf %206, %207 : vector<16x1xf32>
      %209 = vector.broadcast %208 : vector<16x1xf32> to vector<16x128xf32>
      %210 = arith.subf %204, %209 : vector<16x128xf32>
      %211 = arith.mulf %210, %210 : vector<16x128xf32>
      %cst_101 = arith.constant dense<0.000000e+00> : vector<16xf32>
      %212 = vector.multi_reduction <add>, %211, %cst_101 [1] : vector<16x128xf32> to vector<16xf32>
      %213 = vector.shape_cast %212 : vector<16xf32> to vector<16x1xf32>
      %cst_102 = arith.constant 1.280000e+02 : f32
      %214 = vector.broadcast %cst_102 : f32 to vector<16x1xf32>
      %215 = arith.divf %213, %214 : vector<16x1xf32>
      %216 = vector.broadcast %208 : vector<16x1xf32> to vector<16x128xf32>
      %217 = arith.subf %204, %216 : vector<16x128xf32>
      %cst_103 = arith.constant 9.99999997E-7 : f32
      %218 = vector.broadcast %cst_103 : f32 to vector<16x1xf32>
      %219 = arith.addf %215, %218 : vector<16x1xf32>
      %220 = math.rsqrt %219 : vector<16x1xf32>
      %221 = vector.broadcast %220 : vector<16x1xf32> to vector<16x128xf32>
      %222 = arith.mulf %217, %221 : vector<16x128xf32>
      %223 = vector.shape_cast %1 : vector<128xf32> to vector<1x128xf32>
      %224 = vector.broadcast %223 : vector<1x128xf32> to vector<16x128xf32>
      %225 = arith.mulf %222, %224 : vector<16x128xf32>
      %226 = vector.shape_cast %3 : vector<128xf32> to vector<1x128xf32>
      %227 = vector.broadcast %226 : vector<1x128xf32> to vector<16x128xf32>
      %228 = arith.addf %225, %227 : vector<16x128xf32>
      %229 = arith.truncf %228 : vector<16x128xf32> to vector<16x128xbf16>
      %c0_104 = arith.constant 0 : index
      %c128 = arith.constant 128 : index
      %230 = vector.load %arg5[%c0_104, %c128] : memref<128x384xbf16, #tpu.memory_space<vmem>>, vector<128x256xbf16>
      %cst_105 = arith.constant dense<0.000000e+00> : vector<16x256xf32>
      %231 = tpu.matmul %229, %230, %cst_105 {dimension_numbers = #tpu.dot_dimension_numbers<[1], [0], [0], [1], [0, 0, 1, 1], [], []>} : vector<16x128xbf16>, vector<128x256xbf16>, vector<16x256xf32> -> vector<16x256xf32>
      %c0_106 = arith.constant 0 : index
      %c128_107 = arith.constant 128 : index
      %232 = vector.load %arg6[%c0_106, %c128_107] : memref<1x384xf32, #tpu.memory_space<vmem>>, vector<1x256xf32>
      %233 = vector.shape_cast %232 : vector<1x256xf32> to vector<256xf32>
      %234 = vector.shape_cast %233 : vector<256xf32> to vector<1x256xf32>
      %235 = vector.broadcast %234 : vector<1x256xf32> to vector<16x256xf32>
      %236 = arith.addf %231, %235 : vector<16x256xf32>
      %237 = vector.extract_strided_slice %236 {offsets = [0, 0], sizes = [16, 32], strides = [1, 1]} : vector<16x256xf32> to vector<16x32xf32>
      %238 = arith.truncf %237 : vector<16x32xf32> to vector<16x32xbf16>
      %c0_108 = arith.constant 0 : index
      %c0_109 = arith.constant 0 : index
      %c0_110 = arith.constant 0 : index
      %239 = vector.load %arg16[%c0_108, %c0_109, %c0_110] : memref<4x16x32xbf16, #tpu.memory_space<vmem>>, vector<1x16x32xbf16>
      %240 = vector.shape_cast %239 : vector<1x16x32xbf16> to vector<16x32xbf16>
      %241 = vector.shape_cast %238 : vector<16x32xbf16> to vector<1x16x32xbf16>
      tpu.vector_store %arg16[%c0_108, %c0_109, %c0_110], %241 {strides = array<i32>} : memref<4x16x32xbf16, #tpu.memory_space<vmem>>, vector<1x16x32xbf16>,
      %242 = vector.extract_strided_slice %236 {offsets = [0, 128], sizes = [16, 32], strides = [1, 1]} : vector<16x256xf32> to vector<16x32xf32>
      %243 = arith.truncf %242 : vector<16x32xf32> to vector<16x32xbf16>
      %c0_111 = arith.constant 0 : index
      %c0_112 = arith.constant 0 : index
      %c0_113 = arith.constant 0 : index
      %244 = vector.load %arg17[%c0_111, %c0_112, %c0_113] : memref<4x16x32xbf16, #tpu.memory_space<vmem>>, vector<1x16x32xbf16>
      %245 = vector.shape_cast %244 : vector<1x16x32xbf16> to vector<16x32xbf16>
      %246 = vector.shape_cast %243 : vector<16x32xbf16> to vector<1x16x32xbf16>
      tpu.vector_store %arg17[%c0_111, %c0_112, %c0_113], %246 {strides = array<i32>} : memref<4x16x32xbf16, #tpu.memory_space<vmem>>, vector<1x16x32xbf16>,
      %247 = vector.extract_strided_slice %236 {offsets = [0, 32], sizes = [16, 32], strides = [1, 1]} : vector<16x256xf32> to vector<16x32xf32>
      %248 = arith.truncf %247 : vector<16x32xf32> to vector<16x32xbf16>
      %c1_114 = arith.constant 1 : index
      %c0_115 = arith.constant 0 : index
      %c0_116 = arith.constant 0 : index
      %249 = vector.load %arg16[%c1_114, %c0_115, %c0_116] : memref<4x16x32xbf16, #tpu.memory_space<vmem>>, vector<1x16x32xbf16>
      %250 = vector.shape_cast %249 : vector<1x16x32xbf16> to vector<16x32xbf16>
      %251 = vector.shape_cast %248 : vector<16x32xbf16> to vector<1x16x32xbf16>
      tpu.vector_store %arg16[%c1_114, %c0_115, %c0_116], %251 {strides = array<i32>} : memref<4x16x32xbf16, #tpu.memory_space<vmem>>, vector<1x16x32xbf16>,
      %252 = vector.extract_strided_slice %236 {offsets = [0, 160], sizes = [16, 32], strides = [1, 1]} : vector<16x256xf32> to vector<16x32xf32>
      %253 = arith.truncf %252 : vector<16x32xf32> to vector<16x32xbf16>
      %c1_117 = arith.constant 1 : index
      %c0_118 = arith.constant 0 : index
      %c0_119 = arith.constant 0 : index
      %254 = vector.load %arg17[%c1_117, %c0_118, %c0_119] : memref<4x16x32xbf16, #tpu.memory_space<vmem>>, vector<1x16x32xbf16>
      %255 = vector.shape_cast %254 : vector<1x16x32xbf16> to vector<16x32xbf16>
      %256 = vector.shape_cast %253 : vector<16x32xbf16> to vector<1x16x32xbf16>
      tpu.vector_store %arg17[%c1_117, %c0_118, %c0_119], %256 {strides = array<i32>} : memref<4x16x32xbf16, #tpu.memory_space<vmem>>, vector<1x16x32xbf16>,
      %257 = vector.extract_strided_slice %236 {offsets = [0, 64], sizes = [16, 32], strides = [1, 1]} : vector<16x256xf32> to vector<16x32xf32>
      %258 = arith.truncf %257 : vector<16x32xf32> to vector<16x32xbf16>
      %c2_120 = arith.constant 2 : index
      %c0_121 = arith.constant 0 : index
      %c0_122 = arith.constant 0 : index
      %259 = vector.load %arg16[%c2_120, %c0_121, %c0_122] : memref<4x16x32xbf16, #tpu.memory_space<vmem>>, vector<1x16x32xbf16>
      %260 = vector.shape_cast %259 : vector<1x16x32xbf16> to vector<16x32xbf16>
      %261 = vector.shape_cast %258 : vector<16x32xbf16> to vector<1x16x32xbf16>
      tpu.vector_store %arg16[%c2_120, %c0_121, %c0_122], %261 {strides = array<i32>} : memref<4x16x32xbf16, #tpu.memory_space<vmem>>, vector<1x16x32xbf16>,
      %262 = vector.extract_strided_slice %236 {offsets = [0, 192], sizes = [16, 32], strides = [1, 1]} : vector<16x256xf32> to vector<16x32xf32>
      %263 = arith.truncf %262 : vector<16x32xf32> to vector<16x32xbf16>
      %c2_123 = arith.constant 2 : index
      %c0_124 = arith.constant 0 : index
      %c0_125 = arith.constant 0 : index
      %264 = vector.load %arg17[%c2_123, %c0_124, %c0_125] : memref<4x16x32xbf16, #tpu.memory_space<vmem>>, vector<1x16x32xbf16>
      %265 = vector.shape_cast %264 : vector<1x16x32xbf16> to vector<16x32xbf16>
      %266 = vector.shape_cast %263 : vector<16x32xbf16> to vector<1x16x32xbf16>
      tpu.vector_store %arg17[%c2_123, %c0_124, %c0_125], %266 {strides = array<i32>} : memref<4x16x32xbf16, #tpu.memory_space<vmem>>, vector<1x16x32xbf16>,
      %267 = vector.extract_strided_slice %236 {offsets = [0, 96], sizes = [16, 32], strides = [1, 1]} : vector<16x256xf32> to vector<16x32xf32>
      %268 = arith.truncf %267 : vector<16x32xf32> to vector<16x32xbf16>
      %c3_126 = arith.constant 3 : index
      %c0_127 = arith.constant 0 : index
      %c0_128 = arith.constant 0 : index
      %269 = vector.load %arg16[%c3_126, %c0_127, %c0_128] : memref<4x16x32xbf16, #tpu.memory_space<vmem>>, vector<1x16x32xbf16>
      %270 = vector.shape_cast %269 : vector<1x16x32xbf16> to vector<16x32xbf16>
      %271 = vector.shape_cast %268 : vector<16x32xbf16> to vector<1x16x32xbf16>
      tpu.vector_store %arg16[%c3_126, %c0_127, %c0_128], %271 {strides = array<i32>} : memref<4x16x32xbf16, #tpu.memory_space<vmem>>, vector<1x16x32xbf16>,
      %272 = vector.extract_strided_slice %236 {offsets = [0, 224], sizes = [16, 32], strides = [1, 1]} : vector<16x256xf32> to vector<16x32xf32>
      %273 = arith.truncf %272 : vector<16x32xf32> to vector<16x32xbf16>
      %c3_129 = arith.constant 3 : index
      %c0_130 = arith.constant 0 : index
      %c0_131 = arith.constant 0 : index
      %274 = vector.load %arg17[%c3_129, %c0_130, %c0_131] : memref<4x16x32xbf16, #tpu.memory_space<vmem>>, vector<1x16x32xbf16>
      %275 = vector.shape_cast %274 : vector<1x16x32xbf16> to vector<16x32xbf16>
      %276 = vector.shape_cast %273 : vector<16x32xbf16> to vector<1x16x32xbf16>
      tpu.vector_store %arg17[%c3_129, %c0_130, %c0_131], %276 {strides = array<i32>} : memref<4x16x32xbf16, #tpu.memory_space<vmem>>, vector<1x16x32xbf16>,
    } else {
    }
    %c16_i32 = arith.constant 16 : i32
    %7 = arith.muli %arg1, %c16_i32 : i32
    %8 = tpu.assume_multiple %7, 16 : i32
    %c0_4 = arith.constant 0 : index
    %9 = arith.index_cast %8 : i32 to index
    %c0_5 = arith.constant 0 : index
    %10 = vector.load %arg2[%c0_4, %9, %c0_5] : memref<1x16x128xf32, #tpu.memory_space<vmem>>, vector<1x16x128xf32>
    %11 = vector.shape_cast %10 : vector<1x16x128xf32> to vector<16x128xf32>
    %cst = arith.constant dense<0.000000e+00> : vector<16xf32>
    %12 = vector.multi_reduction <add>, %11, %cst [1] : vector<16x128xf32> to vector<16xf32>
    %13 = vector.shape_cast %12 : vector<16xf32> to vector<16x1xf32>
    %cst_6 = arith.constant 1.280000e+02 : f32
    %14 = vector.broadcast %cst_6 : f32 to vector<16x1xf32>
    %15 = arith.divf %13, %14 : vector<16x1xf32>
    %16 = vector.broadcast %15 : vector<16x1xf32> to vector<16x128xf32>
    %17 = arith.subf %11, %16 : vector<16x128xf32>
    %18 = arith.mulf %17, %17 : vector<16x128xf32>
    %cst_7 = arith.constant dense<0.000000e+00> : vector<16xf32>
    %19 = vector.multi_reduction <add>, %18, %cst_7 [1] : vector<16x128xf32> to vector<16xf32>
    %20 = vector.shape_cast %19 : vector<16xf32> to vector<16x1xf32>
    %cst_8 = arith.constant 1.280000e+02 : f32
    %21 = vector.broadcast %cst_8 : f32 to vector<16x1xf32>
    %22 = arith.divf %20, %21 : vector<16x1xf32>
    %23 = vector.broadcast %15 : vector<16x1xf32> to vector<16x128xf32>
    %24 = arith.subf %11, %23 : vector<16x128xf32>
    %cst_9 = arith.constant 9.99999997E-7 : f32
    %25 = vector.broadcast %cst_9 : f32 to vector<16x1xf32>
    %26 = arith.addf %22, %25 : vector<16x1xf32>
    %27 = math.rsqrt %26 : vector<16x1xf32>
    %28 = vector.broadcast %27 : vector<16x1xf32> to vector<16x128xf32>
    %29 = arith.mulf %24, %28 : vector<16x128xf32>
    %30 = vector.shape_cast %1 : vector<128xf32> to vector<1x128xf32>
    %31 = vector.broadcast %30 : vector<1x128xf32> to vector<16x128xf32>
    %32 = arith.mulf %29, %31 : vector<16x128xf32>
    %33 = vector.shape_cast %3 : vector<128xf32> to vector<1x128xf32>
    %34 = vector.broadcast %33 : vector<1x128xf32> to vector<16x128xf32>
    %35 = arith.addf %32, %34 : vector<16x128xf32>
    %36 = arith.truncf %35 : vector<16x128xf32> to vector<16x128xbf16>
    %c0_10 = arith.constant 0 : index
    %c0_11 = arith.constant 0 : index
    %37 = vector.load %arg5[%c0_10, %c0_11] : memref<128x384xbf16, #tpu.memory_space<vmem>>, vector<128x128xbf16>
    %cst_12 = arith.constant dense<0.000000e+00> : vector<16x128xf32>
    %38 = tpu.matmul %36, %37, %cst_12 {dimension_numbers = #tpu.dot_dimension_numbers<[1], [0], [0], [1], [0, 0, 1, 1], [], []>} : vector<16x128xbf16>, vector<128x128xbf16>, vector<16x128xf32> -> vector<16x128xf32>
    %c0_13 = arith.constant 0 : index
    %c0_14 = arith.constant 0 : index
    %39 = vector.load %arg6[%c0_13, %c0_14] : memref<1x384xf32, #tpu.memory_space<vmem>>, vector<1x128xf32>
    %40 = vector.shape_cast %39 : vector<1x128xf32> to vector<128xf32>
    %41 = vector.shape_cast %40 : vector<128xf32> to vector<1x128xf32>
    %42 = vector.broadcast %41 : vector<1x128xf32> to vector<16x128xf32>
    %43 = arith.addf %38, %42 : vector<16x128xf32>
    %cst_15 = arith.constant 0.176776692 : f32
    %44 = vector.broadcast %cst_15 : f32 to vector<16x128xf32>
    %45 = arith.mulf %43, %44 : vector<16x128xf32>
    %46 = vector.extract_strided_slice %45 {offsets = [0, 0], sizes = [16, 32], strides = [1, 1]} : vector<16x128xf32> to vector<16x32xf32>
    %47 = arith.truncf %46 : vector<16x32xf32> to vector<16x32xbf16>
    %c0_16 = arith.constant 0 : index
    %c0_17 = arith.constant 0 : index
    %c0_18 = arith.constant 0 : index
    %48 = vector.load %arg16[%c0_16, %c0_17, %c0_18] : memref<4x16x32xbf16, #tpu.memory_space<vmem>>, vector<1x16x32xbf16>
    %49 = vector.shape_cast %48 : vector<1x16x32xbf16> to vector<16x32xbf16>
    %cst_19 = arith.constant dense<0.000000e+00> : vector<16x16xf32>
    %50 = tpu.matmul %47, %49, %cst_19 {dimension_numbers = #tpu.dot_dimension_numbers<[1], [1], [0], [0], [0, 0, 1, 0], [], []>} : vector<16x32xbf16>, vector<16x32xbf16>, vector<16x16xf32> -> vector<16x16xf32>
    %cst_20 = arith.constant dense<0xFF800000> : vector<16xf32>
    %51 = vector.multi_reduction <maximumf>, %50, %cst_20 [1] : vector<16x16xf32> to vector<16xf32>
    %52 = vector.shape_cast %51 : vector<16xf32> to vector<16x1xf32>
    %53 = vector.broadcast %52 : vector<16x1xf32> to vector<16x16xf32>
    %54 = arith.subf %50, %53 : vector<16x16xf32>
    %55 = math.exp %54 : vector<16x16xf32>
    %cst_21 = arith.constant dense<0.000000e+00> : vector<16xf32>
    %56 = vector.multi_reduction <add>, %55, %cst_21 [1] : vector<16x16xf32> to vector<16xf32>
    %57 = vector.shape_cast %56 : vector<16xf32> to vector<16x1xf32>
    %58 = arith.truncf %55 : vector<16x16xf32> to vector<16x16xbf16>
    %c0_22 = arith.constant 0 : index
    %c0_23 = arith.constant 0 : index
    %c0_24 = arith.constant 0 : index
    %59 = vector.load %arg17[%c0_22, %c0_23, %c0_24] : memref<4x16x32xbf16, #tpu.memory_space<vmem>>, vector<1x16x32xbf16>
    %60 = vector.shape_cast %59 : vector<1x16x32xbf16> to vector<16x32xbf16>
    %cst_25 = arith.constant dense<0.000000e+00> : vector<16x32xf32>
    %61 = tpu.matmul %58, %60, %cst_25 {dimension_numbers = #tpu.dot_dimension_numbers<[1], [0], [0], [1], [0, 0, 1, 1], [], []>} : vector<16x16xbf16>, vector<16x32xbf16>, vector<16x32xf32> -> vector<16x32xf32>
    %62 = tpu.reciprocal %57 {approx = true} : vector<16x1xf32> -> vector<16x1xf32>
    %63 = vector.broadcast %62 : vector<16x1xf32> to vector<16x32xf32>
    %64 = arith.mulf %61, %63 : vector<16x32xf32>
    %65 = arith.truncf %64 : vector<16x32xf32> to vector<16x32xbf16>
    %c0_26 = arith.constant 0 : index
    %c0_27 = arith.constant 0 : index
    %c0_28 = arith.constant 0 : index
    %66 = vector.load %arg7[%c0_26, %c0_27, %c0_28] : memref<4x32x128xbf16, #tpu.memory_space<vmem>>, vector<1x32x128xbf16>
    %67 = vector.shape_cast %66 : vector<1x32x128xbf16> to vector<32x128xbf16>
    %cst_29 = arith.constant dense<0.000000e+00> : vector<16x128xf32>
    %68 = tpu.matmul %65, %67, %cst_29 {dimension_numbers = #tpu.dot_dimension_numbers<[1], [0], [0], [1], [0, 0, 1, 1], [], []>} : vector<16x32xbf16>, vector<32x128xbf16>, vector<16x128xf32> -> vector<16x128xf32>
    %69 = vector.extract_strided_slice %45 {offsets = [0, 32], sizes = [16, 32], strides = [1, 1]} : vector<16x128xf32> to vector<16x32xf32>
    %70 = arith.truncf %69 : vector<16x32xf32> to vector<16x32xbf16>
    %c1 = arith.constant 1 : index
    %c0_30 = arith.constant 0 : index
    %c0_31 = arith.constant 0 : index
    %71 = vector.load %arg16[%c1, %c0_30, %c0_31] : memref<4x16x32xbf16, #tpu.memory_space<vmem>>, vector<1x16x32xbf16>
    %72 = vector.shape_cast %71 : vector<1x16x32xbf16> to vector<16x32xbf16>
    %cst_32 = arith.constant dense<0.000000e+00> : vector<16x16xf32>
    %73 = tpu.matmul %70, %72, %cst_32 {dimension_numbers = #tpu.dot_dimension_numbers<[1], [1], [0], [0], [0, 0, 1, 0], [], []>} : vector<16x32xbf16>, vector<16x32xbf16>, vector<16x16xf32> -> vector<16x16xf32>
    %cst_33 = arith.constant dense<0xFF800000> : vector<16xf32>
    %74 = vector.multi_reduction <maximumf>, %73, %cst_33 [1] : vector<16x16xf32> to vector<16xf32>
    %75 = vector.shape_cast %74 : vector<16xf32> to vector<16x1xf32>
    %76 = vector.broadcast %75 : vector<16x1xf32> to vector<16x16xf32>
    %77 = arith.subf %73, %76 : vector<16x16xf32>
    %78 = math.exp %77 : vector<16x16xf32>
    %cst_34 = arith.constant dense<0.000000e+00> : vector<16xf32>
    %79 = vector.multi_reduction <add>, %78, %cst_34 [1] : vector<16x16xf32> to vector<16xf32>
    %80 = vector.shape_cast %79 : vector<16xf32> to vector<16x1xf32>
    %81 = arith.truncf %78 : vector<16x16xf32> to vector<16x16xbf16>
    %c1_35 = arith.constant 1 : index
    %c0_36 = arith.constant 0 : index
    %c0_37 = arith.constant 0 : index
    %82 = vector.load %arg17[%c1_35, %c0_36, %c0_37] : memref<4x16x32xbf16, #tpu.memory_space<vmem>>, vector<1x16x32xbf16>
    %83 = vector.shape_cast %82 : vector<1x16x32xbf16> to vector<16x32xbf16>
    %cst_38 = arith.constant dense<0.000000e+00> : vector<16x32xf32>
    %84 = tpu.matmul %81, %83, %cst_38 {dimension_numbers = #tpu.dot_dimension_numbers<[1], [0], [0], [1], [0, 0, 1, 1], [], []>} : vector<16x16xbf16>, vector<16x32xbf16>, vector<16x32xf32> -> vector<16x32xf32>
    %85 = tpu.reciprocal %80 {approx = true} : vector<16x1xf32> -> vector<16x1xf32>
    %86 = vector.broadcast %85 : vector<16x1xf32> to vector<16x32xf32>
    %87 = arith.mulf %84, %86 : vector<16x32xf32>
    %88 = arith.truncf %87 : vector<16x32xf32> to vector<16x32xbf16>
    %c1_39 = arith.constant 1 : index
    %c0_40 = arith.constant 0 : index
    %c0_41 = arith.constant 0 : index
    %89 = vector.load %arg7[%c1_39, %c0_40, %c0_41] : memref<4x32x128xbf16, #tpu.memory_space<vmem>>, vector<1x32x128xbf16>
    %90 = vector.shape_cast %89 : vector<1x32x128xbf16> to vector<32x128xbf16>
    %cst_42 = arith.constant dense<0.000000e+00> : vector<16x128xf32>
    %91 = tpu.matmul %88, %90, %cst_42 {dimension_numbers = #tpu.dot_dimension_numbers<[1], [0], [0], [1], [0, 0, 1, 1], [], []>} : vector<16x32xbf16>, vector<32x128xbf16>, vector<16x128xf32> -> vector<16x128xf32>
    %92 = arith.addf %68, %91 : vector<16x128xf32>
    %93 = vector.extract_strided_slice %45 {offsets = [0, 64], sizes = [16, 32], strides = [1, 1]} : vector<16x128xf32> to vector<16x32xf32>
    %94 = arith.truncf %93 : vector<16x32xf32> to vector<16x32xbf16>
    %c2 = arith.constant 2 : index
    %c0_43 = arith.constant 0 : index
    %c0_44 = arith.constant 0 : index
    %95 = vector.load %arg16[%c2, %c0_43, %c0_44] : memref<4x16x32xbf16, #tpu.memory_space<vmem>>, vector<1x16x32xbf16>
    %96 = vector.shape_cast %95 : vector<1x16x32xbf16> to vector<16x32xbf16>
    %cst_45 = arith.constant dense<0.000000e+00> : vector<16x16xf32>
    %97 = tpu.matmul %94, %96, %cst_45 {dimension_numbers = #tpu.dot_dimension_numbers<[1], [1], [0], [0], [0, 0, 1, 0], [], []>} : vector<16x32xbf16>, vector<16x32xbf16>, vector<16x16xf32> -> vector<16x16xf32>
    %cst_46 = arith.constant dense<0xFF800000> : vector<16xf32>
    %98 = vector.multi_reduction <maximumf>, %97, %cst_46 [1] : vector<16x16xf32> to vector<16xf32>
    %99 = vector.shape_cast %98 : vector<16xf32> to vector<16x1xf32>
    %100 = vector.broadcast %99 : vector<16x1xf32> to vector<16x16xf32>
    %101 = arith.subf %97, %100 : vector<16x16xf32>
    %102 = math.exp %101 : vector<16x16xf32>
    %cst_47 = arith.constant dense<0.000000e+00> : vector<16xf32>
    %103 = vector.multi_reduction <add>, %102, %cst_47 [1] : vector<16x16xf32> to vector<16xf32>
    %104 = vector.shape_cast %103 : vector<16xf32> to vector<16x1xf32>
    %105 = arith.truncf %102 : vector<16x16xf32> to vector<16x16xbf16>
    %c2_48 = arith.constant 2 : index
    %c0_49 = arith.constant 0 : index
    %c0_50 = arith.constant 0 : index
    %106 = vector.load %arg17[%c2_48, %c0_49, %c0_50] : memref<4x16x32xbf16, #tpu.memory_space<vmem>>, vector<1x16x32xbf16>
    %107 = vector.shape_cast %106 : vector<1x16x32xbf16> to vector<16x32xbf16>
    %cst_51 = arith.constant dense<0.000000e+00> : vector<16x32xf32>
    %108 = tpu.matmul %105, %107, %cst_51 {dimension_numbers = #tpu.dot_dimension_numbers<[1], [0], [0], [1], [0, 0, 1, 1], [], []>} : vector<16x16xbf16>, vector<16x32xbf16>, vector<16x32xf32> -> vector<16x32xf32>
    %109 = tpu.reciprocal %104 {approx = true} : vector<16x1xf32> -> vector<16x1xf32>
    %110 = vector.broadcast %109 : vector<16x1xf32> to vector<16x32xf32>
    %111 = arith.mulf %108, %110 : vector<16x32xf32>
    %112 = arith.truncf %111 : vector<16x32xf32> to vector<16x32xbf16>
    %c2_52 = arith.constant 2 : index
    %c0_53 = arith.constant 0 : index
    %c0_54 = arith.constant 0 : index
    %113 = vector.load %arg7[%c2_52, %c0_53, %c0_54] : memref<4x32x128xbf16, #tpu.memory_space<vmem>>, vector<1x32x128xbf16>
    %114 = vector.shape_cast %113 : vector<1x32x128xbf16> to vector<32x128xbf16>
    %cst_55 = arith.constant dense<0.000000e+00> : vector<16x128xf32>
    %115 = tpu.matmul %112, %114, %cst_55 {dimension_numbers = #tpu.dot_dimension_numbers<[1], [0], [0], [1], [0, 0, 1, 1], [], []>} : vector<16x32xbf16>, vector<32x128xbf16>, vector<16x128xf32> -> vector<16x128xf32>
    %116 = arith.addf %92, %115 : vector<16x128xf32>
    %117 = vector.extract_strided_slice %45 {offsets = [0, 96], sizes = [16, 32], strides = [1, 1]} : vector<16x128xf32> to vector<16x32xf32>
    %118 = arith.truncf %117 : vector<16x32xf32> to vector<16x32xbf16>
    %c3 = arith.constant 3 : index
    %c0_56 = arith.constant 0 : index
    %c0_57 = arith.constant 0 : index
    %119 = vector.load %arg16[%c3, %c0_56, %c0_57] : memref<4x16x32xbf16, #tpu.memory_space<vmem>>, vector<1x16x32xbf16>
    %120 = vector.shape_cast %119 : vector<1x16x32xbf16> to vector<16x32xbf16>
    %cst_58 = arith.constant dense<0.000000e+00> : vector<16x16xf32>
    %121 = tpu.matmul %118, %120, %cst_58 {dimension_numbers = #tpu.dot_dimension_numbers<[1], [1], [0], [0], [0, 0, 1, 0], [], []>} : vector<16x32xbf16>, vector<16x32xbf16>, vector<16x16xf32> -> vector<16x16xf32>
    %cst_59 = arith.constant dense<0xFF800000> : vector<16xf32>
    %122 = vector.multi_reduction <maximumf>, %121, %cst_59 [1] : vector<16x16xf32> to vector<16xf32>
    %123 = vector.shape_cast %122 : vector<16xf32> to vector<16x1xf32>
    %124 = vector.broadcast %123 : vector<16x1xf32> to vector<16x16xf32>
    %125 = arith.subf %121, %124 : vector<16x16xf32>
    %126 = math.exp %125 : vector<16x16xf32>
    %cst_60 = arith.constant dense<0.000000e+00> : vector<16xf32>
    %127 = vector.multi_reduction <add>, %126, %cst_60 [1] : vector<16x16xf32> to vector<16xf32>
    %128 = vector.shape_cast %127 : vector<16xf32> to vector<16x1xf32>
    %129 = arith.truncf %126 : vector<16x16xf32> to vector<16x16xbf16>
    %c3_61 = arith.constant 3 : index
    %c0_62 = arith.constant 0 : index
    %c0_63 = arith.constant 0 : index
    %130 = vector.load %arg17[%c3_61, %c0_62, %c0_63] : memref<4x16x32xbf16, #tpu.memory_space<vmem>>, vector<1x16x32xbf16>
    %131 = vector.shape_cast %130 : vector<1x16x32xbf16> to vector<16x32xbf16>
    %cst_64 = arith.constant dense<0.000000e+00> : vector<16x32xf32>
    %132 = tpu.matmul %129, %131, %cst_64 {dimension_numbers = #tpu.dot_dimension_numbers<[1], [0], [0], [1], [0, 0, 1, 1], [], []>} : vector<16x16xbf16>, vector<16x32xbf16>, vector<16x32xf32> -> vector<16x32xf32>
    %133 = tpu.reciprocal %128 {approx = true} : vector<16x1xf32> -> vector<16x1xf32>
    %134 = vector.broadcast %133 : vector<16x1xf32> to vector<16x32xf32>
    %135 = arith.mulf %132, %134 : vector<16x32xf32>
    %136 = arith.truncf %135 : vector<16x32xf32> to vector<16x32xbf16>
    %c3_65 = arith.constant 3 : index
    %c0_66 = arith.constant 0 : index
    %c0_67 = arith.constant 0 : index
    %137 = vector.load %arg7[%c3_65, %c0_66, %c0_67] : memref<4x32x128xbf16, #tpu.memory_space<vmem>>, vector<1x32x128xbf16>
    %138 = vector.shape_cast %137 : vector<1x32x128xbf16> to vector<32x128xbf16>
    %cst_68 = arith.constant dense<0.000000e+00> : vector<16x128xf32>
    %139 = tpu.matmul %136, %138, %cst_68 {dimension_numbers = #tpu.dot_dimension_numbers<[1], [0], [0], [1], [0, 0, 1, 1], [], []>} : vector<16x32xbf16>, vector<32x128xbf16>, vector<16x128xf32> -> vector<16x128xf32>
    %140 = arith.addf %116, %139 : vector<16x128xf32>
    %c0_69 = arith.constant 0 : index
    %c0_70 = arith.constant 0 : index
    %141 = vector.load %arg8[%c0_69, %c0_70] : memref<1x128xf32, #tpu.memory_space<vmem>>, vector<1x128xf32>
    %142 = vector.shape_cast %141 : vector<1x128xf32> to vector<128xf32>
    %143 = vector.shape_cast %142 : vector<128xf32> to vector<1x128xf32>
    %144 = vector.broadcast %143 : vector<1x128xf32> to vector<16x128xf32>
    %145 = arith.addf %140, %144 : vector<16x128xf32>
    %146 = arith.addf %11, %145 : vector<16x128xf32>
    %c0_71 = arith.constant 0 : index
    %c0_72 = arith.constant 0 : index
    %147 = vector.load %arg9[%c0_71, %c0_72] : memref<1x128xf32, #tpu.memory_space<vmem>>, vector<1x128xf32>
    %148 = vector.shape_cast %147 : vector<1x128xf32> to vector<128xf32>
    %c0_73 = arith.constant 0 : index
    %c0_74 = arith.constant 0 : index
    %149 = vector.load %arg10[%c0_73, %c0_74] : memref<1x128xf32, #tpu.memory_space<vmem>>, vector<1x128xf32>
    %150 = vector.shape_cast %149 : vector<1x128xf32> to vector<128xf32>
    %cst_75 = arith.constant dense<0.000000e+00> : vector<16xf32>
    %151 = vector.multi_reduction <add>, %146, %cst_75 [1] : vector<16x128xf32> to vector<16xf32>
    %152 = vector.shape_cast %151 : vector<16xf32> to vector<16x1xf32>
    %cst_76 = arith.constant 1.280000e+02 : f32
    %153 = vector.broadcast %cst_76 : f32 to vector<16x1xf32>
    %154 = arith.divf %152, %153 : vector<16x1xf32>
    %155 = vector.broadcast %154 : vector<16x1xf32> to vector<16x128xf32>
    %156 = arith.subf %146, %155 : vector<16x128xf32>
    %157 = arith.mulf %156, %156 : vector<16x128xf32>
    %cst_77 = arith.constant dense<0.000000e+00> : vector<16xf32>
    %158 = vector.multi_reduction <add>, %157, %cst_77 [1] : vector<16x128xf32> to vector<16xf32>
    %159 = vector.shape_cast %158 : vector<16xf32> to vector<16x1xf32>
    %cst_78 = arith.constant 1.280000e+02 : f32
    %160 = vector.broadcast %cst_78 : f32 to vector<16x1xf32>
    %161 = arith.divf %159, %160 : vector<16x1xf32>
    %162 = vector.broadcast %154 : vector<16x1xf32> to vector<16x128xf32>
    %163 = arith.subf %146, %162 : vector<16x128xf32>
    %cst_79 = arith.constant 9.99999997E-7 : f32
    %164 = vector.broadcast %cst_79 : f32 to vector<16x1xf32>
    %165 = arith.addf %161, %164 : vector<16x1xf32>
    %166 = math.rsqrt %165 : vector<16x1xf32>
    %167 = vector.broadcast %166 : vector<16x1xf32> to vector<16x128xf32>
    %168 = arith.mulf %163, %167 : vector<16x128xf32>
    %169 = vector.shape_cast %148 : vector<128xf32> to vector<1x128xf32>
    %170 = vector.broadcast %169 : vector<1x128xf32> to vector<16x128xf32>
    %171 = arith.mulf %168, %170 : vector<16x128xf32>
    %172 = vector.shape_cast %150 : vector<128xf32> to vector<1x128xf32>
    %173 = vector.broadcast %172 : vector<1x128xf32> to vector<16x128xf32>
    %174 = arith.addf %171, %173 : vector<16x128xf32>
    %175 = arith.truncf %174 : vector<16x128xf32> to vector<16x128xbf16>
    %c0_80 = arith.constant 0 : index
    %c0_81 = arith.constant 0 : index
    %176 = vector.load %arg11[%c0_80, %c0_81] : memref<128x512xbf16, #tpu.memory_space<vmem>>, vector<128x512xbf16>
    %cst_82 = arith.constant dense<0.000000e+00> : vector<16x512xf32>
    %177 = tpu.matmul %175, %176, %cst_82 {dimension_numbers = #tpu.dot_dimension_numbers<[1], [0], [0], [1], [0, 0, 1, 1], [], []>} : vector<16x128xbf16>, vector<128x512xbf16>, vector<16x512xf32> -> vector<16x512xf32>
    %c0_83 = arith.constant 0 : index
    %c0_84 = arith.constant 0 : index
    %178 = vector.load %arg12[%c0_83, %c0_84] : memref<1x512xf32, #tpu.memory_space<vmem>>, vector<1x512xf32>
    %179 = vector.shape_cast %178 : vector<1x512xf32> to vector<512xf32>
    %180 = vector.shape_cast %179 : vector<512xf32> to vector<1x512xf32>
    %181 = vector.broadcast %180 : vector<1x512xf32> to vector<16x512xf32>
    %182 = arith.addf %177, %181 : vector<16x512xf32>
    %cst_85 = arith.constant 5.000000e-01 : f32
    %183 = vector.broadcast %cst_85 : f32 to vector<16x512xf32>
    %184 = arith.mulf %183, %182 : vector<16x512xf32>
    %cst_86 = arith.constant 0.707106769 : f32
    %185 = vector.broadcast %cst_86 : f32 to vector<16x512xf32>
    %186 = arith.mulf %182, %185 : vector<16x512xf32>
    %187 = math.erf %186 : vector<16x512xf32>
    %cst_87 = arith.constant 1.000000e+00 : f32
    %188 = vector.broadcast %cst_87 : f32 to vector<16x512xf32>
    %189 = arith.addf %188, %187 : vector<16x512xf32>
    %190 = arith.mulf %184, %189 : vector<16x512xf32>
    %191 = arith.truncf %190 : vector<16x512xf32> to vector<16x512xbf16>
    %c0_88 = arith.constant 0 : index
    %c0_89 = arith.constant 0 : index
    %192 = vector.load %arg13[%c0_88, %c0_89] : memref<512x128xbf16, #tpu.memory_space<vmem>>, vector<512x128xbf16>
    %cst_90 = arith.constant dense<0.000000e+00> : vector<16x128xf32>
    %193 = tpu.matmul %191, %192, %cst_90 {dimension_numbers = #tpu.dot_dimension_numbers<[1], [0], [0], [1], [0, 0, 1, 1], [], []>} : vector<16x512xbf16>, vector<512x128xbf16>, vector<16x128xf32> -> vector<16x128xf32>
    %c0_91 = arith.constant 0 : index
    %c0_92 = arith.constant 0 : index
    %194 = vector.load %arg14[%c0_91, %c0_92] : memref<1x128xf32, #tpu.memory_space<vmem>>, vector<1x128xf32>
    %195 = vector.shape_cast %194 : vector<1x128xf32> to vector<128xf32>
    %196 = vector.shape_cast %195 : vector<128xf32> to vector<1x128xf32>
    %197 = vector.broadcast %196 : vector<1x128xf32> to vector<16x128xf32>
    %198 = arith.addf %193, %197 : vector<16x128xf32>
    %199 = arith.addf %146, %198 : vector<16x128xf32>
    %c0_93 = arith.constant 0 : index
    %c0_94 = arith.constant 0 : index
    %c0_95 = arith.constant 0 : index
    %200 = vector.load %arg15[%c0_93, %c0_94, %c0_95] : memref<1x16x128xf32, #tpu.memory_space<vmem>>, vector<1x16x128xf32>
    %201 = vector.shape_cast %200 : vector<1x16x128xf32> to vector<16x128xf32>
    %202 = vector.shape_cast %199 : vector<16x128xf32> to vector<1x16x128xf32>
    tpu.vector_store %arg15[%c0_93, %c0_94, %c0_95], %202 {strides = array<i32>} : memref<1x16x128xf32, #tpu.memory_space<vmem>>, vector<1x16x128xf32>,
    return
  }
  func.func @transform_0(%arg0: i32, %arg1: i32) -> (i32, i32, i32) {
    %c0_i32 = arith.constant 0 : i32
    %c0_i32_0 = arith.constant 0 : i32
    %c0_i32_1 = arith.constant 0 : i32
    return %arg0, %c0_i32, %c0_i32_0 : i32, i32, i32
  }
  func.func @transform_1(%arg0: i32, %arg1: i32) -> (i32, i32) {
    %c0_i32 = arith.constant 0 : i32
    %c0_i32_0 = arith.constant 0 : i32
    %c0_i32_1 = arith.constant 0 : i32
    return %c0_i32, %c0_i32_0 : i32, i32
  }
  func.func @transform_2(%arg0: i32, %arg1: i32) -> (i32, i32) {
    %c0_i32 = arith.constant 0 : i32
    %c0_i32_0 = arith.constant 0 : i32
    %c0_i32_1 = arith.constant 0 : i32
    return %c0_i32, %c0_i32_0 : i32, i32
  }
  func.func @transform_3(%arg0: i32, %arg1: i32) -> (i32, i32) {
    %c0_i32 = arith.constant 0 : i32
    %c0_i32_0 = arith.constant 0 : i32
    %c0_i32_1 = arith.constant 0 : i32
    return %c0_i32, %c0_i32_0 : i32, i32
  }
  func.func @transform_4(%arg0: i32, %arg1: i32) -> (i32, i32) {
    %c0_i32 = arith.constant 0 : i32
    %c0_i32_0 = arith.constant 0 : i32
    %c0_i32_1 = arith.constant 0 : i32
    return %c0_i32, %c0_i32_0 : i32, i32
  }
  func.func @transform_5(%arg0: i32, %arg1: i32) -> (i32, i32, i32) {
    %c0_i32 = arith.constant 0 : i32
    %c0_i32_0 = arith.constant 0 : i32
    %c0_i32_1 = arith.constant 0 : i32
    %c0_i32_2 = arith.constant 0 : i32
    return %c0_i32, %c0_i32_0, %c0_i32_1 : i32, i32, i32
  }
  func.func @transform_6(%arg0: i32, %arg1: i32) -> (i32, i32) {
    %c0_i32 = arith.constant 0 : i32
    %c0_i32_0 = arith.constant 0 : i32
    %c0_i32_1 = arith.constant 0 : i32
    return %c0_i32, %c0_i32_0 : i32, i32
  }
  func.func @transform_7(%arg0: i32, %arg1: i32) -> (i32, i32) {
    %c0_i32 = arith.constant 0 : i32
    %c0_i32_0 = arith.constant 0 : i32
    %c0_i32_1 = arith.constant 0 : i32
    return %c0_i32, %c0_i32_0 : i32, i32
  }
  func.func @transform_8(%arg0: i32, %arg1: i32) -> (i32, i32) {
    %c0_i32 = arith.constant 0 : i32
    %c0_i32_0 = arith.constant 0 : i32
    %c0_i32_1 = arith.constant 0 : i32
    return %c0_i32, %c0_i32_0 : i32, i32
  }
  func.func @transform_9(%arg0: i32, %arg1: i32) -> (i32, i32) {
    %c0_i32 = arith.constant 0 : i32
    %c0_i32_0 = arith.constant 0 : i32
    %c0_i32_1 = arith.constant 0 : i32
    return %c0_i32, %c0_i32_0 : i32, i32
  }
  func.func @transform_10(%arg0: i32, %arg1: i32) -> (i32, i32) {
    %c0_i32 = arith.constant 0 : i32
    %c0_i32_0 = arith.constant 0 : i32
    %c0_i32_1 = arith.constant 0 : i32
    return %c0_i32, %c0_i32_0 : i32, i32
  }
  func.func @transform_11(%arg0: i32, %arg1: i32) -> (i32, i32) {
    %c0_i32 = arith.constant 0 : i32
    %c0_i32_0 = arith.constant 0 : i32
    %c0_i32_1 = arith.constant 0 : i32
    return %c0_i32, %c0_i32_0 : i32, i32
  }
  func.func @transform_12(%arg0: i32, %arg1: i32) -> (i32, i32) {
    %c0_i32 = arith.constant 0 : i32
    %c0_i32_0 = arith.constant 0 : i32
    %c0_i32_1 = arith.constant 0 : i32
    return %c0_i32, %c0_i32_0 : i32, i32
  }
  func.func @transform_13(%arg0: i32, %arg1: i32) -> (i32, i32, i32) {
    %c0_i32 = arith.constant 0 : i32
    %c0_i32_0 = arith.constant 0 : i32
    return %arg0, %arg1, %c0_i32 : i32, i32, i32
  }
}

module attributes {stable_mosaic.version = 11 : i64} {
  func.func @encoder_block_kernel(%arg0: i32, %arg1: i32, %arg2: memref<1x16x128xf32, #tpu.memory_space<vmem>>, %arg3: memref<1x128xf32, #tpu.memory_space<vmem>>, %arg4: memref<1x128xf32, #tpu.memory_space<vmem>>, %arg5: memref<128x384xbf16, #tpu.memory_space<vmem>>, %arg6: memref<1x384xf32, #tpu.memory_space<vmem>>, %arg7: memref<4x32x128xbf16, #tpu.memory_space<vmem>>, %arg8: memref<1x128xf32, #tpu.memory_space<vmem>>, %arg9: memref<1x128xf32, #tpu.memory_space<vmem>>, %arg10: memref<1x128xf32, #tpu.memory_space<vmem>>, %arg11: memref<128x512xbf16, #tpu.memory_space<vmem>>, %arg12: memref<1x512xf32, #tpu.memory_space<vmem>>, %arg13: memref<512x128xbf16, #tpu.memory_space<vmem>>, %arg14: memref<1x128xf32, #tpu.memory_space<vmem>>, %arg15: memref<1x16x128xf32, #tpu.memory_space<vmem>>, %arg16: memref<4x16x32xbf16, #tpu.memory_space<vmem>>, %arg17: memref<4x16x32xbf16, #tpu.memory_space<vmem>>) attributes {dimension_semantics = [#tpu.dimension_semantics<parallel>, #tpu.dimension_semantics<arbitrary>], iteration_bounds = array<i64: 2, 1>, scalar_prefetch = 0 : i64, scratch_operands = 2 : i64, tpu.core_type = #tpu.core_type<tc>, window_params = [{transform_indices = @transform_0, window_bounds = array<i64: 1, 16, 128>}, {pipeline_mode = #tpu.pipeline_mode<synchronous>, transform_indices = @transform_1, window_bounds = array<i64: 1, 128>}, {pipeline_mode = #tpu.pipeline_mode<synchronous>, transform_indices = @transform_2, window_bounds = array<i64: 1, 128>}, {pipeline_mode = #tpu.pipeline_mode<synchronous>, transform_indices = @transform_3, window_bounds = array<i64: 128, 384>}, {pipeline_mode = #tpu.pipeline_mode<synchronous>, transform_indices = @transform_4, window_bounds = array<i64: 1, 384>}, {pipeline_mode = #tpu.pipeline_mode<synchronous>, transform_indices = @transform_5, window_bounds = array<i64: 4, 32, 128>}, {pipeline_mode = #tpu.pipeline_mode<synchronous>, transform_indices = @transform_6, window_bounds = array<i64: 1, 128>}, {pipeline_mode = #tpu.pipeline_mode<synchronous>, transform_indices = @transform_7, window_bounds = array<i64: 1, 128>}, {pipeline_mode = #tpu.pipeline_mode<synchronous>, transform_indices = @transform_8, window_bounds = array<i64: 1, 128>}, {pipeline_mode = #tpu.pipeline_mode<synchronous>, transform_indices = @transform_9, window_bounds = array<i64: 128, 512>}, {pipeline_mode = #tpu.pipeline_mode<synchronous>, transform_indices = @transform_10, window_bounds = array<i64: 1, 512>}, {pipeline_mode = #tpu.pipeline_mode<synchronous>, transform_indices = @transform_11, window_bounds = array<i64: 512, 128>}, {pipeline_mode = #tpu.pipeline_mode<synchronous>, transform_indices = @transform_12, window_bounds = array<i64: 1, 128>}, {transform_indices = @transform_13, window_bounds = array<i64: 1, 16, 128>}]} {
    %c0 = arith.constant 0 : index
    %c0_0 = arith.constant 0 : index
    %0 = vector.load %arg3[%c0, %c0_0] : memref<1x128xf32, #tpu.memory_space<vmem>>, vector<1x128xf32>
    %1 = vector.shape_cast %0 : vector<1x128xf32> to vector<128xf32>
    %c0_1 = arith.constant 0 : index
    %c0_2 = arith.constant 0 : index
    %2 = vector.load %arg4[%c0_1, %c0_2] : memref<1x128xf32, #tpu.memory_space<vmem>>, vector<1x128xf32>
    %3 = vector.shape_cast %2 : vector<1x128xf32> to vector<128xf32>
    %c0_i32 = arith.constant 0 : i32
    %4 = arith.cmpi eq, %arg1, %c0_i32 : i32
    %5 = arith.extui %4 : i1 to i32
    %c0_i32_3 = arith.constant 0 : i32
    %6 = arith.cmpi ne, %5, %c0_i32_3 : i32
    scf.if %6 {
      %c0_96 = arith.constant 0 : index
      %c0_97 = arith.constant 0 : index
      %c0_98 = arith.constant 0 : index
      %203 = vector.load %arg2[%c0_96, %c0_97, %c0_98] : memref<1x16x128xf32, #tpu.memory_space<vmem>>, vector<1x16x128xf32>
      %204 = vector.shape_cast %203 : vector<1x16x128xf32> to vector<16x128xf32>
      %cst_99 = arith.constant dense<0.000000e+00> : vector<16xf32>
      %205 = vector.multi_reduction <add>, %204, %cst_99 [1] : vector<16x128xf32> to vector<16xf32>
      %206 = vector.shape_cast %205 : vector<16xf32> to vector<16x1xf32>
      %cst_100 = arith.constant 1.280000e+02 : f32
      %207 = vector.broadcast %cst_100 : f32 to vector<16x1xf32>
      %208 = arith.divf %206, %207 : vector<16x1xf32>
      %209 = vector.broadcast %208 : vector<16x1xf32> to vector<16x128xf32>
      %210 = arith.subf %204, %209 : vector<16x128xf32>
      %211 = arith.mulf %210, %210 : vector<16x128xf32>
      %cst_101 = arith.constant dense<0.000000e+00> : vector<16xf32>
      %212 = vector.multi_reduction <add>, %211, %cst_101 [1] : vector<16x128xf32> to vector<16xf32>
      %213 = vector.shape_cast %212 : vector<16xf32> to vector<16x1xf32>
      %cst_102 = arith.constant 1.280000e+02 : f32
      %214 = vector.broadcast %cst_102 : f32 to vector<16x1xf32>
      %215 = arith.divf %213, %214 : vector<16x1xf32>
      %216 = vector.broadcast %208 : vector<16x1xf32> to vector<16x128xf32>
      %217 = arith.subf %204, %216 : vector<16x128xf32>
      %cst_103 = arith.constant 9.99999997E-7 : f32
      %218 = vector.broadcast %cst_103 : f32 to vector<16x1xf32>
      %219 = arith.addf %215, %218 : vector<16x1xf32>
      %220 = math.rsqrt %219 : vector<16x1xf32>
      %221 = vector.broadcast %220 : vector<16x1xf32> to vector<16x128xf32>
      %222 = arith.mulf %217, %221 : vector<16x128xf32>
      %223 = vector.shape_cast %1 : vector<128xf32> to vector<1x128xf32>
      %224 = vector.broadcast %223 : vector<1x128xf32> to vector<16x128xf32>
      %225 = arith.mulf %222, %224 : vector<16x128xf32>
      %226 = vector.shape_cast %3 : vector<128xf32> to vector<1x128xf32>
      %227 = vector.broadcast %226 : vector<1x128xf32> to vector<16x128xf32>
      %228 = arith.addf %225, %227 : vector<16x128xf32>
      %229 = arith.truncf %228 : vector<16x128xf32> to vector<16x128xbf16>
      %c0_104 = arith.constant 0 : index
      %c128 = arith.constant 128 : index
      %230 = vector.load %arg5[%c0_104, %c128] : memref<128x384xbf16, #tpu.memory_space<vmem>>, vector<128x256xbf16>
      %cst_105 = arith.constant dense<0.000000e+00> : vector<16x256xf32>
      %231 = tpu.matmul %229, %230, %cst_105 {dimension_numbers = #tpu.dot_dimension_numbers<[1], [0], [0], [1], [0, 0, 1, 1], [], []>} : vector<16x128xbf16>, vector<128x256xbf16>, vector<16x256xf32> -> vector<16x256xf32>
      %c0_106 = arith.constant 0 : index
      %c128_107 = arith.constant 128 : index
      %232 = vector.load %arg6[%c0_106, %c128_107] : memref<1x384xf32, #tpu.memory_space<vmem>>, vector<1x256xf32>
      %233 = vector.shape_cast %232 : vector<1x256xf32> to vector<256xf32>
      %234 = vector.shape_cast %233 : vector<256xf32> to vector<1x256xf32>
      %235 = vector.broadcast %234 : vector<1x256xf32> to vector<16x256xf32>
      %236 = arith.addf %231, %235 : vector<16x256xf32>
      %237 = vector.extract_strided_slice %236 {offsets = [0, 0], sizes = [16, 32], strides = [1, 1]} : vector<16x256xf32> to vector<16x32xf32>
      %238 = arith.truncf %237 : vector<16x32xf32> to vector<16x32xbf16>
      %c0_108 = arith.constant 0 : index
      %c0_109 = arith.constant 0 : index
      %c0_110 = arith.constant 0 : index
      %239 = vector.load %arg16[%c0_108, %c0_109, %c0_110] : memref<4x16x32xbf16, #tpu.memory_space<vmem>>, vector<1x16x32xbf16>
      %240 = vector.shape_cast %239 : vector<1x16x32xbf16> to vector<16x32xbf16>
      %241 = vector.shape_cast %238 : vector<16x32xbf16> to vector<1x16x32xbf16>
      tpu.vector_store %arg16[%c0_108, %c0_109, %c0_110], %241 {strides = array<i32>} : memref<4x16x32xbf16, #tpu.memory_space<vmem>>, vector<1x16x32xbf16>,
      %242 = vector.extract_strided_slice %236 {offsets = [0, 128], sizes = [16, 32], strides = [1, 1]} : vector<16x256xf32> to vector<16x32xf32>
      %243 = arith.truncf %242 : vector<16x32xf32> to vector<16x32xbf16>
      %c0_111 = arith.constant 0 : index
      %c0_112 = arith.constant 0 : index
      %c0_113 = arith.constant 0 : index
      %244 = vector.load %arg17[%c0_111, %c0_112, %c0_113] : memref<4x16x32xbf16, #tpu.memory_space<vmem>>, vector<1x16x32xbf16>
      %245 = vector.shape_cast %244 : vector<1x16x32xbf16> to vector<16x32xbf16>
      %246 = vector.shape_cast %243 : vector<16x32xbf16> to vector<1x16x32xbf16>
      tpu.vector_store %arg17[%c0_111, %c0_112, %c0_113], %246 {strides = array<i32>} : memref<4x16x32xbf16, #tpu.memory_space<vmem>>, vector<1x16x32xbf16>,
      %247 = vector.extract_strided_slice %236 {offsets = [0, 32], sizes = [16, 32], strides = [1, 1]} : vector<16x256xf32> to vector<16x32xf32>
      %248 = arith.truncf %247 : vector<16x32xf32> to vector<16x32xbf16>
      %c1_114 = arith.constant 1 : index
      %c0_115 = arith.constant 0 : index
      %c0_116 = arith.constant 0 : index
      %249 = vector.load %arg16[%c1_114, %c0_115, %c0_116] : memref<4x16x32xbf16, #tpu.memory_space<vmem>>, vector<1x16x32xbf16>
      %250 = vector.shape_cast %249 : vector<1x16x32xbf16> to vector<16x32xbf16>
      %251 = vector.shape_cast %248 : vector<16x32xbf16> to vector<1x16x32xbf16>
      tpu.vector_store %arg16[%c1_114, %c0_115, %c0_116], %251 {strides = array<i32>} : memref<4x16x32xbf16, #tpu.memory_space<vmem>>, vector<1x16x32xbf16>,
      %252 = vector.extract_strided_slice %236 {offsets = [0, 160], sizes = [16, 32], strides = [1, 1]} : vector<16x256xf32> to vector<16x32xf32>
      %253 = arith.truncf %252 : vector<16x32xf32> to vector<16x32xbf16>
      %c1_117 = arith.constant 1 : index
      %c0_118 = arith.constant 0 : index
      %c0_119 = arith.constant 0 : index
      %254 = vector.load %arg17[%c1_117, %c0_118, %c0_119] : memref<4x16x32xbf16, #tpu.memory_space<vmem>>, vector<1x16x32xbf16>
      %255 = vector.shape_cast %254 : vector<1x16x32xbf16> to vector<16x32xbf16>
      %256 = vector.shape_cast %253 : vector<16x32xbf16> to vector<1x16x32xbf16>
      tpu.vector_store %arg17[%c1_117, %c0_118, %c0_119], %256 {strides = array<i32>} : memref<4x16x32xbf16, #tpu.memory_space<vmem>>, vector<1x16x32xbf16>,
      %257 = vector.extract_strided_slice %236 {offsets = [0, 64], sizes = [16, 32], strides = [1, 1]} : vector<16x256xf32> to vector<16x32xf32>
      %258 = arith.truncf %257 : vector<16x32xf32> to vector<16x32xbf16>
      %c2_120 = arith.constant 2 : index
      %c0_121 = arith.constant 0 : index
      %c0_122 = arith.constant 0 : index
      %259 = vector.load %arg16[%c2_120, %c0_121, %c0_122] : memref<4x16x32xbf16, #tpu.memory_space<vmem>>, vector<1x16x32xbf16>
      %260 = vector.shape_cast %259 : vector<1x16x32xbf16> to vector<16x32xbf16>
      %261 = vector.shape_cast %258 : vector<16x32xbf16> to vector<1x16x32xbf16>
      tpu.vector_store %arg16[%c2_120, %c0_121, %c0_122], %261 {strides = array<i32>} : memref<4x16x32xbf16, #tpu.memory_space<vmem>>, vector<1x16x32xbf16>,
      %262 = vector.extract_strided_slice %236 {offsets = [0, 192], sizes = [16, 32], strides = [1, 1]} : vector<16x256xf32> to vector<16x32xf32>
      %263 = arith.truncf %262 : vector<16x32xf32> to vector<16x32xbf16>
      %c2_123 = arith.constant 2 : index
      %c0_124 = arith.constant 0 : index
      %c0_125 = arith.constant 0 : index
      %264 = vector.load %arg17[%c2_123, %c0_124, %c0_125] : memref<4x16x32xbf16, #tpu.memory_space<vmem>>, vector<1x16x32xbf16>
      %265 = vector.shape_cast %264 : vector<1x16x32xbf16> to vector<16x32xbf16>
      %266 = vector.shape_cast %263 : vector<16x32xbf16> to vector<1x16x32xbf16>
      tpu.vector_store %arg17[%c2_123, %c0_124, %c0_125], %266 {strides = array<i32>} : memref<4x16x32xbf16, #tpu.memory_space<vmem>>, vector<1x16x32xbf16>,
      %267 = vector.extract_strided_slice %236 {offsets = [0, 96], sizes = [16, 32], strides = [1, 1]} : vector<16x256xf32> to vector<16x32xf32>
      %268 = arith.truncf %267 : vector<16x32xf32> to vector<16x32xbf16>
      %c3_126 = arith.constant 3 : index
      %c0_127 = arith.constant 0 : index
      %c0_128 = arith.constant 0 : index
      %269 = vector.load %arg16[%c3_126, %c0_127, %c0_128] : memref<4x16x32xbf16, #tpu.memory_space<vmem>>, vector<1x16x32xbf16>
      %270 = vector.shape_cast %269 : vector<1x16x32xbf16> to vector<16x32xbf16>
      %271 = vector.shape_cast %268 : vector<16x32xbf16> to vector<1x16x32xbf16>
      tpu.vector_store %arg16[%c3_126, %c0_127, %c0_128], %271 {strides = array<i32>} : memref<4x16x32xbf16, #tpu.memory_space<vmem>>, vector<1x16x32xbf16>,
      %272 = vector.extract_strided_slice %236 {offsets = [0, 224], sizes = [16, 32], strides = [1, 1]} : vector<16x256xf32> to vector<16x32xf32>
      %273 = arith.truncf %272 : vector<16x32xf32> to vector<16x32xbf16>
      %c3_129 = arith.constant 3 : index
      %c0_130 = arith.constant 0 : index
      %c0_131 = arith.constant 0 : index
      %274 = vector.load %arg17[%c3_129, %c0_130, %c0_131] : memref<4x16x32xbf16, #tpu.memory_space<vmem>>, vector<1x16x32xbf16>
      %275 = vector.shape_cast %274 : vector<1x16x32xbf16> to vector<16x32xbf16>
      %276 = vector.shape_cast %273 : vector<16x32xbf16> to vector<1x16x32xbf16>
      tpu.vector_store %arg17[%c3_129, %c0_130, %c0_131], %276 {strides = array<i32>} : memref<4x16x32xbf16, #tpu.memory_space<vmem>>, vector<1x16x32xbf16>,
    } else {
    }
    %c16_i32 = arith.constant 16 : i32
    %7 = arith.muli %arg1, %c16_i32 : i32
    %8 = tpu.assume_multiple %7, 16 : i32
    %c0_4 = arith.constant 0 : index
    %9 = arith.index_cast %8 : i32 to index
    %c0_5 = arith.constant 0 : index
    %10 = vector.load %arg2[%c0_4, %9, %c0_5] : memref<1x16x128xf32, #tpu.memory_space<vmem>>, vector<1x16x128xf32>
    %11 = vector.shape_cast %10 : vector<1x16x128xf32> to vector<16x128xf32>
    %cst = arith.constant dense<0.000000e+00> : vector<16xf32>
    %12 = vector.multi_reduction <add>, %11, %cst [1] : vector<16x128xf32> to vector<16xf32>
    %13 = vector.shape_cast %12 : vector<16xf32> to vector<16x1xf32>
    %cst_6 = arith.constant 1.280000e+02 : f32
    %14 = vector.broadcast %cst_6 : f32 to vector<16x1xf32>
    %15 = arith.divf %13, %14 : vector<16x1xf32>
    %16 = vector.broadcast %15 : vector<16x1xf32> to vector<16x128xf32>
    %17 = arith.subf %11, %16 : vector<16x128xf32>
    %18 = arith.mulf %17, %17 : vector<16x128xf32>
    %cst_7 = arith.constant dense<0.000000e+00> : vector<16xf32>
    %19 = vector.multi_reduction <add>, %18, %cst_7 [1] : vector<16x128xf32> to vector<16xf32>
    %20 = vector.shape_cast %19 : vector<16xf32> to vector<16x1xf32>
    %cst_8 = arith.constant 1.280000e+02 : f32
    %21 = vector.broadcast %cst_8 : f32 to vector<16x1xf32>
    %22 = arith.divf %20, %21 : vector<16x1xf32>
    %23 = vector.broadcast %15 : vector<16x1xf32> to vector<16x128xf32>
    %24 = arith.subf %11, %23 : vector<16x128xf32>
    %cst_9 = arith.constant 9.99999997E-7 : f32
    %25 = vector.broadcast %cst_9 : f32 to vector<16x1xf32>
    %26 = arith.addf %22, %25 : vector<16x1xf32>
    %27 = math.rsqrt %26 : vector<16x1xf32>
    %28 = vector.broadcast %27 : vector<16x1xf32> to vector<16x128xf32>
    %29 = arith.mulf %24, %28 : vector<16x128xf32>
    %30 = vector.shape_cast %1 : vector<128xf32> to vector<1x128xf32>
    %31 = vector.broadcast %30 : vector<1x128xf32> to vector<16x128xf32>
    %32 = arith.mulf %29, %31 : vector<16x128xf32>
    %33 = vector.shape_cast %3 : vector<128xf32> to vector<1x128xf32>
    %34 = vector.broadcast %33 : vector<1x128xf32> to vector<16x128xf32>
    %35 = arith.addf %32, %34 : vector<16x128xf32>
    %36 = arith.truncf %35 : vector<16x128xf32> to vector<16x128xbf16>
    %c0_10 = arith.constant 0 : index
    %c0_11 = arith.constant 0 : index
    %37 = vector.load %arg5[%c0_10, %c0_11] : memref<128x384xbf16, #tpu.memory_space<vmem>>, vector<128x128xbf16>
    %cst_12 = arith.constant dense<0.000000e+00> : vector<16x128xf32>
    %38 = tpu.matmul %36, %37, %cst_12 {dimension_numbers = #tpu.dot_dimension_numbers<[1], [0], [0], [1], [0, 0, 1, 1], [], []>} : vector<16x128xbf16>, vector<128x128xbf16>, vector<16x128xf32> -> vector<16x128xf32>
    %c0_13 = arith.constant 0 : index
    %c0_14 = arith.constant 0 : index
    %39 = vector.load %arg6[%c0_13, %c0_14] : memref<1x384xf32, #tpu.memory_space<vmem>>, vector<1x128xf32>
    %40 = vector.shape_cast %39 : vector<1x128xf32> to vector<128xf32>
    %41 = vector.shape_cast %40 : vector<128xf32> to vector<1x128xf32>
    %42 = vector.broadcast %41 : vector<1x128xf32> to vector<16x128xf32>
    %43 = arith.addf %38, %42 : vector<16x128xf32>
    %cst_15 = arith.constant 0.176776692 : f32
    %44 = vector.broadcast %cst_15 : f32 to vector<16x128xf32>
    %45 = arith.mulf %43, %44 : vector<16x128xf32>
    %46 = vector.extract_strided_slice %45 {offsets = [0, 0], sizes = [16, 32], strides = [1, 1]} : vector<16x128xf32> to vector<16x32xf32>
    %47 = arith.truncf %46 : vector<16x32xf32> to vector<16x32xbf16>
    %c0_16 = arith.constant 0 : index
    %c0_17 = arith.constant 0 : index
    %c0_18 = arith.constant 0 : index
    %48 = vector.load %arg16[%c0_16, %c0_17, %c0_18] : memref<4x16x32xbf16, #tpu.memory_space<vmem>>, vector<1x16x32xbf16>
    %49 = vector.shape_cast %48 : vector<1x16x32xbf16> to vector<16x32xbf16>
    %cst_19 = arith.constant dense<0.000000e+00> : vector<16x16xf32>
    %50 = tpu.matmul %47, %49, %cst_19 {dimension_numbers = #tpu.dot_dimension_numbers<[1], [1], [0], [0], [0, 0, 1, 0], [], []>} : vector<16x32xbf16>, vector<16x32xbf16>, vector<16x16xf32> -> vector<16x16xf32>
    %cst_20 = arith.constant dense<0xFF800000> : vector<16xf32>
    %51 = vector.multi_reduction <maximumf>, %50, %cst_20 [1] : vector<16x16xf32> to vector<16xf32>
    %52 = vector.shape_cast %51 : vector<16xf32> to vector<16x1xf32>
    %53 = vector.broadcast %52 : vector<16x1xf32> to vector<16x16xf32>
    %54 = arith.subf %50, %53 : vector<16x16xf32>
    %55 = math.exp %54 : vector<16x16xf32>
    %cst_21 = arith.constant dense<0.000000e+00> : vector<16xf32>
    %56 = vector.multi_reduction <add>, %55, %cst_21 [1] : vector<16x16xf32> to vector<16xf32>
    %57 = vector.shape_cast %56 : vector<16xf32> to vector<16x1xf32>
    %58 = arith.truncf %55 : vector<16x16xf32> to vector<16x16xbf16>
    %c0_22 = arith.constant 0 : index
    %c0_23 = arith.constant 0 : index
    %c0_24 = arith.constant 0 : index
    %59 = vector.load %arg17[%c0_22, %c0_23, %c0_24] : memref<4x16x32xbf16, #tpu.memory_space<vmem>>, vector<1x16x32xbf16>
    %60 = vector.shape_cast %59 : vector<1x16x32xbf16> to vector<16x32xbf16>
    %cst_25 = arith.constant dense<0.000000e+00> : vector<16x32xf32>
    %61 = tpu.matmul %58, %60, %cst_25 {dimension_numbers = #tpu.dot_dimension_numbers<[1], [0], [0], [1], [0, 0, 1, 1], [], []>} : vector<16x16xbf16>, vector<16x32xbf16>, vector<16x32xf32> -> vector<16x32xf32>
    %62 = tpu.reciprocal %57 {approx = true} : vector<16x1xf32> -> vector<16x1xf32>
    %63 = vector.broadcast %62 : vector<16x1xf32> to vector<16x32xf32>
    %64 = arith.mulf %61, %63 : vector<16x32xf32>
    %65 = arith.truncf %64 : vector<16x32xf32> to vector<16x32xbf16>
    %c0_26 = arith.constant 0 : index
    %c0_27 = arith.constant 0 : index
    %c0_28 = arith.constant 0 : index
    %66 = vector.load %arg7[%c0_26, %c0_27, %c0_28] : memref<4x32x128xbf16, #tpu.memory_space<vmem>>, vector<1x32x128xbf16>
    %67 = vector.shape_cast %66 : vector<1x32x128xbf16> to vector<32x128xbf16>
    %cst_29 = arith.constant dense<0.000000e+00> : vector<16x128xf32>
    %68 = tpu.matmul %65, %67, %cst_29 {dimension_numbers = #tpu.dot_dimension_numbers<[1], [0], [0], [1], [0, 0, 1, 1], [], []>} : vector<16x32xbf16>, vector<32x128xbf16>, vector<16x128xf32> -> vector<16x128xf32>
    %69 = vector.extract_strided_slice %45 {offsets = [0, 32], sizes = [16, 32], strides = [1, 1]} : vector<16x128xf32> to vector<16x32xf32>
    %70 = arith.truncf %69 : vector<16x32xf32> to vector<16x32xbf16>
    %c1 = arith.constant 1 : index
    %c0_30 = arith.constant 0 : index
    %c0_31 = arith.constant 0 : index
    %71 = vector.load %arg16[%c1, %c0_30, %c0_31] : memref<4x16x32xbf16, #tpu.memory_space<vmem>>, vector<1x16x32xbf16>
    %72 = vector.shape_cast %71 : vector<1x16x32xbf16> to vector<16x32xbf16>
    %cst_32 = arith.constant dense<0.000000e+00> : vector<16x16xf32>
    %73 = tpu.matmul %70, %72, %cst_32 {dimension_numbers = #tpu.dot_dimension_numbers<[1], [1], [0], [0], [0, 0, 1, 0], [], []>} : vector<16x32xbf16>, vector<16x32xbf16>, vector<16x16xf32> -> vector<16x16xf32>
    %cst_33 = arith.constant dense<0xFF800000> : vector<16xf32>
    %74 = vector.multi_reduction <maximumf>, %73, %cst_33 [1] : vector<16x16xf32> to vector<16xf32>
    %75 = vector.shape_cast %74 : vector<16xf32> to vector<16x1xf32>
    %76 = vector.broadcast %75 : vector<16x1xf32> to vector<16x16xf32>
    %77 = arith.subf %73, %76 : vector<16x16xf32>
    %78 = math.exp %77 : vector<16x16xf32>
    %cst_34 = arith.constant dense<0.000000e+00> : vector<16xf32>
    %79 = vector.multi_reduction <add>, %78, %cst_34 [1] : vector<16x16xf32> to vector<16xf32>
    %80 = vector.shape_cast %79 : vector<16xf32> to vector<16x1xf32>
    %81 = arith.truncf %78 : vector<16x16xf32> to vector<16x16xbf16>
    %c1_35 = arith.constant 1 : index
    %c0_36 = arith.constant 0 : index
    %c0_37 = arith.constant 0 : index
    %82 = vector.load %arg17[%c1_35, %c0_36, %c0_37] : memref<4x16x32xbf16, #tpu.memory_space<vmem>>, vector<1x16x32xbf16>
    %83 = vector.shape_cast %82 : vector<1x16x32xbf16> to vector<16x32xbf16>
    %cst_38 = arith.constant dense<0.000000e+00> : vector<16x32xf32>
    %84 = tpu.matmul %81, %83, %cst_38 {dimension_numbers = #tpu.dot_dimension_numbers<[1], [0], [0], [1], [0, 0, 1, 1], [], []>} : vector<16x16xbf16>, vector<16x32xbf16>, vector<16x32xf32> -> vector<16x32xf32>
    %85 = tpu.reciprocal %80 {approx = true} : vector<16x1xf32> -> vector<16x1xf32>
    %86 = vector.broadcast %85 : vector<16x1xf32> to vector<16x32xf32>
    %87 = arith.mulf %84, %86 : vector<16x32xf32>
    %88 = arith.truncf %87 : vector<16x32xf32> to vector<16x32xbf16>
    %c1_39 = arith.constant 1 : index
    %c0_40 = arith.constant 0 : index
    %c0_41 = arith.constant 0 : index
    %89 = vector.load %arg7[%c1_39, %c0_40, %c0_41] : memref<4x32x128xbf16, #tpu.memory_space<vmem>>, vector<1x32x128xbf16>
    %90 = vector.shape_cast %89 : vector<1x32x128xbf16> to vector<32x128xbf16>
    %cst_42 = arith.constant dense<0.000000e+00> : vector<16x128xf32>
    %91 = tpu.matmul %88, %90, %cst_42 {dimension_numbers = #tpu.dot_dimension_numbers<[1], [0], [0], [1], [0, 0, 1, 1], [], []>} : vector<16x32xbf16>, vector<32x128xbf16>, vector<16x128xf32> -> vector<16x128xf32>
    %92 = arith.addf %68, %91 : vector<16x128xf32>
    %93 = vector.extract_strided_slice %45 {offsets = [0, 64], sizes = [16, 32], strides = [1, 1]} : vector<16x128xf32> to vector<16x32xf32>
    %94 = arith.truncf %93 : vector<16x32xf32> to vector<16x32xbf16>
    %c2 = arith.constant 2 : index
    %c0_43 = arith.constant 0 : index
    %c0_44 = arith.constant 0 : index
    %95 = vector.load %arg16[%c2, %c0_43, %c0_44] : memref<4x16x32xbf16, #tpu.memory_space<vmem>>, vector<1x16x32xbf16>
    %96 = vector.shape_cast %95 : vector<1x16x32xbf16> to vector<16x32xbf16>
    %cst_45 = arith.constant dense<0.000000e+00> : vector<16x16xf32>
    %97 = tpu.matmul %94, %96, %cst_45 {dimension_numbers = #tpu.dot_dimension_numbers<[1], [1], [0], [0], [0, 0, 1, 0], [], []>} : vector<16x32xbf16>, vector<16x32xbf16>, vector<16x16xf32> -> vector<16x16xf32>
    %cst_46 = arith.constant dense<0xFF800000> : vector<16xf32>
    %98 = vector.multi_reduction <maximumf>, %97, %cst_46 [1] : vector<16x16xf32> to vector<16xf32>
    %99 = vector.shape_cast %98 : vector<16xf32> to vector<16x1xf32>
    %100 = vector.broadcast %99 : vector<16x1xf32> to vector<16x16xf32>
    %101 = arith.subf %97, %100 : vector<16x16xf32>
    %102 = math.exp %101 : vector<16x16xf32>
    %cst_47 = arith.constant dense<0.000000e+00> : vector<16xf32>
    %103 = vector.multi_reduction <add>, %102, %cst_47 [1] : vector<16x16xf32> to vector<16xf32>
    %104 = vector.shape_cast %103 : vector<16xf32> to vector<16x1xf32>
    %105 = arith.truncf %102 : vector<16x16xf32> to vector<16x16xbf16>
    %c2_48 = arith.constant 2 : index
    %c0_49 = arith.constant 0 : index
    %c0_50 = arith.constant 0 : index
    %106 = vector.load %arg17[%c2_48, %c0_49, %c0_50] : memref<4x16x32xbf16, #tpu.memory_space<vmem>>, vector<1x16x32xbf16>
    %107 = vector.shape_cast %106 : vector<1x16x32xbf16> to vector<16x32xbf16>
    %cst_51 = arith.constant dense<0.000000e+00> : vector<16x32xf32>
    %108 = tpu.matmul %105, %107, %cst_51 {dimension_numbers = #tpu.dot_dimension_numbers<[1], [0], [0], [1], [0, 0, 1, 1], [], []>} : vector<16x16xbf16>, vector<16x32xbf16>, vector<16x32xf32> -> vector<16x32xf32>
    %109 = tpu.reciprocal %104 {approx = true} : vector<16x1xf32> -> vector<16x1xf32>
    %110 = vector.broadcast %109 : vector<16x1xf32> to vector<16x32xf32>
    %111 = arith.mulf %108, %110 : vector<16x32xf32>
    %112 = arith.truncf %111 : vector<16x32xf32> to vector<16x32xbf16>
    %c2_52 = arith.constant 2 : index
    %c0_53 = arith.constant 0 : index
    %c0_54 = arith.constant 0 : index
    %113 = vector.load %arg7[%c2_52, %c0_53, %c0_54] : memref<4x32x128xbf16, #tpu.memory_space<vmem>>, vector<1x32x128xbf16>
    %114 = vector.shape_cast %113 : vector<1x32x128xbf16> to vector<32x128xbf16>
    %cst_55 = arith.constant dense<0.000000e+00> : vector<16x128xf32>
    %115 = tpu.matmul %112, %114, %cst_55 {dimension_numbers = #tpu.dot_dimension_numbers<[1], [0], [0], [1], [0, 0, 1, 1], [], []>} : vector<16x32xbf16>, vector<32x128xbf16>, vector<16x128xf32> -> vector<16x128xf32>
    %116 = arith.addf %92, %115 : vector<16x128xf32>
    %117 = vector.extract_strided_slice %45 {offsets = [0, 96], sizes = [16, 32], strides = [1, 1]} : vector<16x128xf32> to vector<16x32xf32>
    %118 = arith.truncf %117 : vector<16x32xf32> to vector<16x32xbf16>
    %c3 = arith.constant 3 : index
    %c0_56 = arith.constant 0 : index
    %c0_57 = arith.constant 0 : index
    %119 = vector.load %arg16[%c3, %c0_56, %c0_57] : memref<4x16x32xbf16, #tpu.memory_space<vmem>>, vector<1x16x32xbf16>
    %120 = vector.shape_cast %119 : vector<1x16x32xbf16> to vector<16x32xbf16>
    %cst_58 = arith.constant dense<0.000000e+00> : vector<16x16xf32>
    %121 = tpu.matmul %118, %120, %cst_58 {dimension_numbers = #tpu.dot_dimension_numbers<[1], [1], [0], [0], [0, 0, 1, 0], [], []>} : vector<16x32xbf16>, vector<16x32xbf16>, vector<16x16xf32> -> vector<16x16xf32>
    %cst_59 = arith.constant dense<0xFF800000> : vector<16xf32>
    %122 = vector.multi_reduction <maximumf>, %121, %cst_59 [1] : vector<16x16xf32> to vector<16xf32>
    %123 = vector.shape_cast %122 : vector<16xf32> to vector<16x1xf32>
    %124 = vector.broadcast %123 : vector<16x1xf32> to vector<16x16xf32>
    %125 = arith.subf %121, %124 : vector<16x16xf32>
    %126 = math.exp %125 : vector<16x16xf32>
    %cst_60 = arith.constant dense<0.000000e+00> : vector<16xf32>
    %127 = vector.multi_reduction <add>, %126, %cst_60 [1] : vector<16x16xf32> to vector<16xf32>
    %128 = vector.shape_cast %127 : vector<16xf32> to vector<16x1xf32>
    %129 = arith.truncf %126 : vector<16x16xf32> to vector<16x16xbf16>
    %c3_61 = arith.constant 3 : index
    %c0_62 = arith.constant 0 : index
    %c0_63 = arith.constant 0 : index
    %130 = vector.load %arg17[%c3_61, %c0_62, %c0_63] : memref<4x16x32xbf16, #tpu.memory_space<vmem>>, vector<1x16x32xbf16>
    %131 = vector.shape_cast %130 : vector<1x16x32xbf16> to vector<16x32xbf16>
    %cst_64 = arith.constant dense<0.000000e+00> : vector<16x32xf32>
    %132 = tpu.matmul %129, %131, %cst_64 {dimension_numbers = #tpu.dot_dimension_numbers<[1], [0], [0], [1], [0, 0, 1, 1], [], []>} : vector<16x16xbf16>, vector<16x32xbf16>, vector<16x32xf32> -> vector<16x32xf32>
    %133 = tpu.reciprocal %128 {approx = true} : vector<16x1xf32> -> vector<16x1xf32>
    %134 = vector.broadcast %133 : vector<16x1xf32> to vector<16x32xf32>
    %135 = arith.mulf %132, %134 : vector<16x32xf32>
    %136 = arith.truncf %135 : vector<16x32xf32> to vector<16x32xbf16>
    %c3_65 = arith.constant 3 : index
    %c0_66 = arith.constant 0 : index
    %c0_67 = arith.constant 0 : index
    %137 = vector.load %arg7[%c3_65, %c0_66, %c0_67] : memref<4x32x128xbf16, #tpu.memory_space<vmem>>, vector<1x32x128xbf16>
    %138 = vector.shape_cast %137 : vector<1x32x128xbf16> to vector<32x128xbf16>
    %cst_68 = arith.constant dense<0.000000e+00> : vector<16x128xf32>
    %139 = tpu.matmul %136, %138, %cst_68 {dimension_numbers = #tpu.dot_dimension_numbers<[1], [0], [0], [1], [0, 0, 1, 1], [], []>} : vector<16x32xbf16>, vector<32x128xbf16>, vector<16x128xf32> -> vector<16x128xf32>
    %140 = arith.addf %116, %139 : vector<16x128xf32>
    %c0_69 = arith.constant 0 : index
    %c0_70 = arith.constant 0 : index
    %141 = vector.load %arg8[%c0_69, %c0_70] : memref<1x128xf32, #tpu.memory_space<vmem>>, vector<1x128xf32>
    %142 = vector.shape_cast %141 : vector<1x128xf32> to vector<128xf32>
    %143 = vector.shape_cast %142 : vector<128xf32> to vector<1x128xf32>
    %144 = vector.broadcast %143 : vector<1x128xf32> to vector<16x128xf32>
    %145 = arith.addf %140, %144 : vector<16x128xf32>
    %146 = arith.addf %11, %145 : vector<16x128xf32>
    %c0_71 = arith.constant 0 : index
    %c0_72 = arith.constant 0 : index
    %147 = vector.load %arg9[%c0_71, %c0_72] : memref<1x128xf32, #tpu.memory_space<vmem>>, vector<1x128xf32>
    %148 = vector.shape_cast %147 : vector<1x128xf32> to vector<128xf32>
    %c0_73 = arith.constant 0 : index
    %c0_74 = arith.constant 0 : index
    %149 = vector.load %arg10[%c0_73, %c0_74] : memref<1x128xf32, #tpu.memory_space<vmem>>, vector<1x128xf32>
    %150 = vector.shape_cast %149 : vector<1x128xf32> to vector<128xf32>
    %cst_75 = arith.constant dense<0.000000e+00> : vector<16xf32>
    %151 = vector.multi_reduction <add>, %146, %cst_75 [1] : vector<16x128xf32> to vector<16xf32>
    %152 = vector.shape_cast %151 : vector<16xf32> to vector<16x1xf32>
    %cst_76 = arith.constant 1.280000e+02 : f32
    %153 = vector.broadcast %cst_76 : f32 to vector<16x1xf32>
    %154 = arith.divf %152, %153 : vector<16x1xf32>
    %155 = vector.broadcast %154 : vector<16x1xf32> to vector<16x128xf32>
    %156 = arith.subf %146, %155 : vector<16x128xf32>
    %157 = arith.mulf %156, %156 : vector<16x128xf32>
    %cst_77 = arith.constant dense<0.000000e+00> : vector<16xf32>
    %158 = vector.multi_reduction <add>, %157, %cst_77 [1] : vector<16x128xf32> to vector<16xf32>
    %159 = vector.shape_cast %158 : vector<16xf32> to vector<16x1xf32>
    %cst_78 = arith.constant 1.280000e+02 : f32
    %160 = vector.broadcast %cst_78 : f32 to vector<16x1xf32>
    %161 = arith.divf %159, %160 : vector<16x1xf32>
    %162 = vector.broadcast %154 : vector<16x1xf32> to vector<16x128xf32>
    %163 = arith.subf %146, %162 : vector<16x128xf32>
    %cst_79 = arith.constant 9.99999997E-7 : f32
    %164 = vector.broadcast %cst_79 : f32 to vector<16x1xf32>
    %165 = arith.addf %161, %164 : vector<16x1xf32>
    %166 = math.rsqrt %165 : vector<16x1xf32>
    %167 = vector.broadcast %166 : vector<16x1xf32> to vector<16x128xf32>
    %168 = arith.mulf %163, %167 : vector<16x128xf32>
    %169 = vector.shape_cast %148 : vector<128xf32> to vector<1x128xf32>
    %170 = vector.broadcast %169 : vector<1x128xf32> to vector<16x128xf32>
    %171 = arith.mulf %168, %170 : vector<16x128xf32>
    %172 = vector.shape_cast %150 : vector<128xf32> to vector<1x128xf32>
    %173 = vector.broadcast %172 : vector<1x128xf32> to vector<16x128xf32>
    %174 = arith.addf %171, %173 : vector<16x128xf32>
    %175 = arith.truncf %174 : vector<16x128xf32> to vector<16x128xbf16>
    %c0_80 = arith.constant 0 : index
    %c0_81 = arith.constant 0 : index
    %176 = vector.load %arg11[%c0_80, %c0_81] : memref<128x512xbf16, #tpu.memory_space<vmem>>, vector<128x512xbf16>
    %cst_82 = arith.constant dense<0.000000e+00> : vector<16x512xf32>
    %177 = tpu.matmul %175, %176, %cst_82 {dimension_numbers = #tpu.dot_dimension_numbers<[1], [0], [0], [1], [0, 0, 1, 1], [], []>} : vector<16x128xbf16>, vector<128x512xbf16>, vector<16x512xf32> -> vector<16x512xf32>
    %c0_83 = arith.constant 0 : index
    %c0_84 = arith.constant 0 : index
    %178 = vector.load %arg12[%c0_83, %c0_84] : memref<1x512xf32, #tpu.memory_space<vmem>>, vector<1x512xf32>
    %179 = vector.shape_cast %178 : vector<1x512xf32> to vector<512xf32>
    %180 = vector.shape_cast %179 : vector<512xf32> to vector<1x512xf32>
    %181 = vector.broadcast %180 : vector<1x512xf32> to vector<16x512xf32>
    %182 = arith.addf %177, %181 : vector<16x512xf32>
    %cst_85 = arith.constant 5.000000e-01 : f32
    %183 = vector.broadcast %cst_85 : f32 to vector<16x512xf32>
    %184 = arith.mulf %183, %182 : vector<16x512xf32>
    %cst_86 = arith.constant 0.707106769 : f32
    %185 = vector.broadcast %cst_86 : f32 to vector<16x512xf32>
    %186 = arith.mulf %182, %185 : vector<16x512xf32>
    %187 = math.erf %186 : vector<16x512xf32>
    %cst_87 = arith.constant 1.000000e+00 : f32
    %188 = vector.broadcast %cst_87 : f32 to vector<16x512xf32>
    %189 = arith.addf %188, %187 : vector<16x512xf32>
    %190 = arith.mulf %184, %189 : vector<16x512xf32>
    %191 = arith.truncf %190 : vector<16x512xf32> to vector<16x512xbf16>
    %c0_88 = arith.constant 0 : index
    %c0_89 = arith.constant 0 : index
    %192 = vector.load %arg13[%c0_88, %c0_89] : memref<512x128xbf16, #tpu.memory_space<vmem>>, vector<512x128xbf16>
    %cst_90 = arith.constant dense<0.000000e+00> : vector<16x128xf32>
    %193 = tpu.matmul %191, %192, %cst_90 {dimension_numbers = #tpu.dot_dimension_numbers<[1], [0], [0], [1], [0, 0, 1, 1], [], []>} : vector<16x512xbf16>, vector<512x128xbf16>, vector<16x128xf32> -> vector<16x128xf32>
    %c0_91 = arith.constant 0 : index
    %c0_92 = arith.constant 0 : index
    %194 = vector.load %arg14[%c0_91, %c0_92] : memref<1x128xf32, #tpu.memory_space<vmem>>, vector<1x128xf32>
    %195 = vector.shape_cast %194 : vector<1x128xf32> to vector<128xf32>
    %196 = vector.shape_cast %195 : vector<128xf32> to vector<1x128xf32>
    %197 = vector.broadcast %196 : vector<1x128xf32> to vector<16x128xf32>
    %198 = arith.addf %193, %197 : vector<16x128xf32>
    %199 = arith.addf %146, %198 : vector<16x128xf32>
    %c0_93 = arith.constant 0 : index
    %c0_94 = arith.constant 0 : index
    %c0_95 = arith.constant 0 : index
    %200 = vector.load %arg15[%c0_93, %c0_94, %c0_95] : memref<1x16x128xf32, #tpu.memory_space<vmem>>, vector<1x16x128xf32>
    %201 = vector.shape_cast %200 : vector<1x16x128xf32> to vector<16x128xf32>
    %202 = vector.shape_cast %199 : vector<16x128xf32> to vector<1x16x128xf32>
    tpu.vector_store %arg15[%c0_93, %c0_94, %c0_95], %202 {strides = array<i32>} : memref<1x16x128xf32, #tpu.memory_space<vmem>>, vector<1x16x128xf32>,
    return
  }
  func.func @transform_0(%arg0: i32, %arg1: i32) -> (i32, i32, i32) {
    %c0_i32 = arith.constant 0 : i32
    %c0_i32_0 = arith.constant 0 : i32
    %c0_i32_1 = arith.constant 0 : i32
    return %arg0, %c0_i32, %c0_i32_0 : i32, i32, i32
  }
  func.func @transform_1(%arg0: i32, %arg1: i32) -> (i32, i32) {
    %c0_i32 = arith.constant 0 : i32
    %c0_i32_0 = arith.constant 0 : i32
    %c0_i32_1 = arith.constant 0 : i32
    return %c0_i32, %c0_i32_0 : i32, i32
  }
  func.func @transform_2(%arg0: i32, %arg1: i32) -> (i32, i32) {
    %c0_i32 = arith.constant 0 : i32
    %c0_i32_0 = arith.constant 0 : i32
    %c0_i32_1 = arith.constant 0 : i32
    return %c0_i32, %c0_i32_0 : i32, i32
  }
  func.func @transform_3(%arg0: i32, %arg1: i32) -> (i32, i32) {
    %c0_i32 = arith.constant 0 : i32
    %c0_i32_0 = arith.constant 0 : i32
    %c0_i32_1 = arith.constant 0 : i32
    return %c0_i32, %c0_i32_0 : i32, i32
  }
  func.func @transform_4(%arg0: i32, %arg1: i32) -> (i32, i32) {
    %c0_i32 = arith.constant 0 : i32
    %c0_i32_0 = arith.constant 0 : i32
    %c0_i32_1 = arith.constant 0 : i32
    return %c0_i32, %c0_i32_0 : i32, i32
  }
  func.func @transform_5(%arg0: i32, %arg1: i32) -> (i32, i32, i32) {
    %c0_i32 = arith.constant 0 : i32
    %c0_i32_0 = arith.constant 0 : i32
    %c0_i32_1 = arith.constant 0 : i32
    %c0_i32_2 = arith.constant 0 : i32
    return %c0_i32, %c0_i32_0, %c0_i32_1 : i32, i32, i32
  }
  func.func @transform_6(%arg0: i32, %arg1: i32) -> (i32, i32) {
    %c0_i32 = arith.constant 0 : i32
    %c0_i32_0 = arith.constant 0 : i32
    %c0_i32_1 = arith.constant 0 : i32
    return %c0_i32, %c0_i32_0 : i32, i32
  }
  func.func @transform_7(%arg0: i32, %arg1: i32) -> (i32, i32) {
    %c0_i32 = arith.constant 0 : i32
    %c0_i32_0 = arith.constant 0 : i32
    %c0_i32_1 = arith.constant 0 : i32
    return %c0_i32, %c0_i32_0 : i32, i32
  }
  func.func @transform_8(%arg0: i32, %arg1: i32) -> (i32, i32) {
    %c0_i32 = arith.constant 0 : i32
    %c0_i32_0 = arith.constant 0 : i32
    %c0_i32_1 = arith.constant 0 : i32
    return %c0_i32, %c0_i32_0 : i32, i32
  }
  func.func @transform_9(%arg0: i32, %arg1: i32) -> (i32, i32) {
    %c0_i32 = arith.constant 0 : i32
    %c0_i32_0 = arith.constant 0 : i32
    %c0_i32_1 = arith.constant 0 : i32
    return %c0_i32, %c0_i32_0 : i32, i32
  }
  func.func @transform_10(%arg0: i32, %arg1: i32) -> (i32, i32) {
    %c0_i32 = arith.constant 0 : i32
    %c0_i32_0 = arith.constant 0 : i32
    %c0_i32_1 = arith.constant 0 : i32
    return %c0_i32, %c0_i32_0 : i32, i32
  }
  func.func @transform_11(%arg0: i32, %arg1: i32) -> (i32, i32) {
    %c0_i32 = arith.constant 0 : i32
    %c0_i32_0 = arith.constant 0 : i32
    %c0_i32_1 = arith.constant 0 : i32
    return %c0_i32, %c0_i32_0 : i32, i32
  }
  func.func @transform_12(%arg0: i32, %arg1: i32) -> (i32, i32) {
    %c0_i32 = arith.constant 0 : i32
    %c0_i32_0 = arith.constant 0 : i32
    %c0_i32_1 = arith.constant 0 : i32
    return %c0_i32, %c0_i32_0 : i32, i32
  }
  func.func @transform_13(%arg0: i32, %arg1: i32) -> (i32, i32, i32) {
    %c0_i32 = arith.constant 0 : i32
    %c0_i32_0 = arith.constant 0 : i32
    return %arg0, %arg1, %c0_i32 : i32, i32, i32
  }
}

</mosaic_0001>

<bundles_post_ra>
// kernel: tpu_custom_call.1
= control target key start
LH: loop header
LB: loop body
LE: loop exit
PB: predicated region body
PF: predicated region fallthrough
CT: control target
= control target key end

     0   :  { %s4191_s0 = inlined_call_operand.hbm [shape: f32[2,16,128], index: 0, kind: input, shape index: {}]   ;;  %s4192_s1 = inlined_call_operand.hbm [shape: f32[1,128], index: 1, kind: input, shape index: {}]   ;;  %s4193_s2 = inlined_call_operand.hbm [shape: f32[1,128], index: 2, kind: input, shape index: {}]   ;;  %s4194_s3 = inlined_call_operand.hbm [shape: bf16[128,384], index: 3, kind: input, shape index: {}]   ;;  %s4195_s4 = inlined_call_operand.vmem [shape: f32[1,384], index: 4, kind: input, shape index: {}]   ;;  %s4196_s5 = inlined_call_operand.hbm [shape: bf16[4,32,128], index: 5, kind: input, shape index: {}]   ;;  %s4197_s6 = inlined_call_operand.vmem [shape: f32[1,128], index: 6, kind: input, shape index: {}]   ;;  %s4198_s7 = inlined_call_operand.vmem [shape: f32[1,128], index: 7, kind: input, shape index: {}]   ;;  %s4199_s8 = inlined_call_operand.vmem [shape: f32[1,128], index: 8, kind: input, shape index: {}]   ;;  %s4200_s9 = inlined_call_operand.hbm [shape: bf16[128,512], index: 9, kind: input, shape index: {}]   ;;  %s4201_s10 = inlined_call_operand.vmem [shape: f32[1,512], index: 10, kind: input, shape index: {}]   ;;  %s4202_s11 = inlined_call_operand.hbm [shape: bf16[512,128], index: 11, kind: input, shape index: {}]   ;;  %s4203_s12 = inlined_call_operand.vmem [shape: f32[1,128], index: 12, kind: input, shape index: {}]   ;;  %s4204_s13 = inlined_call_operand.hbm [shape: f32[2,16,128], index: 13, kind: output, shape index: {}]  }
   0x1   :  { %4211 = sst [smem:[#allocation24_spill]] %s4192_s1 }
   0x2   :  { %4212 = sst [smem:[#allocation25_spill]] %s4193_s2 }
   0x3   :  { %4213 = sst [smem:[#allocation26_spill]] %s4194_s3 }
   0x4   :  { %4214 = sst [smem:[#allocation27_spill]] %s4196_s5 }
   0x5   :  { %4215 = sst [smem:[#allocation28_spill]] %s4200_s9 }
   0x6   :  { %4216 = sst [smem:[#allocation29_spill]] %s4202_s11 }
   0x7   :  { %4217 = sst [smem:[#allocation30_spill]] %s4203_s12 }
   0x8   :  { %4218 = sst [smem:[#allocation31_spill]] %s4204_s13 }
   0x9   :  { %18 = vsyncpa [#allocation5], 0 }
   0xa   :  { %20 = vsyncpa [#allocation5 + $0x1], 0 }
   0xb   :  { %21 = vsyncpa [#allocation8], 0 }
   0xc   :  { %22 = vsyncpa [#allocation11], 0 }
   0xd   :  { %23 = vsyncpa [#allocation14], 0 }
   0xe   :  { %24 = vsyncpa [#allocation6], 0 }
   0xf   :  { %26 = vsyncpa [#allocation6 + $0x1], 0  ;;  %s3719_s25 = smov 0   ;;  %s3721_s26 = smov 0  }
  0x10   :  { %s3723_s27 = smov 0   ;;  %s3725_s28 = smov 0  }
  0x11   :  { %s3727_s29 = smov 0   ;;  %s3729_s30 = smov 0  }
  0x12 LB: > { %4219 = sst [smem:[#allocation22_spill]] %s3615_s28  ;;  %s4205_s14 = sadd.s32 4294967295, %s3623_s30   ;;  %s3623_s30 = sphi %s3729_s30, %s32_s30   ;;  %s3619_s29 = sphi %s3727_s29, %s4249_s29   ;;  %s3615_s28 = sphi %s3725_s28, %s4248_s28   ;;  %s3611_s27 = sphi %s3723_s27, %s4247_s27   ;;  %s3607_s26 = sphi %s3721_s26, %s4246_s26   ;;  %s3603_s25 = sphi %s3719_s25, %s4245_s25  }
  0x13   : > { %p2679_p0 = scmp.ge.s32.totalorder %s3623_s30, 1  ;;  %p3753_p1 = scmp.eq.s32.totalorder %s4205_s14, 0 }
  0x14   : > { %p355_p2 = scmp.lt.s32.totalorder %s3623_s30, 3  ;;  %s3625_s17 = smov [#allocation7]  }
  0x15   : > { %s4220_s15 = scalar_select %p3753_p1, 1, 0 }
  0x16   : > { %p3758_p3 = pnand %p2679_p0, %p355_p2  ;;  %s368_s18 = sshll.u32 %s3625_s17, 4  ;;  %s369_s18 = int_to_ptr.vmem [resolvable:$true] %s368_s18 }
  0x17   : > { %s3626_s19 = smov [#allocation10]   ;;  %s3627_s22 = smov [#allocation13]  }
  0x18   : > { %s4221_s16 = scalar_select %p3758_p3, 1, 0 }
  0x19   : > { %p3046_p5 = pneg %p3758_p3  ;;  %s389_s20 = sshll.u32 %s3626_s19, 4  ;;  %s3771_s20 = int_to_ptr.vmem [resolvable:$true] %s389_s20 }
  0x1a   : > { %s427_s23 = sshll.u32 %s3627_s22, 4  ;;  %s3358_s17 = scalar_lea.vmem %s369_s18, 16  ;;  %s428_s23 = int_to_ptr.vmem [resolvable:$true] %s427_s23 }
  0x1b   : > { %p3767_p6 = pnand %p3046_p5, %p3753_p1  ;;  %p3359_p8 = scmp.ne.s32.totalorder %s369_s18, %s3358_s17 }
  0x1c   : > { %s3365_s19 = scalar_lea.vmem %s369_s18, 32  ;;  %p3366_p11 = scmp.lt.s32.totalorder %s369_s18, %s369_s18 }
  0x1d   : > { %p3775_p7 = pneg %p3767_p6  ;;  %p3367_p12 = scmp.lt.s32.totalorder %s3365_s19, %s3358_s17 }
  0x1f   : > { %p3361_p9 = pnand %p3359_p8, %p3775_p7  ;;  %p3368_p13 = por %p3367_p12, %p3366_p11 }
  0x21   : > { %p3362_p10 = pneg %p3361_p9 }
  0x23   : > { %p3369_p0 = pnand %p3368_p13, %p3362_p10 }
  0x25   : > { %3372 = shalt.err (!%p3369_p0)
}
  0x26   : > { %s4224_s1 = sld [smem:[#allocation24_spill]]  ;;  %s3384_s13 = scalar_lea.vmem %s3771_s20, 3072 }
  0x27   : > { %p3385_p2 = scmp.ne.s32.totalorder %s3771_s20, %s3384_s13  ;;  %p3392_p9 = scmp.lt.s32.totalorder %s3771_s20, %s3771_s20 }
  0x28   : > { %p3393_p11 = scmp.lt.s32.totalorder %s3384_s13, %s3384_s13 }
  0x29   : > { %p3387_p5 = pnand %p3385_p2, %p3775_p7 }
  0x2a   : > { %p3394_p10 = por %p3393_p11, %p3392_p9 }
  0x2b   : > { %p3388_p8 = pneg %p3387_p5 }
  0x2c   : > { %3049 = dma.hbm_to_vmem [thread:$0]  (!%p3767_p6), %s4224_s1, 16, %s369_s18, [#allocation8]  }
  0x2d   : > { %p3395_p12 = pnand %p3394_p10, %p3388_p8 }
  0x2f   : > { %3398 = shalt.err (!%p3395_p12)
}
  0x30   : > { %s3628_s17 = smov 192   ;;  %s3629_s14 = smov 12  }
  0x31   : > { %s4225_s3 = sld [smem:[#allocation26_spill]]  ;;  %s3410_s18 = scalar_lea.vmem %s428_s23, 4096 }
  0x32   : > { %p3411_p13 = scmp.ne.s32.totalorder %s428_s23, %s3410_s18  ;;  %p3418_p5 = scmp.lt.s32.totalorder %s428_s23, %s428_s23 }
  0x33   : > { %p3419_p9 = scmp.lt.s32.totalorder %s3410_s18, %s3410_s18 }
  0x34   : > { %p3413_p0 = pnand %p3411_p13, %p3775_p7 }
  0x35   : > { %p3420_p8 = por %p3419_p9, %p3418_p5 }
  0x36   : > { %p3414_p2 = pneg %p3413_p0 }
  0x37   : > { %3055 = dma.hbm_to_vmem [thread:$0]  (!%p3767_p6), %s4225_s3, 3072, %s3771_s20, [#allocation11], %s3628_s17, %s3628_s17, %s3629_s14  }
  0x38   : > { %p3421_p11 = pnand %p3420_p8, %p3414_p2 }
  0x3a   : > { %3424 = shalt.err (!%p3421_p11)
}
  0x3b   : > { %s3630_s13 = smov 256   ;;  %s3631_s1 = smov 16  }
  0x3c   : > { %s4226_s9 = sld [smem:[#allocation28_spill]]  ;;  %s3632_s20 = smov [#allocation9]  }
  0x3d   : > { %s379_s17 = sshll.u32 %s3632_s20, 4  ;;  %s3633_s14 = smov [#allocation12]   ;;  %s380_s17 = int_to_ptr.vmem [resolvable:$true] %s379_s17 }
  0x3e   : > { %s405_s19 = sshll.u32 %s3633_s14, 4  ;;  %s3436_s22 = scalar_lea.vmem %s380_s17, 16  ;;  %s406_s19 = int_to_ptr.vmem [resolvable:$true] %s405_s19 }
  0x3f   : > { %p3437_p10 = scmp.ne.s32.totalorder %s380_s17, %s3436_s22  ;;  %s3443_s18 = scalar_lea.vmem %s380_s17, 32 }
  0x40   : > { %p3444_p0 = scmp.lt.s32.totalorder %s380_s17, %s380_s17  ;;  %p3445_p2 = scmp.lt.s32.totalorder %s3443_s18, %s3436_s22 }
  0x41   : > { %p3439_p12 = pnand %p3437_p10, %p3775_p7 }
  0x42   : > { %3061 = dma.hbm_to_vmem [thread:$0]  (!%p3767_p6), %s4226_s9, 4096, %s428_s23, [#allocation14], %s3630_s13, %s3630_s13, %s3631_s1  }
  0x43   : > { %p3440_p13 = pneg %p3439_p12  ;;  %p3446_p5 = por %p3445_p2, %p3444_p0 }
  0x45   : > { %p3447_p9 = pnand %p3446_p5, %p3440_p13 }
  0x47   : > { %3450 = shalt.err (!%p3447_p9)
}
  0x48   : > { %s4227_s2 = sld [smem:[#allocation25_spill]]  ;;  %s3462_s28 = scalar_lea.vmem %s406_s19, 1024 }
  0x49   : > { %p3463_p8 = scmp.ne.s32.totalorder %s406_s19, %s3462_s28  ;;  %p3470_p12 = scmp.lt.s32.totalorder %s406_s19, %s406_s19 }
  0x4a   : > { %p3471_p4 = scmp.lt.s32.totalorder %s3462_s28, %s3462_s28 }
  0x4b   : > { %p3465_p11 = pnand %p3463_p8, %p3775_p7 }
  0x4c   : > { %p3472_p3 = por %p3471_p4, %p3470_p12 }
  0x4d   : > { %p3466_p10 = pneg %p3465_p11 }
  0x4e   : > { %3052 = dma.hbm_to_vmem [thread:$0]  (!%p3767_p6), %s4227_s2, 16, %s380_s17, [#allocation8]  }
  0x4f   : > { %p3473_p1 = pnand %p3472_p3, %p3466_p10 }
  0x51   : > { %3476 = shalt.err (!%p3473_p1)
}
  0x52   : > { %s3634_s23 = smov 64   ;;  %s3635_s13 = smov 4  }
  0x53   : > { %s4228_s5 = sld [smem:[#allocation27_spill]]  ;;  %s3636_s17 = smov [#allocation15]  }
  0x54   : > { %s443_s22 = sshll.u32 %s3636_s17, 4  ;;  %s444_s22 = int_to_ptr.vmem [resolvable:$true] %s443_s22 }
  0x55   : > { %s3488_s18 = scalar_lea.vmem %s444_s22, 4096  ;;  %p3496_p4 = scmp.lt.s32.totalorder %s444_s22, %s444_s22 }
  0x56   : > { %p3489_p13 = scmp.ne.s32.totalorder %s444_s22, %s3488_s18  ;;  %p3497_p3 = scmp.lt.s32.totalorder %s3488_s18, %s3488_s18 }
  0x58   : > { %p3491_p0 = pnand %p3489_p13, %p3775_p7  ;;  %p3498_p1 = por %p3497_p3, %p3496_p4 }
  0x59   : > { %3058 = dma.hbm_to_vmem [thread:$0]  (!%p3767_p6), %s4228_s5, 1024, %s406_s19, [#allocation11], %s3634_s23, %s3634_s23, %s3635_s13  }
  0x5a   : > { %p3492_p2 = pneg %p3491_p0 }
  0x5c   : > { %p3499_p5 = pnand %p3498_p1, %p3492_p2 }
  0x5e   : > { %3502 = shalt.err (!%p3499_p5)
}
  0x5f   : > { %s4229_s11 = sld [smem:[#allocation29_spill]]  ;;  %s2678_s24 = sadd.s32 4294967294, %s3623_s30  }
  0x60   : > { %s44_s19 = sadd.s32 1, %s3619_s29  ;;  %s51_s21 = sadd.s32 1, %s3611_s27 }
  0x61   : > { %p46_p7 = scmp.ge.s32.totalorder %s44_s19, 2  ;;  %p58_p9 = scmp.ne.s32.totalorder %s3611_s27, %s3607_s26 }
  0x62   : > { %p59_p8 = scmp.eq.s32.totalorder %s3623_s30, 0  ;;  %p64_p10 = scmp.ne.s32.totalorder %s3607_s26, %s3603_s25 }
  0x63   : > { %s4251_s19 = smov (%p46_p7, %s44_s19), 0  ;;  %p4233_p13 = scmp.ne.s32.totalorder %s4220_s15, 0 }
  0x64   : > { %4230 = sst [smem:[#allocation23_spill]] %s4251_s19  ;;  %p3834_p11 = por %p59_p8, %p58_p9 }
  0x65   : > { %3064 = dma.hbm_to_vmem [thread:$0]  (!%p3767_p6), %s4229_s11, 4096, %s444_s22, [#allocation14], %s3634_s23, %s3634_s23, %s3635_s13  }
  0x66   : > { %s48_s23 = ssub.s32 %s3619_s29, %s4251_s19  ;;  %s4232_s13 = sadd.s32 4294967295, %s3623_s30  }
  0x67   : > { %p342_p6 = scmp.eq.s32.totalorder %s4232_s13, 1  ;;  %p49_p12 = scmp.eq.s32.totalorder %s48_s23, 0 }
  0x68   : > { %p3846_p0 = por %p4233_p13, %p64_p10  ;;  %p348_p4 = scmp.eq.s32.totalorder %s2678_s24, 1 }
  0x69   : > { %p3850_p2 = por %p342_p6, %p58_p9  ;;  %p3079_p1 = scmp.lt.s32.totalorder %s3623_s30, 2 }
  0x6a   : > { %s3855_s17 = scalar_select %p49_p12, %s3611_s27, %s51_s21  }
  0x6b   : > { %p3857_p3 = por %p348_p4, %p64_p10  ;;  %s460_s18 = sand.u32 1, %s3611_s27  }
  0x6c   : > { %s2829_s12 = sshll.u32 %s3619_s29, 8  ;;  %s2687_s1 = sshll.u32 %s460_s18, 4 }
  0x6d   : > { %s470_s2 = scalar_lea.hbm %s4191_s0, %s2829_s12  ;;  %s464_s3 = scalar_lea.vmem [#allocation4], %s2687_s1 }
  0x6e   : > { %s471_s5 = sshll.u32 %s464_s3, 4  ;;  %p3869_p5 = pnand %p3079_p1, %p3834_p11  ;;  %s472_s5 = int_to_ptr.vmem [resolvable:$true] %s471_s5 }
  0x6f   : > { %s461_s24 = scalar_lea.sflag [#allocation5], %s460_s18  ;;  %s3516_s21 = scalar_lea.vmem %s472_s5, 256 }
  0x70   : > { %p3505_p7 = pneg %p3869_p5  ;;  %p3517_p9 = scmp.ne.s32.totalorder %s472_s5, %s3516_s21 }
  0x71   : > { %s3637_s11 = smov [#allocation4]  }
  0x72   : > { %p3519_p8 = pnand %p3517_p9, %p3505_p7  ;;  %s3521_s19 = sshll.u32 %s3637_s11, 4  ;;  %s3522_s19 = int_to_ptr.vmem [resolvable:$false] %s3521_s19 }
  0x73   : > { %s3523_s12 = scalar_lea.vmem %s3522_s19, 512  ;;  %p3524_p6 = scmp.lt.s32.totalorder %s472_s5, %s3522_s19 }
  0x74   : > { %p3520_p10 = pneg %p3519_p8  ;;  %p3525_p12 = scmp.lt.s32.totalorder %s3523_s12, %s3516_s21 }
  0x76   : > { %p3526_p13 = por %p3525_p12, %p3524_p6 }
  0x78   : > { %p3527_p11 = pnand %p3526_p13, %p3520_p10 }
  0x7a   : > { %3530 = shalt.err (!%p3527_p11)
}
  0x7b   : > { %s3638_s3 = smov 128   ;;  %s3639_s28 = smov 8  }
  0x7c   : > { %3068 = dma.hbm_to_vmem [thread:$0]  (!%p3869_p5), %s470_s2, 256, %s472_s5, %s461_s24, %s3638_s3, %s3638_s3, %s3639_s28  }
  0x7d   : > { %p4238_p4 = scmp.ne.s32.totalorder %s4221_s16, 0 }
  0x7e   : > { %s3880_s18 = sand.u32 (!%p4238_p4), 1, %s3607_s26  }
  0x7f   : > { %483 = sbr.rel (%p4238_p4) target bundleno = 3227 (0xc9b), region = 72  ;;  %s2691_s11 = sshll.u32 (!%p4238_p4), %s3880_s18, 4 }
  0x80   : > { %s486_s19 = scalar_lea.sflag (!%p4238_p4), [#allocation5], %s3880_s18  ;;  %s3886_s1 = scalar_lea.vmem (!%p4238_p4), [#allocation4], %s2691_s11 }
  0x84   : > { %3582 = dma.done.wait (%p3846_p0), %s486_s19, 256  }
  0x85   : > { %3584 = vsyncadd (%p3846_p0), %s486_s19, 4294967040  ;;  %p4239_p1 = scmp.ne.s32.totalorder %s4220_s15, 0 }
  0x87   : > { %3586 = dma.done.wait (%p4239_p1), [#allocation8], 32  }
  0x88   : > { %3588 = vsyncadd (%p4239_p1), [#allocation8], 4294967264 }
  0x89   : > { %3590 = dma.done.wait (%p4239_p1), [#allocation11], 4096  }
  0x8a   : > { %3592 = vsyncadd (%p4239_p1), [#allocation11], 4294963200 }
  0x8b   : > { %3594 = dma.done.wait (%p4239_p1), [#allocation14], 8192  }
  0x8c   : > { %3596 = vsyncadd (%p4239_p1), [#allocation14], 4294959104  ;;  %v564_v0 = vld [vmem:[%s3886_s1] sm:$0xff]  ;;  %v565_v1 = vld [vmem:[%s3886_s1 + $0x8] sm:$0xff]  ;;  %v3640_v23 = vmov 0.0   ;;  %v3641_v37 = vmov 0  }
  0x8d   : > { %566 = vadd.xlane.f32.xlu0 %v564_v0  ;;  %836 = vadd.xlane.f32.xlu1 %v564_v0  ;;  %v3157_v2 = vld [vmem:[#allocation10 + $0xb0] ss:$12 sps:$4 sm:$0xff]   ;;  %v3159_v3 = vld [vmem:[#allocation10 + $0xac] ss:$12 sps:$4 sm:$0xff]   ;;  %v3162_v21 = vld [vmem:[#allocation10 + $0x94] ss:$12 sps:$4 sm:$0xff]  }
  0x8e   : > { %714 = vmatprep.subr.bf16.mxu0 %v3157_v2  ;;  %v3160_v20 = vld [vmem:[#allocation10 + $0x98] ss:$12 sps:$4 sm:$0xff]   ;;  %v3163_v22 = vld [vmem:[#allocation10 + $0xa8] ss:$12 sps:$4 sm:$0xff]   ;;  %2918 = vmatprep.subr.bf16.mxu1 %v3640_v23  ;;  %v3164_v24 = vld [vmem:[#allocation10 + $0x80] ss:$12 sps:$4 sm:$0xff]  }
  0x8f   : > { %715 = vmatpush1.bf16.msra.mxu0 %v3159_v3  ;;  %2919 = vmatpush3.bf16.msra.mxu1 %v3163_v22  ;;  %v3166_v25 = vld [vmem:[#allocation10 + $0x7c] ss:$12 sps:$4 sm:$0xff]   ;;  %v3170_v28 = vld [vmem:[#allocation10 + $0x64] ss:$12 sps:$4 sm:$0xff]   ;;  %v3174_v31 = vld [vmem:[#allocation10 + $0x4c] ss:$12 sps:$4 sm:$0xff]  }
  0x90   : > { %716 = vmatprep.subr.bf16.mxu0 %v3160_v20  ;;  %2920 = vmatprep.subr.bf16.mxu1 %v3640_v23  ;;  %v3167_v26 = vld [vmem:[#allocation10 + $0x90] ss:$12 sps:$4 sm:$0xff]   ;;  %v3168_v27 = vld [vmem:[#allocation10 + $0x68] ss:$12 sps:$4 sm:$0xff]   ;;  %v3171_v29 = vld [vmem:[#allocation10 + $0x78] ss:$12 sps:$4 sm:$0xff]  }
  0x91   : > { %568 = vadd.xlane.f32.xlu0 %v565_v1  ;;  %838 = vadd.xlane.f32.xlu1 %v565_v1  ;;  %v3172_v30 = vld [vmem:[#allocation10 + $0x50] ss:$12 sps:$4 sm:$0xff]   ;;  %v3175_v32 = vld [vmem:[#allocation10 + $0x60] ss:$12 sps:$4 sm:$0xff]   ;;  %v3176_v33 = vld [vmem:[#allocation10 + $0x38] ss:$12 sps:$4 sm:$0xff]  }
  0x92   : > { %v3178_v34 = vld [vmem:[#allocation10 + $0x34] ss:$12 sps:$4 sm:$0xff]   ;;  %746 = vmatprep.mubr.bf16.mxu0 %v3641_v37  ;;  %v3182_v38 = vld [vmem:[#allocation10 + $0x1c] ss:$12 sps:$4 sm:$0xff]   ;;  %v3186_v41 = vld [vmem:[#allocation10 + $0x4] ss:$12 sps:$4 sm:$0xff]  }
  0x93   : > { %717 = vmatpush1.bf16.msra.mxu0 %v3162_v21  ;;  %2921 = vmatpush3.bf16.msra.mxu1 %v3167_v26  ;;  %v3179_v35 = vld [vmem:[#allocation10 + $0x48] ss:$12 sps:$4 sm:$0xff]   ;;  %v3180_v36 = vld [vmem:[#allocation10 + $0x20] ss:$12 sps:$4 sm:$0xff]   ;;  %v3183_v39 = vld [vmem:[#allocation10 + $0x30] ss:$12 sps:$4 sm:$0xff]  }
  0x94   : > { %718 = vmatprep.subr.bf16.mxu0 %v3164_v24  ;;  %2922 = vmatprep.subr.bf16.mxu1 %v3640_v23  ;;  %v3184_v40 = vld [vmem:[#allocation10 + $0x8] ss:$12 sps:$4 sm:$0xff]   ;;  %v3187_v42 = vld [vmem:[#allocation10 + $0x18] ss:$12 sps:$4 sm:$0xff]   ;;  %v3188_v43 = vld [vmem:[#allocation10] ss:$12 sps:$4 sm:$0xff]  }
  0x95   : > { %vm3642_vm0 = vmmov 0   ;;  %v2835_v58 = vld [vmem:[#allocation7] ss:$0 sm:$0xff]  ;;  %v2836_v63 = vld [vmem:[#allocation9] ss:$0 sm:$0xff]  ;;  %vm765_vm1 = vcmask 257024  }
  0x96   : > { %2934 = vmatprep.mubr.msk.bf16.mxu1 %vm3642_vm0, %v3640_v23  ;;  %v2719_v26 = vld [vmem:[%s4195_s4] ss:$0 sm:$0xff]  ;;  %s3643_s16 = smov 96   ;;  %vm998_vm2 = vcmask 261120   ;;  %vm1046_vm3 = vcmask 130048   ;;  %s3644_s20 = smov 64  }
  0x97   : > { %719 = vmatpush1.bf16.msra.mxu0 %v3166_v25  ;;  %2923 = vmatpush3.bf16.msra.mxu1 %v3171_v29  ;;  %s3645_s23 = smov 32   ;;  %s4240_s9 = sld [smem:[#allocation30_spill]] }
  0x98   : > { %720 = vmatprep.subr.bf16.mxu0 %v3168_v27  ;;  %2924 = vmatprep.subr.bf16.mxu1 %v3640_v23  ;;  %s4241_s15 = sld [smem:[#allocation22_spill]]  ;;  %s3646_s28 = smov [#allocation16]  }
  0x99   : > { %s4242_s21 = sld [smem:[#allocation31_spill]]  ;;  %s3535_s19 = sshll.u32 %s3646_s28, 4  ;;  %s3536_s19 = int_to_ptr.vmem [resolvable:$false] %s3535_s19 }
  0x9b   : > { %721 = vmatpush1.bf16.msra.mxu0 %v3170_v28  ;;  %2925 = vmatpush3.bf16.msra.mxu1 %v3175_v32 }
  0x9c   : > { %722 = vmatprep.subr.bf16.mxu0 %v3172_v30  ;;  %2926 = vmatprep.subr.bf16.mxu1 %v3640_v23 }
  0x9f   : > { %723 = vmatpush1.bf16.msra.mxu0 %v3174_v31  ;;  %2927 = vmatpush3.bf16.msra.mxu1 %v3179_v35 }
  0xa0   : > { %724 = vmatprep.subr.bf16.mxu0 %v3176_v33  ;;  %2928 = vmatprep.subr.bf16.mxu1 %v3640_v23 }
  0xa3   : > { %725 = vmatpush1.bf16.msra.mxu0 %v3178_v34  ;;  %2929 = vmatpush3.bf16.msra.mxu1 %v3183_v39 }
  0xa4   : > { %726 = vmatprep.subr.bf16.mxu0 %v3180_v36  ;;  %2930 = vmatprep.subr.bf16.mxu1 %v3640_v23 }
  0xa7   : > { %727 = vmatpush1.bf16.msra.mxu0 %v3182_v38  ;;  %2931 = vmatpush3.bf16.msra.mxu1 %v3187_v42 }
  0xa8   : > { %728 = vmatprep.subr.bf16.mxu0 %v3184_v40  ;;  %2932 = vmatprep.subr.bf16.mxu1 %v3640_v23 }
  0xab   : > { %729 = vmatpush1.bf16.msra.mxu0 %v3186_v41  ;;  %2933 = vmatpush3.bf16.msra.mxu1 %v3188_v43 }
  0xac   : > { %2938 = vmatprep.subr.bf16.mxu0 %v3640_v23  ;;  %2944 = vmatprep.subr.bf16.mxu1 %v3640_v23 }
 0x116   : > { %v567_v4 = vpop.xlane.xlu0 %566  ;;  %v837_v5 = vpop.xlane.xlu1 %836 }
 0x117   : > { %v571_v6 = vmul.f32 0.0078125, %v567_v4  ;;  %v841_v7 = vmul.f32 0.0078125, %v837_v5 }
 0x119   : > { %v3906_v8 = vsub.f32 %v564_v0, %v571_v6  ;;  %v3908_v9 = vsub.f32 %v564_v0, %v841_v7 }
 0x11a   : > { %v569_v10 = vpop.xlane.xlu0 %568  ;;  %v839_v11 = vpop.xlane.xlu1 %838 }
 0x11b   : > { %v572_v12 = vmul.f32 0.0078125, %v569_v10  ;;  %v575_v13 = vmul.f32 %v3906_v8, %v3906_v8  ;;  %v842_v14 = vmul.f32 0.0078125, %v839_v11  ;;  %v845_v17 = vmul.f32 %v3908_v9, %v3908_v9 }
 0x11d   : > { %v3912_v15 = vsub.f32 %v565_v1, %v572_v12  ;;  %577 = vadd.xlane.f32.xlu0 %v575_v13  ;;  %v3914_v16 = vsub.f32 %v565_v1, %v842_v14 }
 0x11f   : > { %v576_v18 = vmul.f32 %v3912_v15, %v3912_v15  ;;  %v846_v19 = vmul.f32 %v3914_v16, %v3914_v16 }
 0x121   : > { %847 = vadd.xlane.f32.xlu0 %v845_v17  ;;  %579 = vadd.xlane.f32.xlu1 %v576_v18 }
 0x125   : > { %849 = vadd.xlane.f32.xlu1 %v846_v19 }
 0x1a6   : > { %v578_v44 = vpop.xlane.xlu0 %577 }
 0x1a7   : > { %v581_v45 = vmul.f32 0.0078125, %v578_v44 }
 0x1a9   : > { %v583_v46 = vadd.f32 1e-06, %v581_v45 }
 0x1aa   : > { %v580_v47 = vpop.xlane.xlu1 %579  ;;  %v848_v48 = vpop.xlane.xlu0 %847 }
 0x1ab   : > { %3285 = vrsqrt.f32 %v583_v46  ;;  %v582_v49 = vmul.f32 0.0078125, %v580_v47  ;;  %v851_v50 = vmul.f32 0.0078125, %v848_v48 }
 0x1ad   : > { %v584_v51 = vadd.f32 1e-06, %v582_v49  ;;  %v853_v52 = vadd.f32 1e-06, %v851_v50 }
 0x1ae   : > { %v850_v53 = vpop.xlane.xlu1 %849 }
 0x1af   : > { %3287 = vrsqrt.f32 %v584_v51  ;;  %v852_v54 = vmul.f32 0.0078125, %v850_v53 }
 0x1b0   : > { %3289 = vrsqrt.f32 %v853_v52 }
 0x1b1   : > { %v854_v55 = vadd.f32 1e-06, %v852_v54 }
 0x1b3   : > { %3291 = vrsqrt.f32 %v854_v55 }
 0x1b8   : > { %v3286_v56 = vpop.eup %3285 }
 0x1b9   : > { %v587_v57 = vmul.f32 %v3286_v56, %v3906_v8 }
 0x1bb   : > { %v595_v62 = vmul.f32 %v2835_v58, %v587_v57 }
 0x1bc   : > { %v3288_v59 = vpop.eup %3287 }
 0x1bd   : > { %v3290_v60 = vpop.eup %3289  ;;  %v588_v61 = vmul.f32 %v3288_v59, %v3912_v15  ;;  %v603_v3 = vadd.f32 %v2836_v63, %v595_v62  ;;  %v622_v15 = vld [vmem:[%s4195_s4 + $0x1] sm:$0x3] }
 0x1be   : > { %v857_v0 = vmul.f32 %v3290_v60, %v3908_v9  ;;  %v590_v9 = vlaneseq }
 0x1bf   : > { %v596_v1 = vmul.f32 %v2835_v58, %v588_v61 }
 0x1c0   : > { %v3292_v2 = vpop.eup %3291  ;;  %v865_v6 = vmul.f32 %v2835_v58, %v857_v0  ;;  %v3943_v13 = vshrl.u32 %v590_v9, 7 }
 0x1c1   : > { %v604_v4 = vadd.f32 %v2836_v63, %v596_v1  ;;  %v858_v5 = vmul.f32 %v3292_v2, %v3914_v16 }
 0x1c2   : > { %v873_v8 = vadd.f32 %v2836_v63, %v865_v6  ;;  %v592_v14 = vsub.s32 0, %v3943_v13  ;;  %v630_v16 = vsub.s32 1, %v3943_v13 }
 0x1c3   : > { %v605_v7 = vpack.c.bf16 %v604_v4, %v603_v3  ;;  %v866_v10 = vmul.f32 %v2835_v58, %v858_v5 }
 0x1c4   : > { %v627_v17 = vrot.slane %v622_v15, %v592_v14  ;;  %v631_v18 = vrot.slane %v622_v15, %v630_v16 }
 0x1c5   : > { %747 = vmatmul.mubr.bf16.vlgmr.msra.gmra.mxu0 %v605_v7  ;;  %v874_v11 = vadd.f32 %v2836_v63, %v866_v10 }
 0x1c6   : > { %2940 = vmatprep.mubr.msk.bf16.mxu0 %vm3642_vm0, %v3640_v23 }
 0x1c7   : > { %v875_v12 = vpack.c.bf16 %v874_v11, %v873_v8 }
 0x1c9   : > { %2935 = vmatmul.mubr.bf16.vlgmr.msra.gmra.mxu1 %v875_v12 }
 0x1ca   : > { %2946 = vmatprep.mubr.msk.bf16.mxu1 %vm3642_vm0, %v3640_v23 }
 0x285   : > { %v748_v19 = vpop.f32.mrf.mxu0 }
 0x286   : > { %v749_v20 = vadd.f32 %v748_v19, %v627_v17 }
 0x287   : > { %v750_v21 = vpop.f32.mrf.mxu0 }
 0x288   : > { %v3954_v22 = vpack.c.bf16 %v749_v20, %v749_v20  ;;  %v751_v24 = vadd.f32 %v750_v21, %v631_v18 }
 0x289   : > { %v752_v25 = vpop.f32.mrf.mxu0  ;;  %v981_v27 = vpop.f32.mrf.mxu1 }
 0x28a   : > { %766 = vst.msk [vmem:[#allocation2] sm:$0xf] %vm765_vm1, %v3954_v22  ;;  %v3961_v28 = vpack.c.bf16 %v751_v24, %v751_v24  ;;  %v753_v29 = vadd.f32 %v752_v25, %v627_v17  ;;  %778 = vrot.lane.b32.xlu0 %v3954_v22, %s3643_s16  ;;  %v982_v33 = vadd.f32 %v2719_v26, %v981_v27 }
 0x28b   : > { %v754_v30 = vpop.f32.mrf.mxu0  ;;  %v2936_v31 = vpop.f32.mrf.mxu1 }
 0x28c   : > { %776 = vst.msk [vmem:[#allocation3] sm:$0xf] %vm765_vm1, %v3961_v28  ;;  %v3967_v32 = vpack.c.bf16 %v753_v29, %v753_v29  ;;  %v755_v34 = vadd.f32 %v754_v30, %v631_v18  ;;  %v988_v40 = vmul.f32 0.17677669, %v982_v33  ;;  %v3193_v30 = vld [vmem:[#allocation12 + $0x18] sm:$0xff]   ;;  %v3194_v31 = vld [vmem:[#allocation12 + $0x10] sm:$0xff]  }
 0x28d   : > { %v984_v35 = vpop.f32.mrf.mxu1  ;;  %v3195_v33 = vld [vmem:[#allocation12 + $0x8] sm:$0xff]  }
 0x28e   : > { %767 = vst.msk [vmem:[#allocation2 + $0x4] sm:$0xf] %vm765_vm1, %v3967_v32  ;;  %v3971_v36 = vpack.c.bf16 %v755_v34, %v755_v34  ;;  %v985_v38 = vadd.f32 %v2719_v26, %v984_v35  ;;  %780 = vrot.lane.b32.xlu1 %v3967_v32, %s3643_s16  ;;  %v3197_v34 = vld [vmem:[#allocation12] sm:$0xff]  }
 0x28f   : > { %v2937_v39 = vpop.f32.mrf.mxu1 }
 0x290   : > { %777 = vst.msk [vmem:[#allocation3 + $0x4] sm:$0xf] %vm765_vm1, %v3971_v36  ;;  %v989_v41 = vmul.f32 0.17677669, %v985_v38 }
 0x292   : > { %v3977_v42 = vpack.c.bf16 %v989_v41, %v988_v40 }
 0x294   : > { %1131 = vrot.lane.b32.xlu1 %v3977_v42, %s3643_s16 }
 0x295   : > { %v3189_v43 = vld [vmem:[#allocation2] sm:$0xff]  }
 0x296   : > { %v1003_v44 = vsel %vm998_vm2, %v3189_v43, 0 }
 0x297   : > { %v3190_v45 = vld [vmem:[#allocation3] sm:$0xff]   ;;  %2939 = vmatpush3.bf16.xpose.msra.mxu0 %v1003_v44 }
 0x298   : > { %2945 = vmatpush3.bf16.msra.mxu1 %v3190_v45  ;;  %2950 = vmatprep.subr.bf16.mxu0 %v3640_v23 }
 0x299   : > { %2956 = vmatprep.subr.bf16.mxu1 %v3640_v23 }
 0x29e   : > { %2941 = vmatmul.mubr.msk.bf16.vlgmr.msra.gmra.mxu0 %vm998_vm2, %v3977_v42 }
 0x29f   : > { %2952 = vmatprep.mubr.msk.bf16.mxu0 %vm3642_vm0, %v3640_v23 }
 0x2fc   : > { %v779_v46 = vpop.permute.xlu0 %778 }
 0x2fd   : > { %785 = vst.msk [vmem:[#allocation2 + $0x8] sm:$0xf] %vm765_vm1, %v779_v46 }
 0x300   : > { %v781_v47 = vpop.permute.xlu1 %780 }
 0x301   : > { %786 = vst.msk [vmem:[#allocation2 + $0xc] sm:$0xf] %vm765_vm1, %v781_v47 }
 0x306   : > { %v1132_v50 = vpop.permute.xlu1 %1131 }
 0x308   : > { %v3191_v48 = vld [vmem:[#allocation2 + $0x8] sm:$0xff]  }
 0x309   : > { %v1142_v49 = vsel %vm998_vm2, %v3191_v48, 0 }
 0x30a   : > { %2951 = vmatpush3.bf16.xpose.msra.mxu0 %v1142_v49 }
 0x30b   : > { %2962 = vmatprep.subr.bf16.mxu0 %v3640_v23 }
 0x311   : > { %2953 = vmatmul.mubr.msk.bf16.vlgmr.msra.gmra.mxu0 %vm998_vm2, %v1132_v50 }
 0x312   : > { %2966 = vmatprep.mubr.msk.bf16.mxu0 %vm3642_vm0, %v3640_v23  ;;  %2963 = vmatpush3.bf16.msra.mxu0 %v3193_v30 }
 0x313   : > { %2964 = vmatprep.subr.bf16.mxu0 %v3640_v23 }
 0x316   : > { %2965 = vmatpush3.bf16.msra.mxu0 %v3194_v31 }
 0x317   : > { %2978 = vmatprep.subr.bf16.mxu0 %v3640_v23 }
 0x35e   : > { %v1039_v51 = vpop.f32.mrf.mxu0 }
 0x35f   : > { %v1047_v52 = vsel %vm1046_vm3, %v1039_v51, -inf }
 0x360   : > { %1048 = vmax.xlane.f32.xlu1 %v1047_v52  ;;  %v2942_v53 = vpop.f32.mrf.mxu0 }
 0x362   : > { %v1042_v54 = vpop.f32.mrf.mxu0 }
 0x363   : > { %v1050_v55 = vsel %vm1046_vm3, %v1042_v54, -inf }
 0x364   : > { %1051 = vmax.xlane.f32.xlu0 %v1050_v55  ;;  %v2943_v56 = vpop.f32.mrf.mxu0 }
 0x371   : > { %787 = vrot.lane.b32.xlu1 %v3961_v28, %s3643_s16 }
 0x3d1   : > { %v1178_v57 = vpop.f32.mrf.mxu0 }
 0x3d2   : > { %v1185_v58 = vsel %vm1046_vm3, %v1178_v57, -inf }
 0x3d3   : > { %1186 = vmax.xlane.f32.xlu0 %v1185_v58  ;;  %v2954_v59 = vpop.f32.mrf.mxu0 }
 0x3d5   : > { %v1181_v60 = vpop.f32.mrf.mxu0 }
 0x3d6   : > { %v1188_v61 = vsel %vm1046_vm3, %v1181_v60, -inf }
 0x3d7   : > { %1189 = vmax.xlane.f32.xlu0 %v1188_v61  ;;  %v2955_v62 = vpop.f32.mrf.mxu0 }
 0x3e9   : > { %v1049_v63 = vpop.xlane.xlu1 %1048 }
 0x3ea   : > { %v1053_v0 = vsub.f32 %v1039_v51, %v1049_v63 }
 0x3ec   : > { %v1055_v1 = vmul.f32 1.442695, %v1053_v0 }
 0x3ed   : > { %v788_v2 = vpop.permute.xlu1 %787  ;;  %v1052_v3 = vpop.xlane.xlu0 %1051  ;;  %789 = vrot.lane.b32.xlu0 %v3971_v36, %s3643_s16  ;;  %s555_s16 = scalar_lea.vmem [#allocation16], %s2691_s11  ;;  %s2519_s11 = scalar_lea.sflag [#allocation6], %s3880_s18 }
 0x3ee   : > { %794 = vst.msk [vmem:[#allocation3 + $0x8] sm:$0xf] %vm765_vm1, %v788_v2  ;;  %v1054_v4 = vsub.f32 %v1042_v54, %v1052_v3  ;;  %3293 = vpow2.f32 %v1055_v1 }
 0x3f0   : > { %v1057_v5 = vmul.f32 1.442695, %v1054_v4 }
 0x3f2   : > { %3295 = vpow2.f32 %v1057_v5 }
 0x3fb   : > { %v3294_v6 = vpop.eup %3293 }
 0x3fc   : > { %v1059_v27 = vsel %vm1046_vm3, %v3294_v6, 0.0 }
 0x3ff   : > { %v3296_v7 = vpop.eup %3295 }
 0x400   : > { %v1065_v10 = vpack.c.bf16 %v3296_v7, %v3294_v6  ;;  %v1062_v29 = vsel %vm1046_vm3, %v3296_v7, 0.0 }
 0x402   : > { %2947 = vmatmul.mubr.msk.bf16.vlgmr.msra.gmra.mxu1 %vm1046_vm3, %v1065_v10 }
 0x403   : > { %2958 = vmatprep.mubr.msk.bf16.mxu1 %vm3642_vm0, %v3640_v23 }
 0x45c   : > { %v1187_v8 = vpop.xlane.xlu0 %1186 }
 0x45d   : > { %v1191_v11 = vsub.f32 %v1178_v57, %v1187_v8 }
 0x45f   : > { %v1193_v12 = vmul.f32 1.442695, %v1191_v11 }
 0x460   : > { %v1190_v9 = vpop.xlane.xlu0 %1189 }
 0x461   : > { %3297 = vpow2.f32 %v1193_v12  ;;  %v1192_v15 = vsub.f32 %v1181_v60, %v1190_v9 }
 0x463   : > { %v1195_v17 = vmul.f32 1.442695, %v1192_v15 }
 0x464   : > { %v790_v18 = vpop.permute.xlu0 %789 }
 0x465   : > { %3299 = vpow2.f32 %v1195_v17  ;;  %795 = vst.msk [vmem:[#allocation3 + $0xc] sm:$0xf] %vm765_vm1, %v790_v18 }
 0x46c   : > { %v3192_v19 = vld [vmem:[#allocation3 + $0x8] sm:$0xff]  }
 0x46d   : > { %2957 = vmatpush3.bf16.msra.mxu1 %v3192_v19 }
 0x46e   : > { %v3298_v20 = vpop.eup %3297  ;;  %2970 = vmatprep.subr.bf16.mxu1 %v3640_v23 }
 0x46f   : > { %v1197_v21 = vsel %vm1046_vm3, %v3298_v20, 0.0 }
 0x470   : > { %1198 = vadd.xlane.f32.xlu1 %v1197_v21 }
 0x472   : > { %v3300_v24 = vpop.eup %3299 }
 0x473   : > { %v1200_v25 = vsel %vm1046_vm3, %v3300_v24, 0.0  ;;  %v1203_v26 = vpack.c.bf16 %v3300_v24, %v3298_v20 }
 0x474   : > { %1201 = vadd.xlane.f32.xlu0 %v1200_v25 }
 0x475   : > { %2959 = vmatmul.mubr.msk.bf16.vlgmr.msra.gmra.mxu1 %vm1046_vm3, %v1203_v26 }
 0x476   : > { %2974 = vmatprep.mubr.msk.bf16.mxu1 %vm3642_vm0, %v3640_v23  ;;  %2971 = vmatpush3.bf16.msra.mxu1 %v3195_v33 }
 0x477   : > { %2972 = vmatprep.subr.bf16.mxu1 %v3640_v23 }
 0x47a   : > { %2973 = vmatpush3.bf16.msra.mxu1 %v3197_v34 }
 0x47b   : > { %2984 = vmatprep.subr.bf16.mxu1 %v3640_v23 }
 0x481   : > { %796 = vrot.lane.b32.xlu1 %v3954_v22, %s3644_s20 }
 0x485   : > { %1382 = vrot.lane.b32.xlu1 %v3977_v42, %s3644_s20 }
 0x48a   : > { %798 = vrot.lane.b32.xlu0 %v3967_v32, %s3644_s20 }
 0x4a9   : > { %1060 = vadd.xlane.f32.xlu1 %v1059_v27  ;;  %1063 = vadd.xlane.f32.xlu0 %v1062_v29 }
 0x4ba   : > { %807 = vrot.lane.b32.xlu1 %v3971_v36, %s3644_s20 }
 0x4be   : > { %814 = vrot.lane.b32.xlu1 %v3954_v22, %s3645_s23 }
 0x4c2   : > { %v1111_v35 = vpop.f32.mrf.mxu1 }
 0x4c4   : > { %v2948_v38 = vpop.f32.mrf.mxu1 }
 0x4c6   : > { %v1114_v39 = vpop.f32.mrf.mxu1 }
 0x4c8   : > { %v2949_v40 = vpop.f32.mrf.mxu1 }
 0x4f9   : > { %v1199_v41 = vpop.xlane.xlu1 %1198 }
 0x4fa   : > { %3301 = vrcp.f32 %v1199_v41 }
 0x4fd   : > { %v797_v43 = vpop.permute.xlu1 %796  ;;  %v1202_v44 = vpop.xlane.xlu0 %1201 }
 0x4fe   : > { %803 = vst.msk [vmem:[#allocation2 + $0x10] sm:$0xf] %vm765_vm1, %v797_v43  ;;  %3303 = vrcp.f32 %v1202_v44  ;;  %v3200_v43 = vld [vmem:[#allocation12 + $0x28] sm:$0xff]   ;;  %v3201_v44 = vld [vmem:[#allocation12 + $0x20] sm:$0xff]  }
 0x501   : > { %v799_v45 = vpop.permute.xlu0 %798  ;;  %v1383_v22 = vpop.permute.xlu1 %1382 }
 0x502   : > { %804 = vst.msk [vmem:[#allocation2 + $0x14] sm:$0xf] %vm765_vm1, %v799_v45 }
 0x507   : > { %v3302_v51 = vpop.eup %3301 }
 0x509   : > { %v3196_v57 = vld [vmem:[#allocation2 + $0x10] sm:$0xff]  }
 0x50a   : > { %v1393_v60 = vsel %vm998_vm2, %v3196_v57, 0 }
 0x50b   : > { %v3304_v52 = vpop.eup %3303 }
 0x532   : > { %v1061_v46 = vpop.xlane.xlu1 %1060  ;;  %v1064_v47 = vpop.xlane.xlu0 %1063 }
 0x533   : > { %3305 = vrcp.f32 %v1061_v46 }
 0x534   : > { %3307 = vrcp.f32 %v1064_v47 }
 0x535   : > { %v1250_v48 = vpop.f32.mrf.mxu1 }
 0x536   : > { %v808_v49 = vpop.permute.xlu1 %807  ;;  %v1259_v54 = vmul.f32 %v3302_v51, %v1250_v48 }
 0x537   : > { %813 = vst.msk [vmem:[#allocation3 + $0x14] sm:$0xf] %vm765_vm1, %v808_v49  ;;  %v2960_v50 = vpop.f32.mrf.mxu1 }
 0x539   : > { %v1253_v53 = vpop.f32.mrf.mxu1 }
 0x53a   : > { %v1260_v55 = vmul.f32 %v3304_v52, %v1253_v53  ;;  %v815_v56 = vpop.permute.xlu1 %814 }
 0x53b   : > { %821 = vst.msk [vmem:[#allocation2 + $0x18] sm:$0xf] %vm765_vm1, %v815_v56  ;;  %v2961_v58 = vpop.f32.mrf.mxu1 }
 0x53c   : > { %v1261_v59 = vpack.c.bf16 %v1260_v55, %v1259_v54 }
 0x53e   : > { %2967 = vmatmul.mubr.msk.bf16.vlgmr.msra.gmra.mxu0 %vm998_vm2, %v1261_v59 }
 0x53f   : > { %2979 = vmatpush3.bf16.xpose.msra.mxu0 %v1393_v60  ;;  %2980 = vmatprep.mubr.msk.bf16.mxu0 %vm3642_vm0, %v3640_v23 }
 0x540   : > { %v3306_v61 = vpop.eup %3305  ;;  %2990 = vmatprep.subr.bf16.mxu0 %v3640_v23 }
 0x541   : > { %v3308_v62 = vpop.eup %3307  ;;  %v1120_v63 = vmul.f32 %v3306_v61, %v1111_v35 }
 0x542   : > { %v1121_v0 = vmul.f32 %v3308_v62, %v1114_v39 }
 0x544   : > { %v1122_v1 = vpack.c.bf16 %v1121_v0, %v1120_v63 }
 0x546   : > { %2975 = vmatmul.mubr.msk.bf16.vlgmr.msra.gmra.mxu1 %vm998_vm2, %v1122_v1  ;;  %2981 = vmatmul.mubr.msk.bf16.vlgmr.msra.gmra.mxu0 %vm998_vm2, %v1383_v22 }
 0x547   : > { %2986 = vmatprep.mubr.msk.bf16.mxu1 %vm3642_vm0, %v3640_v23  ;;  %2994 = vmatprep.mubr.msk.bf16.mxu0 %vm3642_vm0, %v3640_v23 }
 0x548   : > { %2991 = vmatpush3.bf16.msra.mxu0 %v3200_v43 }
 0x549   : > { %2992 = vmatprep.subr.bf16.mxu0 %v3640_v23 }
 0x54c   : > { %2993 = vmatpush3.bf16.msra.mxu0 %v3201_v44 }
 0x54d   : > { %3004 = vmatprep.subr.bf16.mxu0 %v3640_v23 }
 0x5fe   : > { %v1316_v2 = vpop.f32.mrf.mxu0 }
 0x600   : > { %v2968_v3 = vpop.f32.mrf.mxu0 }
 0x602   : > { %v1319_v4 = vpop.f32.mrf.mxu0 }
 0x604   : > { %v2969_v5 = vpop.f32.mrf.mxu0 }
 0x606   : > { %v1372_v6 = vpop.f32.mrf.mxu1  ;;  %v1429_v7 = vpop.f32.mrf.mxu0 }
 0x607   : > { %v4045_v10 = vadd.f32 %v1372_v6, %v1316_v2  ;;  %v1436_v8 = vsel %vm1046_vm3, %v1429_v7, -inf }
 0x608   : > { %v2976_v11 = vpop.f32.mrf.mxu1  ;;  %1437 = vmax.xlane.f32.xlu0 %v1436_v8  ;;  %v2982_v12 = vpop.f32.mrf.mxu0 }
 0x60a   : > { %v1375_v9 = vpop.f32.mrf.mxu1  ;;  %v1432_v15 = vpop.f32.mrf.mxu0 }
 0x60b   : > { %v4048_v17 = vadd.f32 %v1375_v9, %v1319_v4  ;;  %v1439_v18 = vsel %vm1046_vm3, %v1432_v15, -inf }
 0x60c   : > { %v2977_v19 = vpop.f32.mrf.mxu1  ;;  %1440 = vmax.xlane.f32.xlu1 %v1439_v18  ;;  %v2983_v20 = vpop.f32.mrf.mxu0 }
 0x60d   : > { %v3203_v20 = vld [vmem:[#allocation12 + $0x38] sm:$0xff]  }
 0x61d   : > { %816 = vrot.lane.b32.xlu1 %v3967_v32, %s3645_s23 }
 0x61e   : > { %805 = vrot.lane.b32.xlu0 %v3961_v28, %s3644_s20  ;;  %s2534_s20 = sshll.u32 %s555_s16, 4  ;;  %s4137_s20 = int_to_ptr.vmem [resolvable:$true] %s2534_s20 }
 0x61f   : > { %s3531_s3 = scalar_lea.vmem %s4137_s20, 256  ;;  %p3538_p9 = scmp.lt.s32.totalorder %s4137_s20, %s3536_s19 }
 0x620   : > { %p3532_p0 = scmp.ne.s32.totalorder %s4137_s20, %s3531_s3 }
 0x622   : > { %1579 = vrot.lane.b32.xlu0 %v3977_v42, %s3645_s23  ;;  %p3533_p5 = pnand %p3532_p0, %p3850_p2 }
 0x624   : > { %p3534_p7 = pneg %p3533_p5 }
 0x691   : > { %v1438_v21 = vpop.xlane.xlu0 %1437 }
 0x692   : > { %v1442_v24 = vsub.f32 %v1429_v7, %v1438_v21  ;;  %v3204_v21 = vld [vmem:[#allocation12 + $0x30] sm:$0xff]  }
 0x694   : > { %v1444_v25 = vmul.f32 1.442695, %v1442_v24 }
 0x695   : > { %v806_v26 = vpop.permute.xlu0 %805  ;;  %v1441_v27 = vpop.xlane.xlu1 %1440 }
 0x696   : > { %3309 = vpow2.f32 %v1444_v25  ;;  %812 = vst.msk [vmem:[#allocation3 + $0x10] sm:$0xf] %vm765_vm1, %v806_v26  ;;  %v1443_v29 = vsub.f32 %v1432_v15, %v1441_v27 }
 0x698   : > { %v1446_v30 = vmul.f32 1.442695, %v1443_v29 }
 0x699   : > { %v817_v31 = vpop.permute.xlu1 %816  ;;  %v1580_v41 = vpop.permute.xlu0 %1579 }
 0x69a   : > { %3311 = vpow2.f32 %v1446_v30  ;;  %822 = vst.msk [vmem:[#allocation2 + $0x1c] sm:$0xf] %vm765_vm1, %v817_v31 }
 0x69d   : > { %v3198_v32 = vld [vmem:[#allocation3 + $0x10] sm:$0xff]  }
 0x69e   : > { %2985 = vmatpush3.bf16.msra.mxu1 %v3198_v32 }
 0x69f   : > { %2998 = vmatprep.subr.bf16.mxu1 %v3640_v23 }
 0x6a1   : > { %v3199_v34 = vld [vmem:[#allocation2 + $0x18] sm:$0xff]  }
 0x6a2   : > { %v1590_v40 = vsel %vm998_vm2, %v3199_v34, 0 }
 0x6a3   : > { %v3310_v33 = vpop.eup %3309 }
 0x6a4   : > { %v1448_v42 = vsel %vm1046_vm3, %v3310_v33, 0.0 }
 0x6a5   : > { %1449 = vadd.xlane.f32.xlu1 %v1448_v42  ;;  %v2756_v42 = vld [vmem:[%s4197_s6] ss:$0 sm:$0xff] }
 0x6a7   : > { %v3312_v35 = vpop.eup %3311 }
 0x6a8   : > { %v1451_v38 = vsel %vm1046_vm3, %v3312_v35, 0.0  ;;  %v1454_v39 = vpack.c.bf16 %v3312_v35, %v3310_v33 }
 0x6a9   : > { %1452 = vadd.xlane.f32.xlu0 %v1451_v38 }
 0x6aa   : > { %2987 = vmatmul.mubr.msk.bf16.vlgmr.msra.gmra.mxu1 %vm1046_vm3, %v1454_v39 }
 0x6ab   : > { %2999 = vmatpush3.bf16.xpose.msra.mxu1 %v1590_v40  ;;  %3000 = vmatprep.mubr.msk.bf16.mxu1 %vm3642_vm0, %v3640_v23 }
 0x6ac   : > { %3010 = vmatprep.subr.bf16.mxu1 %v3640_v23 }
 0x6b2   : > { %3001 = vmatmul.mubr.msk.bf16.vlgmr.msra.gmra.mxu1 %vm998_vm2, %v1580_v41  ;;  %v3345_v41 = vld [vmem:[%s3886_s1] sm:$0xff] }
 0x6b3   : > { %3014 = vmatprep.mubr.msk.bf16.mxu1 %vm3642_vm0, %v3640_v23  ;;  %3011 = vmatpush3.bf16.msra.mxu1 %v3203_v20  ;;  %v3244_v20 = vld [vmem:[#allocation13 + $0x28] ss:$16 sps:$4 sm:$0xff]  }
 0x6b4   : > { %3012 = vmatprep.subr.bf16.mxu1 %v3640_v23 }
 0x6b6   : > { %823 = vrot.lane.b32.xlu1 %v3961_v28, %s3645_s23 }
 0x6b7   : > { %3013 = vmatpush3.bf16.msra.mxu1 %v3204_v21  ;;  %v3249_v21 = vld [vmem:[#allocation13 + $0x4] ss:$16 sps:$4 sm:$0xff]  }
 0x72e   : > { %v1450_v45 = vpop.xlane.xlu1 %1449 }
 0x72f   : > { %3313 = vrcp.f32 %v1450_v45 }
 0x732   : > { %v824_v22 = vpop.permute.xlu1 %823  ;;  %v1453_v46 = vpop.xlane.xlu0 %1452 }
 0x733   : > { %830 = vst.msk [vmem:[#allocation3 + $0x18] sm:$0xf] %vm765_vm1, %v824_v22  ;;  %3315 = vrcp.f32 %v1453_v46  ;;  %v3346_v22 = vld [vmem:[%s3886_s1 + $0x8] sm:$0xff]  ;;  %s3537_s1 = scalar_lea.vmem %s3536_s19, 512 }
 0x734   : > { %p3539_p8 = scmp.lt.s32.totalorder %s3537_s1, %s3531_s3 }
 0x736   : > { %p3540_p10 = por %p3539_p8, %p3538_p9 }
 0x738   : > { %p3541_p6 = pnand %p3540_p10, %p3534_p7 }
 0x73c   : > { %v3314_v49 = vpop.eup %3313 }
 0x740   : > { %v3316_v50 = vpop.eup %3315 }
 0x76a   : > { %v1501_v47 = vpop.f32.mrf.mxu1 }
 0x76b   : > { %v1510_v51 = vmul.f32 %v3314_v49, %v1501_v47  ;;  %v3207_v47 = vld [vmem:[#allocation13 + $0xe4] ss:$16 sps:$4 sm:$0xff]   ;;  %v3210_v49 = vld [vmem:[#allocation13 + $0xec] ss:$16 sps:$4 sm:$0xff]  }
 0x76c   : > { %v2988_v48 = vpop.f32.mrf.mxu1  ;;  %2082 = vmatprep.subr.bf16.mxu1 %v3210_v49  ;;  %v3258_v49 = vld [vmem:[#allocation15 + $0xf0] sm:$0xff]  }
 0x76d   : > { %v3208_v48 = vld [vmem:[#allocation13 + $0xe8] ss:$16 sps:$4 sm:$0xff]  }
 0x76e   : > { %v1504_v28 = vpop.f32.mrf.mxu1 }
 0x76f   : > { %v1511_v52 = vmul.f32 %v3316_v50, %v1504_v28 }
 0x770   : > { %v2989_v53 = vpop.f32.mrf.mxu1 }
 0x771   : > { %v1512_v54 = vpack.c.bf16 %v1511_v52, %v1510_v51 }
 0x772   : > { %v1626_v55 = vpop.f32.mrf.mxu1 }
 0x773   : > { %2995 = vmatmul.mubr.msk.bf16.vlgmr.msra.gmra.mxu0 %vm998_vm2, %v1512_v54  ;;  %v1633_v56 = vsel %vm1046_vm3, %v1626_v55, -inf }
 0x774   : > { %1634 = vmax.xlane.f32.xlu0 %v1633_v56  ;;  %v3002_v57 = vpop.f32.mrf.mxu1  ;;  %3006 = vmatprep.mubr.msk.bf16.mxu0 %vm3642_vm0, %v3640_v23 }
 0x775   : > { %v3213_v57 = vld [vmem:[#allocation13 + $0xc4] ss:$16 sps:$4 sm:$0xff]  }
 0x776   : > { %v1629_v58 = vpop.f32.mrf.mxu1 }
 0x777   : > { %v1636_v59 = vsel %vm1046_vm3, %v1629_v58, -inf }
 0x778   : > { %1637 = vmax.xlane.f32.xlu0 %v1636_v59  ;;  %v3003_v60 = vpop.f32.mrf.mxu1  ;;  %v3211_v59 = vld [vmem:[#allocation13 + $0xc0] ss:$16 sps:$4 sm:$0xff]  }
 0x779   : > { %v3214_v60 = vld [vmem:[#allocation13 + $0xc8] ss:$16 sps:$4 sm:$0xff]  }
 0x78e   : > { %825 = vrot.lane.b32.xlu0 %v3971_v36, %s3645_s23  ;;  %s2834_s23 = sshll.u32 %s4241_s15, 8 }
 0x78f   : > { %s4142_s12 = scalar_lea.hbm %s4242_s21, %s2834_s23 }
 0x7fd   : > { %v1635_v61 = vpop.xlane.xlu0 %1634 }
 0x7fe   : > { %v1639_v62 = vsub.f32 %v1626_v55, %v1635_v61  ;;  %v3219_v61 = vld [vmem:[#allocation13 + $0xa4] ss:$16 sps:$4 sm:$0xff]  }
 0x800   : > { %v1641_v63 = vmul.f32 1.442695, %v1639_v62  ;;  %v3222_v62 = vld [vmem:[#allocation13 + $0xac] ss:$16 sps:$4 sm:$0xff]  }
 0x801   : > { %v1638_v0 = vpop.xlane.xlu0 %1637 }
 0x802   : > { %3317 = vpow2.f32 %v1641_v63  ;;  %v1640_v1 = vsub.f32 %v1629_v58, %v1638_v0  ;;  %v3216_v58 = vld [vmem:[#allocation13 + $0xcc] ss:$16 sps:$4 sm:$0xff]   ;;  %v3217_v63 = vld [vmem:[#allocation13 + $0xa0] ss:$16 sps:$4 sm:$0xff]   ;;  %v3220_v0 = vld [vmem:[#allocation13 + $0xa8] ss:$16 sps:$4 sm:$0xff]  }
 0x804   : > { %v1643_v2 = vmul.f32 1.442695, %v1640_v1  ;;  %v3223_v1 = vld [vmem:[#allocation13 + $0x80] ss:$16 sps:$4 sm:$0xff]  }
 0x805   : > { %v826_v3 = vpop.permute.xlu0 %825 }
 0x806   : > { %3319 = vpow2.f32 %v1643_v2  ;;  %831 = vst.msk [vmem:[#allocation3 + $0x1c] sm:$0xf] %vm765_vm1, %v826_v3  ;;  %v3225_v2 = vld [vmem:[#allocation13 + $0x84] ss:$16 sps:$4 sm:$0xff]   ;;  %v3226_v3 = vld [vmem:[#allocation13 + $0x88] ss:$16 sps:$4 sm:$0xff]  }
 0x80d   : > { %v3202_v4 = vld [vmem:[#allocation3 + $0x18] sm:$0xff]  }
 0x80e   : > { %3005 = vmatpush3.bf16.msra.mxu0 %v3202_v4  ;;  %v3228_v4 = vld [vmem:[#allocation13 + $0x8c] ss:$16 sps:$4 sm:$0xff]  }
 0x80f   : > { %v3318_v5 = vpop.eup %3317  ;;  %2039 = vmatprep.subr.bf16.mxu0 %v3207_v47  ;;  %v3256_v47 = vld [vmem:[#allocation15 + $0xb8] sm:$0xff]  }
 0x810   : > { %v1645_v6 = vsel %vm1046_vm3, %v3318_v5, 0.0 }
 0x811   : > { %1646 = vadd.xlane.f32.xlu1 %v1645_v6  ;;  %v3234_v6 = vld [vmem:[#allocation13 + $0x6c] ss:$16 sps:$4 sm:$0xff]  }
 0x813   : > { %v3320_v7 = vpop.eup %3319 }
 0x814   : > { %v1648_v36 = vsel %vm1046_vm3, %v3320_v7, 0.0  ;;  %v1651_v8 = vpack.c.bf16 %v3320_v7, %v3318_v5  ;;  %v3231_v5 = vld [vmem:[#allocation13 + $0x64] ss:$16 sps:$4 sm:$0xff]   ;;  %v3229_v7 = vld [vmem:[#allocation13 + $0x60] ss:$16 sps:$4 sm:$0xff]  }
 0x815   : > { %1649 = vadd.xlane.f32.xlu0 %v1648_v36  ;;  %v3232_v36 = vld [vmem:[#allocation13 + $0x68] ss:$16 sps:$4 sm:$0xff]  }
 0x816   : > { %3007 = vmatmul.mubr.msk.bf16.vlgmr.msra.gmra.mxu0 %vm1046_vm3, %v1651_v8  ;;  %v3237_v8 = vld [vmem:[#allocation13 + $0x44] ss:$16 sps:$4 sm:$0xff]  }
 0x817   : > { %2071 = vmatprep.mubr.bf16.mxu0 %v3641_v37 }
 0x833   : > { %v1567_v11 = vpop.f32.mrf.mxu0 }
 0x834   : > { %v1574_v12 = vadd.f32 %v1567_v11, %v4045_v10  ;;  %v3240_v11 = vld [vmem:[#allocation13 + $0x4c] ss:$16 sps:$4 sm:$0xff]  }
 0x835   : > { %v2996_v9 = vpop.f32.mrf.mxu0 }
 0x836   : > { %v3238_v9 = vld [vmem:[#allocation13 + $0x48] ss:$16 sps:$4 sm:$0xff]  }
 0x837   : > { %v1570_v15 = vpop.f32.mrf.mxu0 }
 0x838   : > { %v1575_v18 = vadd.f32 %v1570_v15, %v4048_v17  ;;  %v3243_v15 = vld [vmem:[#allocation13 + $0x24] ss:$16 sps:$4 sm:$0xff]  }
 0x839   : > { %v2997_v19 = vpop.f32.mrf.mxu0 }
 0x83a   : > { %v3241_v19 = vld [vmem:[#allocation13 + $0x20] ss:$16 sps:$4 sm:$0xff]  }
 0x89a   : > { %v1647_v24 = vpop.xlane.xlu1 %1646 }
 0x89b   : > { %3321 = vrcp.f32 %v1647_v24  ;;  %v3252_v24 = vld [vmem:[#allocation13 + $0xc] ss:$16 sps:$4 sm:$0xff]  }
 0x89e   : > { %v1650_v25 = vpop.xlane.xlu0 %1649 }
 0x89f   : > { %3323 = vrcp.f32 %v1650_v25  ;;  %v3247_v25 = vld [vmem:[#allocation13] ss:$16 sps:$4 sm:$0xff]  }
 0x8a8   : > { %v3322_v29 = vpop.eup %3321 }
 0x8ac   : > { %v3324_v10 = vpop.eup %3323 }
 0x8d6   : > { %v1698_v26 = vpop.f32.mrf.mxu0 }
 0x8d7   : > { %v1707_v31 = vmul.f32 %v3322_v29, %v1698_v26  ;;  %v3250_v26 = vld [vmem:[#allocation13 + $0x8] ss:$16 sps:$4 sm:$0xff]  }
 0x8d8   : > { %v3008_v27 = vpop.f32.mrf.mxu0 }
 0x8da   : > { %v1701_v30 = vpop.f32.mrf.mxu0 }
 0x8db   : > { %v1708_v32 = vmul.f32 %v3324_v10, %v1701_v30 }
 0x8dc   : > { %v3009_v17 = vpop.f32.mrf.mxu0 }
 0x8dd   : > { %v1709_v33 = vpack.c.bf16 %v1708_v32, %v1707_v31 }
 0x8df   : > { %3015 = vmatmul.mubr.msk.bf16.vlgmr.msra.gmra.mxu1 %vm998_vm2, %v1709_v33 }
 0x8e0   : > { %2114 = vmatprep.mubr.bf16.mxu1 %v3641_v37  ;;  %v3205_v37 = vld [vmem:[#allocation13 + $0xe0] ss:$16 sps:$4 sm:$0xff]   ;;  %2083 = vmatpush1.bf16.msra.mxu1 %v3208_v48 }
 0x8e1   : > { %2040 = vmatpush1.bf16.msra.mxu0 %v3205_v37  ;;  %2084 = vmatprep.subr.bf16.mxu1 %v3216_v58  ;;  %v3255_v37 = vld [vmem:[#allocation15 + $0x38] sm:$0xff]   ;;  %v3257_v48 = vld [vmem:[#allocation15 + $0x70] sm:$0xff]   ;;  %v3268_v58 = vld [vmem:[#allocation15 + $0xa0] sm:$0xff]  }
 0x8e2   : > { %2041 = vmatprep.subr.bf16.mxu0 %v3213_v57  ;;  %v3267_v57 = vld [vmem:[#allocation15 + $0x20] sm:$0xff]  }
 0x8e4   : > { %2085 = vmatpush1.bf16.msra.mxu1 %v3214_v60  ;;  %v3270_v60 = vld [vmem:[#allocation15 + $0xd8] sm:$0xff]  }
 0x8e5   : > { %2042 = vmatpush1.bf16.msra.mxu0 %v3211_v59  ;;  %2086 = vmatprep.subr.bf16.mxu1 %v3222_v62  ;;  %v3269_v59 = vld [vmem:[#allocation15 + $0x58] sm:$0xff]  }
 0x8e6   : > { %2043 = vmatprep.subr.bf16.mxu0 %v3219_v61  ;;  %v3271_v61 = vld [vmem:[#allocation15 + $0x18] sm:$0xff]  }
 0x8e7   : > { %v3272_v62 = vld [vmem:[#allocation15 + $0x98] sm:$0xff]  }
 0x8e8   : > { %2087 = vmatpush1.bf16.msra.mxu1 %v3220_v0  ;;  %v3274_v0 = vld [vmem:[#allocation15 + $0xd0] sm:$0xff]  }
 0x8e9   : > { %2044 = vmatpush1.bf16.msra.mxu0 %v3217_v63  ;;  %2088 = vmatprep.subr.bf16.mxu1 %v3228_v4  ;;  %v3273_v63 = vld [vmem:[#allocation15 + $0x50] sm:$0xff]   ;;  %v3278_v4 = vld [vmem:[#allocation15 + $0xc8] sm:$0xff]  }
 0x8ea   : > { %2045 = vmatprep.subr.bf16.mxu0 %v3225_v2  ;;  %v3276_v2 = vld [vmem:[#allocation15 + $0x90] sm:$0xff]  }
 0x8ec   : > { %2089 = vmatpush1.bf16.msra.mxu1 %v3226_v3  ;;  %v3277_v3 = vld [vmem:[#allocation15 + $0x48] sm:$0xff]  }
 0x8ed   : > { %2046 = vmatpush1.bf16.msra.mxu0 %v3223_v1  ;;  %2090 = vmatprep.subr.bf16.mxu1 %v3234_v6  ;;  %v3275_v1 = vld [vmem:[#allocation15 + $0x10] sm:$0xff]   ;;  %v3280_v6 = vld [vmem:[#allocation15 + $0x88] sm:$0xff]  }
 0x8ee   : > { %2047 = vmatprep.subr.bf16.mxu0 %v3231_v5  ;;  %v3279_v5 = vld [vmem:[#allocation15 + $0x8] sm:$0xff]  }
 0x8f0   : > { %2091 = vmatpush1.bf16.msra.mxu1 %v3232_v36  ;;  %v3282_v36 = vld [vmem:[#allocation15 + $0xc0] sm:$0xff]  }
 0x8f1   : > { %2048 = vmatpush1.bf16.msra.mxu0 %v3229_v7  ;;  %2092 = vmatprep.subr.bf16.mxu1 %v3240_v11  ;;  %v3281_v7 = vld [vmem:[#allocation15 + $0x40] sm:$0xff]  }
 0x8f2   : > { %2049 = vmatprep.subr.bf16.mxu0 %v3237_v8  ;;  %v3283_v8 = vld [vmem:[#allocation15] sm:$0xff]  }
 0x8f3   : > { %v3284_v11 = vld [vmem:[#allocation15 + $0x80] sm:$0xff]  }
 0x8f4   : > { %2093 = vmatpush1.bf16.msra.mxu1 %v3238_v9  ;;  %v1857_v9 = vld [vmem:[%s4201_s10] sm:$0xf] }
 0x99f   : > { %v1764_v23 = vpop.f32.mrf.mxu1 }
 0x9a0   : > { %v1771_v34 = vadd.f32 %v1764_v23, %v1574_v12  ;;  %v3235_v12 = vld [vmem:[#allocation13 + $0x40] ss:$16 sps:$4 sm:$0xff]   ;;  %v2757_v23 = vld [vmem:[%s4198_s7] ss:$0 sm:$0xff] }
 0x9a1   : > { %v3016_v35 = vpop.f32.mrf.mxu1  ;;  %2050 = vmatpush1.bf16.msra.mxu0 %v3235_v12  ;;  %v1869_v12 = vsub.s32 2, %v3943_v13 }
 0x9a2   : > { %v1780_v38 = vadd.f32 %v2756_v42, %v1771_v34  ;;  %2051 = vmatprep.subr.bf16.mxu0 %v3243_v15  ;;  %v1873_v15 = vsub.s32 3, %v3943_v13 }
 0x9a3   : > { %v1767_v39 = vpop.f32.mrf.mxu1 }
 0x9a4   : > { %v1772_v40 = vadd.f32 %v1767_v39, %v1575_v18  ;;  %v4096_v43 = vadd.f32 %v3345_v41, %v1780_v38  ;;  %v3246_v18 = vld [vmem:[#allocation13 + $0x2c] ss:$16 sps:$4 sm:$0xff]  }
 0x9a5   : > { %v3017_v44 = vpop.f32.mrf.mxu1  ;;  %2094 = vmatprep.subr.bf16.mxu1 %v3246_v18  ;;  %2052 = vmatpush1.bf16.msra.mxu0 %v3241_v19  ;;  %v2758_v38 = vld [vmem:[%s4199_s8] ss:$0 sm:$0xff]  ;;  %v1862_v18 = vrot.slane %v1857_v9, %v592_v14  ;;  %v1870_v19 = vrot.slane %v1857_v9, %v1869_v12 }
 0x9a6   : > { %v1781_v45 = vadd.f32 %v2756_v42, %v1772_v40  ;;  %1786 = vadd.xlane.f32.xlu1 %v4096_v43  ;;  %2095 = vmatpush1.bf16.msra.mxu1 %v3244_v20 }
 0x9a7   : > { %2053 = vmatprep.subr.bf16.mxu0 %v3249_v21  ;;  %2096 = vmatprep.subr.bf16.mxu1 %v3252_v24  ;;  %v1866_v24 = vrot.slane %v1857_v9, %v630_v16 }
 0x9a8   : > { %v4100_v46 = vadd.f32 %v3346_v22, %v1781_v45  ;;  %v3253_v45 = vld [vmem:[#allocation15 + $0x78] sm:$0xff]  }
 0x9a9   : > { %2054 = vmatpush1.bf16.msra.mxu0 %v3247_v25  ;;  %v3254_v22 = vld [vmem:[#allocation15 + $0xf8] sm:$0xff]   ;;  %v1874_v25 = vrot.slane %v1857_v9, %v1873_v15 }
 0x9aa   : > { %1788 = vadd.xlane.f32.xlu0 %v4100_v46  ;;  %2097 = vmatpush1.bf16.msra.mxu1 %v3250_v26 }
 0x9ab   : > { %2874 = vmatprep.subr.bf16.mxu0 %v3253_v45  ;;  %2896 = vmatprep.subr.bf16.mxu1 %v3254_v22 }
 0xa2f   : > { %v1787_v50 = vpop.xlane.xlu1 %1786 }
 0xa30   : > { %v1790_v28 = vmul.f32 0.0078125, %v1787_v50  ;;  %v3259_v50 = vld [vmem:[#allocation15 + $0x30] sm:$0xff]  }
 0xa32   : > { %v4104_v51 = vsub.f32 %v4096_v43, %v1790_v28  ;;  %v3260_v28 = vld [vmem:[#allocation15 + $0xb0] sm:$0xff]  }
 0xa33   : > { %v1789_v52 = vpop.xlane.xlu0 %1788 }
 0xa34   : > { %v1791_v53 = vmul.f32 0.0078125, %v1789_v52  ;;  %v1794_v54 = vmul.f32 %v4104_v51, %v4104_v51  ;;  %v3262_v52 = vld [vmem:[#allocation15 + $0xe8] sm:$0xff]  }
 0xa36   : > { %v4109_v55 = vsub.f32 %v4100_v46, %v1791_v53  ;;  %1796 = vadd.xlane.f32.xlu1 %v1794_v54  ;;  %v3263_v53 = vld [vmem:[#allocation15 + $0x28] sm:$0xff]  }
 0xa37   : > { %v3264_v54 = vld [vmem:[#allocation15 + $0xa8] sm:$0xff]  }
 0xa38   : > { %v1795_v56 = vmul.f32 %v4109_v55, %v4109_v55 }
 0xa3a   : > { %1798 = vadd.xlane.f32.xlu0 %v1795_v56  ;;  %v3266_v56 = vld [vmem:[#allocation15 + $0xe0] sm:$0xff]  }
 0xabf   : > { %v1797_v27 = vpop.xlane.xlu1 %1796 }
 0xac0   : > { %v1800_v29 = vmul.f32 0.0078125, %v1797_v27 }
 0xac2   : > { %v1802_v10 = vadd.f32 1e-06, %v1800_v29 }
 0xac3   : > { %v1799_v30 = vpop.xlane.xlu0 %1798 }
 0xac4   : > { %3325 = vrsqrt.f32 %v1802_v10  ;;  %v1801_v31 = vmul.f32 0.0078125, %v1799_v30 }
 0xac6   : > { %v1803_v32 = vadd.f32 1e-06, %v1801_v31 }
 0xac8   : > { %3327 = vrsqrt.f32 %v1803_v32 }
 0xad1   : > { %v3326_v17 = vpop.eup %3325 }
 0xad2   : > { %v1806_v33 = vmul.f32 %v3326_v17, %v4104_v51  ;;  %v3261_v51 = vld [vmem:[#allocation15 + $0x68] sm:$0xff]  }
 0xad4   : > { %v1814_v35 = vmul.f32 %v2757_v23, %v1806_v33 }
 0xad5   : > { %v3328_v42 = vpop.eup %3327 }
 0xad6   : > { %v1807_v34 = vmul.f32 %v3328_v42, %v4109_v55  ;;  %v1822_v40 = vadd.f32 %v2758_v38, %v1814_v35  ;;  %v3265_v55 = vld [vmem:[#allocation15 + $0x60] sm:$0xff]  }
 0xad8   : > { %v1815_v39 = vmul.f32 %v2757_v23, %v1807_v34 }
 0xada   : > { %v1823_v41 = vadd.f32 %v2758_v38, %v1815_v39 }
 0xadc   : > { %v1824_v44 = vpack.c.bf16 %v1823_v41, %v1822_v40 }
 0xade   : > { %2072 = vmatmul.mubr.bf16.vlgmr.msra.gmra.mxu0 %v1824_v44  ;;  %2115 = vmatmul.mubr.bf16.vlgmr.msra.gmra.mxu1 %v1824_v44 }
 0xadf   : > { %2875 = vmatpush3.bf16.msra.mxu0 %v3255_v37  ;;  %2897 = vmatpush3.bf16.msra.mxu1 %v3256_v47 }
 0xae0   : > { %2876 = vmatprep.subr.bf16.mxu0 %v3257_v48  ;;  %2898 = vmatprep.subr.bf16.mxu1 %v3258_v49 }
 0xae3   : > { %2877 = vmatpush3.bf16.msra.mxu0 %v3259_v50  ;;  %2899 = vmatpush3.bf16.msra.mxu1 %v3260_v28 }
 0xae4   : > { %2878 = vmatprep.subr.bf16.mxu0 %v3261_v51  ;;  %2900 = vmatprep.subr.bf16.mxu1 %v3262_v52 }
 0xae7   : > { %2879 = vmatpush3.bf16.msra.mxu0 %v3263_v53  ;;  %2901 = vmatpush3.bf16.msra.mxu1 %v3264_v54 }
 0xae8   : > { %2880 = vmatprep.subr.bf16.mxu0 %v3265_v55  ;;  %2902 = vmatprep.subr.bf16.mxu1 %v3266_v56 }
 0xaeb   : > { %2881 = vmatpush3.bf16.msra.mxu0 %v3267_v57  ;;  %2903 = vmatpush3.bf16.msra.mxu1 %v3268_v58 }
 0xaec   : > { %2882 = vmatprep.subr.bf16.mxu0 %v3269_v59  ;;  %2904 = vmatprep.subr.bf16.mxu1 %v3270_v60 }
 0xaef   : > { %2883 = vmatpush3.bf16.msra.mxu0 %v3271_v61  ;;  %2905 = vmatpush3.bf16.msra.mxu1 %v3272_v62 }
 0xaf0   : > { %2884 = vmatprep.subr.bf16.mxu0 %v3273_v63  ;;  %2906 = vmatprep.subr.bf16.mxu1 %v3274_v0 }
 0xaf3   : > { %2885 = vmatpush3.bf16.msra.mxu0 %v3275_v1  ;;  %2907 = vmatpush3.bf16.msra.mxu1 %v3276_v2 }
 0xaf4   : > { %2886 = vmatprep.subr.bf16.mxu0 %v3277_v3  ;;  %2908 = vmatprep.subr.bf16.mxu1 %v3278_v4 }
 0xaf7   : > { %2887 = vmatpush3.bf16.msra.mxu0 %v3279_v5  ;;  %2909 = vmatpush3.bf16.msra.mxu1 %v3280_v6 }
 0xaf8   : > { %2888 = vmatprep.subr.bf16.mxu0 %v3281_v7  ;;  %2910 = vmatprep.subr.bf16.mxu1 %v3282_v36 }
 0xafb   : > { %2889 = vmatpush3.bf16.msra.mxu0 %v3283_v8  ;;  %2911 = vmatpush3.bf16.msra.mxu1 %v3284_v11 }
 0xb9e   : > { %v2073_v20 = vpop.f32.mrf.mxu0  ;;  %v2116_v21 = vpop.f32.mrf.mxu1 }
 0xb9f   : > { %v2074_v26 = vadd.f32 %v2073_v20, %v1862_v18  ;;  %v2117_v27 = vadd.f32 %v2116_v21, %v1870_v19 }
 0xba0   : > { %v2075_v29 = vpop.f32.mrf.mxu0  ;;  %v2118_v10 = vpop.f32.mrf.mxu1 }
 0xba1   : > { %v2133_v30 = vmul.f32 0.70710677, %v2074_v26  ;;  %v2135_v31 = vmul.f32 0.70710677, %v2117_v27  ;;  %v2076_v32 = vadd.f32 %v2075_v29, %v1866_v24  ;;  %v2119_v17 = vadd.f32 %v2118_v10, %v1874_v25 }
 0xba2   : > { %v2077_v33 = vpop.f32.mrf.mxu0  ;;  %v2120_v23 = vpop.f32.mrf.mxu1  ;;  %v2125_v28 = vmul.f32 0.5, %v2074_v26  ;;  %v2127_v4 = vmul.f32 0.5, %v2117_v27 }
 0xba3   : > { %v2078_v42 = vadd.f32 %v2077_v33, %v1862_v18  ;;  %v2121_v34 = vadd.f32 %v2120_v23, %v1870_v19  ;;  %3329 = verf.f32 %v2133_v30  ;;  %v2134_v14 = vmul.f32 0.70710677, %v2076_v32 }
 0xba4   : > { %v2079_v35 = vpop.f32.mrf.mxu0  ;;  %v2122_v38 = vpop.f32.mrf.mxu1  ;;  %3331 = verf.f32 %v2135_v31  ;;  %v2136_v13 = vmul.f32 0.70710677, %v2119_v17  ;;  %v2126_v51 = vmul.f32 0.5, %v2076_v32  ;;  %v2128_v0 = vmul.f32 0.5, %v2119_v17 }
 0xba5   : > { %v2137_v16 = vmul.f32 0.70710677, %v2078_v42  ;;  %3333 = verf.f32 %v2134_v14  ;;  %v2139_v39 = vmul.f32 0.70710677, %v2121_v34  ;;  %v2080_v40 = vadd.f32 %v2079_v35, %v1866_v24  ;;  %v2791_v24 = vld [vmem:[%s4240_s9] ss:$0 sm:$0xff] }
 0xba6   : > { %v2123_v41 = vadd.f32 %v2122_v38, %v1874_v25  ;;  %3335 = verf.f32 %v2136_v13  ;;  %v2129_v57 = vmul.f32 0.5, %v2078_v42  ;;  %v2131_v61 = vmul.f32 0.5, %v2121_v34 }
 0xba7   : > { %3337 = verf.f32 %v2137_v16  ;;  %v2138_v44 = vmul.f32 0.70710677, %v2080_v40  ;;  %v2130_v62 = vmul.f32 0.5, %v2080_v40 }
 0xba8   : > { %3339 = verf.f32 %v2139_v39  ;;  %v2140_v45 = vmul.f32 0.70710677, %v2123_v41  ;;  %v2132_v2 = vmul.f32 0.5, %v2123_v41 }
 0xba9   : > { %3341 = verf.f32 %v2138_v44 }
 0xbaa   : > { %3343 = verf.f32 %v2140_v45 }
 0xbb0   : > { %v3330_v22 = vpop.eup %3329 }
 0xbb1   : > { %v3332_v37 = vpop.eup %3331  ;;  %v2149_v55 = vadd.f32 1.0, %v3330_v22 }
 0xbb2   : > { %v3334_v47 = vpop.eup %3333  ;;  %v2151_v60 = vadd.f32 1.0, %v3332_v37 }
 0xbb3   : > { %v3336_v48 = vpop.eup %3335  ;;  %v2150_v52 = vadd.f32 1.0, %v3334_v47  ;;  %v2157_v36 = vmul.f32 %v2149_v55, %v2125_v28 }
 0xbb4   : > { %v3338_v49 = vpop.eup %3337  ;;  %v2152_v56 = vadd.f32 1.0, %v3336_v48  ;;  %v2159_v12 = vmul.f32 %v2151_v60, %v2127_v4 }
 0xbb5   : > { %v3340_v50 = vpop.eup %3339  ;;  %v2153_v53 = vadd.f32 1.0, %v3338_v49  ;;  %v2158_v5 = vmul.f32 %v2150_v52, %v2126_v51 }
 0xbb6   : > { %v3342_v54 = vpop.eup %3341  ;;  %v2155_v58 = vadd.f32 1.0, %v3340_v50  ;;  %v2160_v8 = vmul.f32 %v2152_v56, %v2128_v0 }
 0xbb7   : > { %v3344_v59 = vpop.eup %3343  ;;  %v2154_v63 = vadd.f32 1.0, %v3342_v54  ;;  %v2161_v1 = vmul.f32 %v2153_v53, %v2129_v57 }
 0xbb8   : > { %v2156_v3 = vadd.f32 1.0, %v3344_v59  ;;  %v2163_v6 = vmul.f32 %v2155_v58, %v2131_v61 }
 0xbb9   : > { %v2162_v7 = vmul.f32 %v2154_v63, %v2130_v62  ;;  %v2165_v15 = vpack.c.bf16 %v2161_v1, %v2157_v36 }
 0xbba   : > { %v2164_v11 = vmul.f32 %v2156_v3, %v2132_v2  ;;  %v2167_v19 = vpack.c.bf16 %v2163_v6, %v2159_v12 }
 0xbbb   : > { %v2166_v9 = vpack.c.bf16 %v2162_v7, %v2158_v5 }
 0xbbc   : > { %v2168_v18 = vpack.c.bf16 %v2164_v11, %v2160_v8 }
 0xbbd   : > { %2464 = vmatprep.mubr.bf16.mxu0 %v2166_v9 }
 0xbbe   : > { %2505 = vmatprep.mubr.bf16.mxu1 %v2168_v18  ;;  %2465 = vmatmul.mubr.bf16.vlgmr.msra.gmra.mxu0 %v2165_v15 }
 0xbbf   : > { %2506 = vmatmul.mubr.bf16.vlgmr.msra.gmra.mxu1 %v2167_v19 }
 0xc7e   : > { %v2890_v20 = vpop.f32.mrf.mxu0 }
 0xc7f   : > { %v2912_v21 = vpop.f32.mrf.mxu1 }
 0xc80   : > { %v2891_v25 = vpop.f32.mrf.mxu0 }
 0xc81   : > { %v2892_v26 = vadd.f32 %v2891_v25, %v2890_v20  ;;  %v2913_v27 = vpop.f32.mrf.mxu1 }
 0xc82   : > { %v2893_v29 = vpop.f32.mrf.mxu0  ;;  %v2914_v30 = vadd.f32 %v2913_v27, %v2912_v21 }
 0xc83   : > { %v2467_v10 = vadd.f32 %v2892_v26, %v2791_v24  ;;  %v2915_v31 = vpop.f32.mrf.mxu1 }
 0xc84   : > { %v2894_v32 = vpop.f32.mrf.mxu0 }
 0xc85   : > { %v2508_v17 = vadd.f32 %v2914_v30, %v2467_v10  ;;  %v2895_v33 = vadd.f32 %v2894_v32, %v2893_v29  ;;  %v2916_v23 = vpop.f32.mrf.mxu1 }
 0xc86   : > { %v2917_v14 = vadd.f32 %v2916_v23, %v2915_v31 }
 0xc87   : > { %v2514_v42 = vadd.f32 %v2508_v17, %v4096_v43  ;;  %v2470_v34 = vadd.f32 %v2895_v33, %v2791_v24 }
 0xc89   : > { %2516 = vst [vmem:[%s555_s16] sm:$0xff] %v2514_v42  ;;  %v2511_v35 = vadd.f32 %v2917_v14, %v2470_v34 }
 0xc8b   : > { %v2515_v38 = vadd.f32 %v2511_v35, %v4100_v46 }
 0xc8d   : > { %2517 = vst [vmem:[%s555_s16 + $0x8] sm:$0xff] %v2515_v38 }
 0xc8e   : > { %3544 = shalt.err (!%p3541_p6)
}
 0xc8f   : > { %s3545_s2 = scalar_lea.hbm %s4142_s12, 256  ;;  %s3549_s15 = scalar_lea.hbm %s4242_s21, 512 }
 0xc90   : > { %p3546_p12 = scmp.ne.s32.totalorder %s4142_s12, %s3545_s2  ;;  %p3550_p4 = scmp.lt.s32.totalorder %s4142_s12, %s4242_s21 }
 0xc91   : > { %p3551_p1 = scmp.lt.s32.totalorder %s3549_s15, %s3545_s2 }
 0xc92   : > { %p3547_p13 = pnand %p3546_p12, %p3850_p2 }
 0xc93   : > { %p3552_p0 = por %p3551_p1, %p3550_p4 }
 0xc94   : > { %p3548_p11 = pneg %p3547_p13 }
 0xc96   : > { %p3553_p5 = pnand %p3552_p0, %p3548_p11 }
 0xc98   : > { %3556 = shalt.err (!%p3553_p5)
}
 0xc99   : > { %s3647_s13 = smov 128   ;;  %s3648_s24 = smov 8  }
 0xc9a   : > { %3044 = dma.vmem_to_hbm [thread:$0]  (%p3850_p2), %s4137_s20, 256, %s4142_s12, %s2519_s11, %s3647_s13, %s3647_s13, %s3648_s24  }
 0xc9b PF: > { %s2549_s3 = sand.u32 1, %s3603_s25   ;;  %p4243_p7 = scmp.ge.s32.totalorder %s3623_s30, 2 }
 0xc9c   : > { %s2550_s28 = scalar_lea.sflag [#allocation6], %s2549_s3 }
 0xc9d   : > { %p3070_p9 = pnand %p4243_p7, %p3857_p3 }
 0xc9f   : > { %p3071_p8 = pneg %p3070_p9 }
 0xca1   : > { %3598 = dma.done.wait (%p3071_p8), %s2550_s28, 256  }
 0xca2   : > { %3600 = vsyncadd (%p3071_p8), %s2550_s28, 4294967040  ;;  %s32_s30 = sadd.s32 1, %s3623_s30   ;;  %s4244_s14 = sld [smem:[#allocation23_spill]] }
 0xca3   : > { %p29_p10 = scmp.ge.s32.totalorder %s32_s30, 4   ;;  %s4245_s25 = smov %s3607_s26 }
 0xca4   : > { %s4246_s26 = smov %s3611_s27  ;;  %s4247_s27 = smov %s3855_s17 }
 0xca5   : > { %s4248_s28 = smov %s3619_s29  ;;  %31 = sbr.rel (!%p29_p10) target bundleno = 18 (0x12), region = 161 }
 0xca8   : > { %s4249_s29 = smov %s4244_s14 }
 0xcaa   :  { %2555 = vsyncpa [#allocation5], 1 }
 0xcab   :  { %2557 = vsyncpa [#allocation5 + $0x1], 1 }
 0xcac   :  { %2558 = vsyncpa [#allocation8], 1 }
 0xcad   :  { %2559 = vsyncpa [#allocation11], 1 }
 0xcae   :  { %2560 = vsyncpa [#allocation14], 1 }
 0xcaf   :  { %2561 = vsyncpa [#allocation6], 1 }
 0xcb0   :  { %2563 = vsyncpa [#allocation6 + $0x1], 1 }

// kernel: tpu_custom_call.1
= control target key start
LH: loop header
LB: loop body
LE: loop exit
PB: predicated region body
PF: predicated region fallthrough
CT: control target
= control target key end

     0   :  { %s4191_s0 = inlined_call_operand.hbm [shape: f32[2,16,128], index: 0, kind: input, shape index: {}]   ;;  %s4192_s1 = inlined_call_operand.hbm [shape: f32[1,128], index: 1, kind: input, shape index: {}]   ;;  %s4193_s2 = inlined_call_operand.hbm [shape: f32[1,128], index: 2, kind: input, shape index: {}]   ;;  %s4194_s3 = inlined_call_operand.hbm [shape: bf16[128,384], index: 3, kind: input, shape index: {}]   ;;  %s4195_s4 = inlined_call_operand.vmem [shape: f32[1,384], index: 4, kind: input, shape index: {}]   ;;  %s4196_s5 = inlined_call_operand.hbm [shape: bf16[4,32,128], index: 5, kind: input, shape index: {}]   ;;  %s4197_s6 = inlined_call_operand.vmem [shape: f32[1,128], index: 6, kind: input, shape index: {}]   ;;  %s4198_s7 = inlined_call_operand.vmem [shape: f32[1,128], index: 7, kind: input, shape index: {}]   ;;  %s4199_s8 = inlined_call_operand.vmem [shape: f32[1,128], index: 8, kind: input, shape index: {}]   ;;  %s4200_s9 = inlined_call_operand.hbm [shape: bf16[128,512], index: 9, kind: input, shape index: {}]   ;;  %s4201_s10 = inlined_call_operand.vmem [shape: f32[1,512], index: 10, kind: input, shape index: {}]   ;;  %s4202_s11 = inlined_call_operand.hbm [shape: bf16[512,128], index: 11, kind: input, shape index: {}]   ;;  %s4203_s12 = inlined_call_operand.vmem [shape: f32[1,128], index: 12, kind: input, shape index: {}]   ;;  %s4204_s13 = inlined_call_operand.hbm [shape: f32[2,16,128], index: 13, kind: output, shape index: {}]  }
   0x1   :  { %4211 = sst [smem:[#allocation24_spill]] %s4192_s1 }
   0x2   :  { %4212 = sst [smem:[#allocation25_spill]] %s4193_s2 }
   0x3   :  { %4213 = sst [smem:[#allocation26_spill]] %s4194_s3 }
   0x4   :  { %4214 = sst [smem:[#allocation27_spill]] %s4196_s5 }
   0x5   :  { %4215 = sst [smem:[#allocation28_spill]] %s4200_s9 }
   0x6   :  { %4216 = sst [smem:[#allocation29_spill]] %s4202_s11 }
   0x7   :  { %4217 = sst [smem:[#allocation30_spill]] %s4203_s12 }
   0x8   :  { %4218 = sst [smem:[#allocation31_spill]] %s4204_s13 }
   0x9   :  { %18 = vsyncpa [#allocation5], 0 }
   0xa   :  { %20 = vsyncpa [#allocation5 + $0x1], 0 }
   0xb   :  { %21 = vsyncpa [#allocation8], 0 }
   0xc   :  { %22 = vsyncpa [#allocation11], 0 }
   0xd   :  { %23 = vsyncpa [#allocation14], 0 }
   0xe   :  { %24 = vsyncpa [#allocation6], 0 }
   0xf   :  { %26 = vsyncpa [#allocation6 + $0x1], 0  ;;  %s3719_s25 = smov 0   ;;  %s3721_s26 = smov 0  }
  0x10   :  { %s3723_s27 = smov 0   ;;  %s3725_s28 = smov 0  }
  0x11   :  { %s3727_s29 = smov 0   ;;  %s3729_s30 = smov 0  }
  0x12 LB: > { %4219 = sst [smem:[#allocation22_spill]] %s3615_s28  ;;  %s4205_s14 = sadd.s32 4294967295, %s3623_s30   ;;  %s3623_s30 = sphi %s3729_s30, %s32_s30   ;;  %s3619_s29 = sphi %s3727_s29, %s4249_s29   ;;  %s3615_s28 = sphi %s3725_s28, %s4248_s28   ;;  %s3611_s27 = sphi %s3723_s27, %s4247_s27   ;;  %s3607_s26 = sphi %s3721_s26, %s4246_s26   ;;  %s3603_s25 = sphi %s3719_s25, %s4245_s25  }
  0x13   : > { %p2679_p0 = scmp.ge.s32.totalorder %s3623_s30, 1  ;;  %p3753_p1 = scmp.eq.s32.totalorder %s4205_s14, 0 }
  0x14   : > { %p355_p2 = scmp.lt.s32.totalorder %s3623_s30, 3  ;;  %s3625_s17 = smov [#allocation7]  }
  0x15   : > { %s4220_s15 = scalar_select %p3753_p1, 1, 0 }
  0x16   : > { %p3758_p3 = pnand %p2679_p0, %p355_p2  ;;  %s368_s18 = sshll.u32 %s3625_s17, 4  ;;  %s369_s18 = int_to_ptr.vmem [resolvable:$true] %s368_s18 }
  0x17   : > { %s3626_s19 = smov [#allocation10]   ;;  %s3627_s22 = smov [#allocation13]  }
  0x18   : > { %s4221_s16 = scalar_select %p3758_p3, 1, 0 }
  0x19   : > { %p3046_p5 = pneg %p3758_p3  ;;  %s389_s20 = sshll.u32 %s3626_s19, 4  ;;  %s3771_s20 = int_to_ptr.vmem [resolvable:$true] %s389_s20 }
  0x1a   : > { %s427_s23 = sshll.u32 %s3627_s22, 4  ;;  %s3358_s17 = scalar_lea.vmem %s369_s18, 16  ;;  %s428_s23 = int_to_ptr.vmem [resolvable:$true] %s427_s23 }
  0x1b   : > { %p3767_p6 = pnand %p3046_p5, %p3753_p1  ;;  %p3359_p8 = scmp.ne.s32.totalorder %s369_s18, %s3358_s17 }
  0x1c   : > { %s3365_s19 = scalar_lea.vmem %s369_s18, 32  ;;  %p3366_p11 = scmp.lt.s32.totalorder %s369_s18, %s369_s18 }
  0x1d   : > { %p3775_p7 = pneg %p3767_p6  ;;  %p3367_p12 = scmp.lt.s32.totalorder %s3365_s19, %s3358_s17 }
  0x1f   : > { %p3361_p9 = pnand %p3359_p8, %p3775_p7  ;;  %p3368_p13 = por %p3367_p12, %p3366_p11 }
  0x21   : > { %p3362_p10 = pneg %p3361_p9 }
  0x23   : > { %p3369_p0 = pnand %p3368_p13, %p3362_p10 }
  0x25   : > { %3372 = shalt.err (!%p3369_p0)
}
  0x26   : > { %s4224_s1 = sld [smem:[#allocation24_spill]]  ;;  %s3384_s13 = scalar_lea.vmem %s3771_s20, 3072 }
  0x27   : > { %p3385_p2 = scmp.ne.s32.totalorder %s3771_s20, %s3384_s13  ;;  %p3392_p9 = scmp.lt.s32.totalorder %s3771_s20, %s3771_s20 }
  0x28   : > { %p3393_p11 = scmp.lt.s32.totalorder %s3384_s13, %s3384_s13 }
  0x29   : > { %p3387_p5 = pnand %p3385_p2, %p3775_p7 }
  0x2a   : > { %p3394_p10 = por %p3393_p11, %p3392_p9 }
  0x2b   : > { %p3388_p8 = pneg %p3387_p5 }
  0x2c   : > { %3049 = dma.hbm_to_vmem [thread:$0]  (!%p3767_p6), %s4224_s1, 16, %s369_s18, [#allocation8]  }
  0x2d   : > { %p3395_p12 = pnand %p3394_p10, %p3388_p8 }
  0x2f   : > { %3398 = shalt.err (!%p3395_p12)
}
  0x30   : > { %s3628_s17 = smov 192   ;;  %s3629_s14 = smov 12  }
  0x31   : > { %s4225_s3 = sld [smem:[#allocation26_spill]]  ;;  %s3410_s18 = scalar_lea.vmem %s428_s23, 4096 }
  0x32   : > { %p3411_p13 = scmp.ne.s32.totalorder %s428_s23, %s3410_s18  ;;  %p3418_p5 = scmp.lt.s32.totalorder %s428_s23, %s428_s23 }
  0x33   : > { %p3419_p9 = scmp.lt.s32.totalorder %s3410_s18, %s3410_s18 }
  0x34   : > { %p3413_p0 = pnand %p3411_p13, %p3775_p7 }
  0x35   : > { %p3420_p8 = por %p3419_p9, %p3418_p5 }
  0x36   : > { %p3414_p2 = pneg %p3413_p0 }
  0x37   : > { %3055 = dma.hbm_to_vmem [thread:$0]  (!%p3767_p6), %s4225_s3, 3072, %s3771_s20, [#allocation11], %s3628_s17, %s3628_s17, %s3629_s14  }
  0x38   : > { %p3421_p11 = pnand %p3420_p8, %p3414_p2 }
  0x3a   : > { %3424 = shalt.err (!%p3421_p11)
}
  0x3b   : > { %s3630_s13 = smov 256   ;;  %s3631_s1 = smov 16  }
  0x3c   : > { %s4226_s9 = sld [smem:[#allocation28_spill]]  ;;  %s3632_s20 = smov [#allocation9]  }
  0x3d   : > { %s379_s17 = sshll.u32 %s3632_s20, 4  ;;  %s3633_s14 = smov [#allocation12]   ;;  %s380_s17 = int_to_ptr.vmem [resolvable:$true] %s379_s17 }
  0x3e   : > { %s405_s19 = sshll.u32 %s3633_s14, 4  ;;  %s3436_s22 = scalar_lea.vmem %s380_s17, 16  ;;  %s406_s19 = int_to_ptr.vmem [resolvable:$true] %s405_s19 }
  0x3f   : > { %p3437_p10 = scmp.ne.s32.totalorder %s380_s17, %s3436_s22  ;;  %s3443_s18 = scalar_lea.vmem %s380_s17, 32 }
  0x40   : > { %p3444_p0 = scmp.lt.s32.totalorder %s380_s17, %s380_s17  ;;  %p3445_p2 = scmp.lt.s32.totalorder %s3443_s18, %s3436_s22 }
  0x41   : > { %p3439_p12 = pnand %p3437_p10, %p3775_p7 }
  0x42   : > { %3061 = dma.hbm_to_vmem [thread:$0]  (!%p3767_p6), %s4226_s9, 4096, %s428_s23, [#allocation14], %s3630_s13, %s3630_s13, %s3631_s1  }
  0x43   : > { %p3440_p13 = pneg %p3439_p12  ;;  %p3446_p5 = por %p3445_p2, %p3444_p0 }
  0x45   : > { %p3447_p9 = pnand %p3446_p5, %p3440_p13 }
  0x47   : > { %3450 = shalt.err (!%p3447_p9)
}
  0x48   : > { %s4227_s2 = sld [smem:[#allocation25_spill]]  ;;  %s3462_s28 = scalar_lea.vmem %s406_s19, 1024 }
  0x49   : > { %p3463_p8 = scmp.ne.s32.totalorder %s406_s19, %s3462_s28  ;;  %p3470_p12 = scmp.lt.s32.totalorder %s406_s19, %s406_s19 }
  0x4a   : > { %p3471_p4 = scmp.lt.s32.totalorder %s3462_s28, %s3462_s28 }
  0x4b   : > { %p3465_p11 = pnand %p3463_p8, %p3775_p7 }
  0x4c   : > { %p3472_p3 = por %p3471_p4, %p3470_p12 }
  0x4d   : > { %p3466_p10 = pneg %p3465_p11 }
  0x4e   : > { %3052 = dma.hbm_to_vmem [thread:$0]  (!%p3767_p6), %s4227_s2, 16, %s380_s17, [#allocation8]  }
  0x4f   : > { %p3473_p1 = pnand %p3472_p3, %p3466_p10 }
  0x51   : > { %3476 = shalt.err (!%p3473_p1)
}
  0x52   : > { %s3634_s23 = smov 64   ;;  %s3635_s13 = smov 4  }
  0x53   : > { %s4228_s5 = sld [smem:[#allocation27_spill]]  ;;  %s3636_s17 = smov [#allocation15]  }
  0x54   : > { %s443_s22 = sshll.u32 %s3636_s17, 4  ;;  %s444_s22 = int_to_ptr.vmem [resolvable:$true] %s443_s22 }
  0x55   : > { %s3488_s18 = scalar_lea.vmem %s444_s22, 4096  ;;  %p3496_p4 = scmp.lt.s32.totalorder %s444_s22, %s444_s22 }
  0x56   : > { %p3489_p13 = scmp.ne.s32.totalorder %s444_s22, %s3488_s18  ;;  %p3497_p3 = scmp.lt.s32.totalorder %s3488_s18, %s3488_s18 }
  0x58   : > { %p3491_p0 = pnand %p3489_p13, %p3775_p7  ;;  %p3498_p1 = por %p3497_p3, %p3496_p4 }
  0x59   : > { %3058 = dma.hbm_to_vmem [thread:$0]  (!%p3767_p6), %s4228_s5, 1024, %s406_s19, [#allocation11], %s3634_s23, %s3634_s23, %s3635_s13  }
  0x5a   : > { %p3492_p2 = pneg %p3491_p0 }
  0x5c   : > { %p3499_p5 = pnand %p3498_p1, %p3492_p2 }
  0x5e   : > { %3502 = shalt.err (!%p3499_p5)
}
  0x5f   : > { %s4229_s11 = sld [smem:[#allocation29_spill]]  ;;  %s2678_s24 = sadd.s32 4294967294, %s3623_s30  }
  0x60   : > { %s44_s19 = sadd.s32 1, %s3619_s29  ;;  %s51_s21 = sadd.s32 1, %s3611_s27 }
  0x61   : > { %p46_p7 = scmp.ge.s32.totalorder %s44_s19, 2  ;;  %p58_p9 = scmp.ne.s32.totalorder %s3611_s27, %s3607_s26 }
  0x62   : > { %p59_p8 = scmp.eq.s32.totalorder %s3623_s30, 0  ;;  %p64_p10 = scmp.ne.s32.totalorder %s3607_s26, %s3603_s25 }
  0x63   : > { %s4251_s19 = smov (%p46_p7, %s44_s19), 0  ;;  %p4233_p13 = scmp.ne.s32.totalorder %s4220_s15, 0 }
  0x64   : > { %4230 = sst [smem:[#allocation23_spill]] %s4251_s19  ;;  %p3834_p11 = por %p59_p8, %p58_p9 }
  0x65   : > { %3064 = dma.hbm_to_vmem [thread:$0]  (!%p3767_p6), %s4229_s11, 4096, %s444_s22, [#allocation14], %s3634_s23, %s3634_s23, %s3635_s13  }
  0x66   : > { %s48_s23 = ssub.s32 %s3619_s29, %s4251_s19  ;;  %s4232_s13 = sadd.s32 4294967295, %s3623_s30  }
  0x67   : > { %p342_p6 = scmp.eq.s32.totalorder %s4232_s13, 1  ;;  %p49_p12 = scmp.eq.s32.totalorder %s48_s23, 0 }
  0x68   : > { %p3846_p0 = por %p4233_p13, %p64_p10  ;;  %p348_p4 = scmp.eq.s32.totalorder %s2678_s24, 1 }
  0x69   : > { %p3850_p2 = por %p342_p6, %p58_p9  ;;  %p3079_p1 = scmp.lt.s32.totalorder %s3623_s30, 2 }
  0x6a   : > { %s3855_s17 = scalar_select %p49_p12, %s3611_s27, %s51_s21  }
  0x6b   : > { %p3857_p3 = por %p348_p4, %p64_p10  ;;  %s460_s18 = sand.u32 1, %s3611_s27  }
  0x6c   : > { %s2829_s12 = sshll.u32 %s3619_s29, 8  ;;  %s2687_s1 = sshll.u32 %s460_s18, 4 }
  0x6d   : > { %s470_s2 = scalar_lea.hbm %s4191_s0, %s2829_s12  ;;  %s464_s3 = scalar_lea.vmem [#allocation4], %s2687_s1 }
  0x6e   : > { %s471_s5 = sshll.u32 %s464_s3, 4  ;;  %p3869_p5 = pnand %p3079_p1, %p3834_p11  ;;  %s472_s5 = int_to_ptr.vmem [resolvable:$true] %s471_s5 }
  0x6f   : > { %s461_s24 = scalar_lea.sflag [#allocation5], %s460_s18  ;;  %s3516_s21 = scalar_lea.vmem %s472_s5, 256 }
  0x70   : > { %p3505_p7 = pneg %p3869_p5  ;;  %p3517_p9 = scmp.ne.s32.totalorder %s472_s5, %s3516_s21 }
  0x71   : > { %s3637_s11 = smov [#allocation4]  }
  0x72   : > { %p3519_p8 = pnand %p3517_p9, %p3505_p7  ;;  %s3521_s19 = sshll.u32 %s3637_s11, 4  ;;  %s3522_s19 = int_to_ptr.vmem [resolvable:$false] %s3521_s19 }
  0x73   : > { %s3523_s12 = scalar_lea.vmem %s3522_s19, 512  ;;  %p3524_p6 = scmp.lt.s32.totalorder %s472_s5, %s3522_s19 }
  0x74   : > { %p3520_p10 = pneg %p3519_p8  ;;  %p3525_p12 = scmp.lt.s32.totalorder %s3523_s12, %s3516_s21 }
  0x76   : > { %p3526_p13 = por %p3525_p12, %p3524_p6 }
  0x78   : > { %p3527_p11 = pnand %p3526_p13, %p3520_p10 }
  0x7a   : > { %3530 = shalt.err (!%p3527_p11)
}
  0x7b   : > { %s3638_s3 = smov 128   ;;  %s3639_s28 = smov 8  }
  0x7c   : > { %3068 = dma.hbm_to_vmem [thread:$0]  (!%p3869_p5), %s470_s2, 256, %s472_s5, %s461_s24, %s3638_s3, %s3638_s3, %s3639_s28  }
  0x7d   : > { %p4238_p4 = scmp.ne.s32.totalorder %s4221_s16, 0 }
  0x7e   : > { %s3880_s18 = sand.u32 (!%p4238_p4), 1, %s3607_s26  }
  0x7f   : > { %483 = sbr.rel (%p4238_p4) target bundleno = 3227 (0xc9b), region = 72  ;;  %s2691_s11 = sshll.u32 (!%p4238_p4), %s3880_s18, 4 }
  0x80   : > { %s486_s19 = scalar_lea.sflag (!%p4238_p4), [#allocation5], %s3880_s18  ;;  %s3886_s1 = scalar_lea.vmem (!%p4238_p4), [#allocation4], %s2691_s11 }
  0x84   : > { %3582 = dma.done.wait (%p3846_p0), %s486_s19, 256  }
  0x85   : > { %3584 = vsyncadd (%p3846_p0), %s486_s19, 4294967040  ;;  %p4239_p1 = scmp.ne.s32.totalorder %s4220_s15, 0 }
  0x87   : > { %3586 = dma.done.wait (%p4239_p1), [#allocation8], 32  }
  0x88   : > { %3588 = vsyncadd (%p4239_p1), [#allocation8], 4294967264 }
  0x89   : > { %3590 = dma.done.wait (%p4239_p1), [#allocation11], 4096  }
  0x8a   : > { %3592 = vsyncadd (%p4239_p1), [#allocation11], 4294963200 }
  0x8b   : > { %3594 = dma.done.wait (%p4239_p1), [#allocation14], 8192  }
  0x8c   : > { %3596 = vsyncadd (%p4239_p1), [#allocation14], 4294959104  ;;  %v564_v0 = vld [vmem:[%s3886_s1] sm:$0xff]  ;;  %v565_v1 = vld [vmem:[%s3886_s1 + $0x8] sm:$0xff]  ;;  %v3640_v23 = vmov 0.0   ;;  %v3641_v37 = vmov 0  }
  0x8d   : > { %566 = vadd.xlane.f32.xlu0 %v564_v0  ;;  %836 = vadd.xlane.f32.xlu1 %v564_v0  ;;  %v3157_v2 = vld [vmem:[#allocation10 + $0xb0] ss:$12 sps:$4 sm:$0xff]   ;;  %v3159_v3 = vld [vmem:[#allocation10 + $0xac] ss:$12 sps:$4 sm:$0xff]   ;;  %v3162_v21 = vld [vmem:[#allocation10 + $0x94] ss:$12 sps:$4 sm:$0xff]  }
  0x8e   : > { %714 = vmatprep.subr.bf16.mxu0 %v3157_v2  ;;  %v3160_v20 = vld [vmem:[#allocation10 + $0x98] ss:$12 sps:$4 sm:$0xff]   ;;  %v3163_v22 = vld [vmem:[#allocation10 + $0xa8] ss:$12 sps:$4 sm:$0xff]   ;;  %2918 = vmatprep.subr.bf16.mxu1 %v3640_v23  ;;  %v3164_v24 = vld [vmem:[#allocation10 + $0x80] ss:$12 sps:$4 sm:$0xff]  }
  0x8f   : > { %715 = vmatpush1.bf16.msra.mxu0 %v3159_v3  ;;  %2919 = vmatpush3.bf16.msra.mxu1 %v3163_v22  ;;  %v3166_v25 = vld [vmem:[#allocation10 + $0x7c] ss:$12 sps:$4 sm:$0xff]   ;;  %v3170_v28 = vld [vmem:[#allocation10 + $0x64] ss:$12 sps:$4 sm:$0xff]   ;;  %v3174_v31 = vld [vmem:[#allocation10 + $0x4c] ss:$12 sps:$4 sm:$0xff]  }
  0x90   : > { %716 = vmatprep.subr.bf16.mxu0 %v3160_v20  ;;  %2920 = vmatprep.subr.bf16.mxu1 %v3640_v23  ;;  %v3167_v26 = vld [vmem:[#allocation10 + $0x90] ss:$12 sps:$4 sm:$0xff]   ;;  %v3168_v27 = vld [vmem:[#allocation10 + $0x68] ss:$12 sps:$4 sm:$0xff]   ;;  %v3171_v29 = vld [vmem:[#allocation10 + $0x78] ss:$12 sps:$4 sm:$0xff]  }
  0x91   : > { %568 = vadd.xlane.f32.xlu0 %v565_v1  ;;  %838 = vadd.xlane.f32.xlu1 %v565_v1  ;;  %v3172_v30 = vld [vmem:[#allocation10 + $0x50] ss:$12 sps:$4 sm:$0xff]   ;;  %v3175_v32 = vld [vmem:[#allocation10 + $0x60] ss:$12 sps:$4 sm:$0xff]   ;;  %v3176_v33 = vld [vmem:[#allocation10 + $0x38] ss:$12 sps:$4 sm:$0xff]  }
  0x92   : > { %v3178_v34 = vld [vmem:[#allocation10 + $0x34] ss:$12 sps:$4 sm:$0xff]   ;;  %746 = vmatprep.mubr.bf16.mxu0 %v3641_v37  ;;  %v3182_v38 = vld [vmem:[#allocation10 + $0x1c] ss:$12 sps:$4 sm:$0xff]   ;;  %v3186_v41 = vld [vmem:[#allocation10 + $0x4] ss:$12 sps:$4 sm:$0xff]  }
  0x93   : > { %717 = vmatpush1.bf16.msra.mxu0 %v3162_v21  ;;  %2921 = vmatpush3.bf16.msra.mxu1 %v3167_v26  ;;  %v3179_v35 = vld [vmem:[#allocation10 + $0x48] ss:$12 sps:$4 sm:$0xff]   ;;  %v3180_v36 = vld [vmem:[#allocation10 + $0x20] ss:$12 sps:$4 sm:$0xff]   ;;  %v3183_v39 = vld [vmem:[#allocation10 + $0x30] ss:$12 sps:$4 sm:$0xff]  }
  0x94   : > { %718 = vmatprep.subr.bf16.mxu0 %v3164_v24  ;;  %2922 = vmatprep.subr.bf16.mxu1 %v3640_v23  ;;  %v3184_v40 = vld [vmem:[#allocation10 + $0x8] ss:$12 sps:$4 sm:$0xff]   ;;  %v3187_v42 = vld [vmem:[#allocation10 + $0x18] ss:$12 sps:$4 sm:$0xff]   ;;  %v3188_v43 = vld [vmem:[#allocation10] ss:$12 sps:$4 sm:$0xff]  }
  0x95   : > { %vm3642_vm0 = vmmov 0   ;;  %v2835_v58 = vld [vmem:[#allocation7] ss:$0 sm:$0xff]  ;;  %v2836_v63 = vld [vmem:[#allocation9] ss:$0 sm:$0xff]  ;;  %vm765_vm1 = vcmask 257024  }
  0x96   : > { %2934 = vmatprep.mubr.msk.bf16.mxu1 %vm3642_vm0, %v3640_v23  ;;  %v2719_v26 = vld [vmem:[%s4195_s4] ss:$0 sm:$0xff]  ;;  %s3643_s16 = smov 96   ;;  %vm998_vm2 = vcmask 261120   ;;  %vm1046_vm3 = vcmask 130048   ;;  %s3644_s20 = smov 64  }
  0x97   : > { %719 = vmatpush1.bf16.msra.mxu0 %v3166_v25  ;;  %2923 = vmatpush3.bf16.msra.mxu1 %v3171_v29  ;;  %s3645_s23 = smov 32   ;;  %s4240_s9 = sld [smem:[#allocation30_spill]] }
  0x98   : > { %720 = vmatprep.subr.bf16.mxu0 %v3168_v27  ;;  %2924 = vmatprep.subr.bf16.mxu1 %v3640_v23  ;;  %s4241_s15 = sld [smem:[#allocation22_spill]]  ;;  %s3646_s28 = smov [#allocation16]  }
  0x99   : > { %s4242_s21 = sld [smem:[#allocation31_spill]]  ;;  %s3535_s19 = sshll.u32 %s3646_s28, 4  ;;  %s3536_s19 = int_to_ptr.vmem [resolvable:$false] %s3535_s19 }
  0x9b   : > { %721 = vmatpush1.bf16.msra.mxu0 %v3170_v28  ;;  %2925 = vmatpush3.bf16.msra.mxu1 %v3175_v32 }
  0x9c   : > { %722 = vmatprep.subr.bf16.mxu0 %v3172_v30  ;;  %2926 = vmatprep.subr.bf16.mxu1 %v3640_v23 }
  0x9f   : > { %723 = vmatpush1.bf16.msra.mxu0 %v3174_v31  ;;  %2927 = vmatpush3.bf16.msra.mxu1 %v3179_v35 }
  0xa0   : > { %724 = vmatprep.subr.bf16.mxu0 %v3176_v33  ;;  %2928 = vmatprep.subr.bf16.mxu1 %v3640_v23 }
  0xa3   : > { %725 = vmatpush1.bf16.msra.mxu0 %v3178_v34  ;;  %2929 = vmatpush3.bf16.msra.mxu1 %v3183_v39 }
  0xa4   : > { %726 = vmatprep.subr.bf16.mxu0 %v3180_v36  ;;  %2930 = vmatprep.subr.bf16.mxu1 %v3640_v23 }
  0xa7   : > { %727 = vmatpush1.bf16.msra.mxu0 %v3182_v38  ;;  %2931 = vmatpush3.bf16.msra.mxu1 %v3187_v42 }
  0xa8   : > { %728 = vmatprep.subr.bf16.mxu0 %v3184_v40  ;;  %2932 = vmatprep.subr.bf16.mxu1 %v3640_v23 }
  0xab   : > { %729 = vmatpush1.bf16.msra.mxu0 %v3186_v41  ;;  %2933 = vmatpush3.bf16.msra.mxu1 %v3188_v43 }
  0xac   : > { %2938 = vmatprep.subr.bf16.mxu0 %v3640_v23  ;;  %2944 = vmatprep.subr.bf16.mxu1 %v3640_v23 }
 0x116   : > { %v567_v4 = vpop.xlane.xlu0 %566  ;;  %v837_v5 = vpop.xlane.xlu1 %836 }
 0x117   : > { %v571_v6 = vmul.f32 0.0078125, %v567_v4  ;;  %v841_v7 = vmul.f32 0.0078125, %v837_v5 }
 0x119   : > { %v3906_v8 = vsub.f32 %v564_v0, %v571_v6  ;;  %v3908_v9 = vsub.f32 %v564_v0, %v841_v7 }
 0x11a   : > { %v569_v10 = vpop.xlane.xlu0 %568  ;;  %v839_v11 = vpop.xlane.xlu1 %838 }
 0x11b   : > { %v572_v12 = vmul.f32 0.0078125, %v569_v10  ;;  %v575_v13 = vmul.f32 %v3906_v8, %v3906_v8  ;;  %v842_v14 = vmul.f32 0.0078125, %v839_v11  ;;  %v845_v17 = vmul.f32 %v3908_v9, %v3908_v9 }
 0x11d   : > { %v3912_v15 = vsub.f32 %v565_v1, %v572_v12  ;;  %577 = vadd.xlane.f32.xlu0 %v575_v13  ;;  %v3914_v16 = vsub.f32 %v565_v1, %v842_v14 }
 0x11f   : > { %v576_v18 = vmul.f32 %v3912_v15, %v3912_v15  ;;  %v846_v19 = vmul.f32 %v3914_v16, %v3914_v16 }
 0x121   : > { %847 = vadd.xlane.f32.xlu0 %v845_v17  ;;  %579 = vadd.xlane.f32.xlu1 %v576_v18 }
 0x125   : > { %849 = vadd.xlane.f32.xlu1 %v846_v19 }
 0x1a6   : > { %v578_v44 = vpop.xlane.xlu0 %577 }
 0x1a7   : > { %v581_v45 = vmul.f32 0.0078125, %v578_v44 }
 0x1a9   : > { %v583_v46 = vadd.f32 1e-06, %v581_v45 }
 0x1aa   : > { %v580_v47 = vpop.xlane.xlu1 %579  ;;  %v848_v48 = vpop.xlane.xlu0 %847 }
 0x1ab   : > { %3285 = vrsqrt.f32 %v583_v46  ;;  %v582_v49 = vmul.f32 0.0078125, %v580_v47  ;;  %v851_v50 = vmul.f32 0.0078125, %v848_v48 }
 0x1ad   : > { %v584_v51 = vadd.f32 1e-06, %v582_v49  ;;  %v853_v52 = vadd.f32 1e-06, %v851_v50 }
 0x1ae   : > { %v850_v53 = vpop.xlane.xlu1 %849 }
 0x1af   : > { %3287 = vrsqrt.f32 %v584_v51  ;;  %v852_v54 = vmul.f32 0.0078125, %v850_v53 }
 0x1b0   : > { %3289 = vrsqrt.f32 %v853_v52 }
 0x1b1   : > { %v854_v55 = vadd.f32 1e-06, %v852_v54 }
 0x1b3   : > { %3291 = vrsqrt.f32 %v854_v55 }
 0x1b8   : > { %v3286_v56 = vpop.eup %3285 }
 0x1b9   : > { %v587_v57 = vmul.f32 %v3286_v56, %v3906_v8 }
 0x1bb   : > { %v595_v62 = vmul.f32 %v2835_v58, %v587_v57 }
 0x1bc   : > { %v3288_v59 = vpop.eup %3287 }
 0x1bd   : > { %v3290_v60 = vpop.eup %3289  ;;  %v588_v61 = vmul.f32 %v3288_v59, %v3912_v15  ;;  %v603_v3 = vadd.f32 %v2836_v63, %v595_v62  ;;  %v622_v15 = vld [vmem:[%s4195_s4 + $0x1] sm:$0x3] }
 0x1be   : > { %v857_v0 = vmul.f32 %v3290_v60, %v3908_v9  ;;  %v590_v9 = vlaneseq }
 0x1bf   : > { %v596_v1 = vmul.f32 %v2835_v58, %v588_v61 }
 0x1c0   : > { %v3292_v2 = vpop.eup %3291  ;;  %v865_v6 = vmul.f32 %v2835_v58, %v857_v0  ;;  %v3943_v13 = vshrl.u32 %v590_v9, 7 }
 0x1c1   : > { %v604_v4 = vadd.f32 %v2836_v63, %v596_v1  ;;  %v858_v5 = vmul.f32 %v3292_v2, %v3914_v16 }
 0x1c2   : > { %v873_v8 = vadd.f32 %v2836_v63, %v865_v6  ;;  %v592_v14 = vsub.s32 0, %v3943_v13  ;;  %v630_v16 = vsub.s32 1, %v3943_v13 }
 0x1c3   : > { %v605_v7 = vpack.c.bf16 %v604_v4, %v603_v3  ;;  %v866_v10 = vmul.f32 %v2835_v58, %v858_v5 }
 0x1c4   : > { %v627_v17 = vrot.slane %v622_v15, %v592_v14  ;;  %v631_v18 = vrot.slane %v622_v15, %v630_v16 }
 0x1c5   : > { %747 = vmatmul.mubr.bf16.vlgmr.msra.gmra.mxu0 %v605_v7  ;;  %v874_v11 = vadd.f32 %v2836_v63, %v866_v10 }
 0x1c6   : > { %2940 = vmatprep.mubr.msk.bf16.mxu0 %vm3642_vm0, %v3640_v23 }
 0x1c7   : > { %v875_v12 = vpack.c.bf16 %v874_v11, %v873_v8 }
 0x1c9   : > { %2935 = vmatmul.mubr.bf16.vlgmr.msra.gmra.mxu1 %v875_v12 }
 0x1ca   : > { %2946 = vmatprep.mubr.msk.bf16.mxu1 %vm3642_vm0, %v3640_v23 }
 0x285   : > { %v748_v19 = vpop.f32.mrf.mxu0 }
 0x286   : > { %v749_v20 = vadd.f32 %v748_v19, %v627_v17 }
 0x287   : > { %v750_v21 = vpop.f32.mrf.mxu0 }
 0x288   : > { %v3954_v22 = vpack.c.bf16 %v749_v20, %v749_v20  ;;  %v751_v24 = vadd.f32 %v750_v21, %v631_v18 }
 0x289   : > { %v752_v25 = vpop.f32.mrf.mxu0  ;;  %v981_v27 = vpop.f32.mrf.mxu1 }
 0x28a   : > { %766 = vst.msk [vmem:[#allocation2] sm:$0xf] %vm765_vm1, %v3954_v22  ;;  %v3961_v28 = vpack.c.bf16 %v751_v24, %v751_v24  ;;  %v753_v29 = vadd.f32 %v752_v25, %v627_v17  ;;  %778 = vrot.lane.b32.xlu0 %v3954_v22, %s3643_s16  ;;  %v982_v33 = vadd.f32 %v2719_v26, %v981_v27 }
 0x28b   : > { %v754_v30 = vpop.f32.mrf.mxu0  ;;  %v2936_v31 = vpop.f32.mrf.mxu1 }
 0x28c   : > { %776 = vst.msk [vmem:[#allocation3] sm:$0xf] %vm765_vm1, %v3961_v28  ;;  %v3967_v32 = vpack.c.bf16 %v753_v29, %v753_v29  ;;  %v755_v34 = vadd.f32 %v754_v30, %v631_v18  ;;  %v988_v40 = vmul.f32 0.17677669, %v982_v33  ;;  %v3193_v30 = vld [vmem:[#allocation12 + $0x18] sm:$0xff]   ;;  %v3194_v31 = vld [vmem:[#allocation12 + $0x10] sm:$0xff]  }
 0x28d   : > { %v984_v35 = vpop.f32.mrf.mxu1  ;;  %v3195_v33 = vld [vmem:[#allocation12 + $0x8] sm:$0xff]  }
 0x28e   : > { %767 = vst.msk [vmem:[#allocation2 + $0x4] sm:$0xf] %vm765_vm1, %v3967_v32  ;;  %v3971_v36 = vpack.c.bf16 %v755_v34, %v755_v34  ;;  %v985_v38 = vadd.f32 %v2719_v26, %v984_v35  ;;  %780 = vrot.lane.b32.xlu1 %v3967_v32, %s3643_s16  ;;  %v3197_v34 = vld [vmem:[#allocation12] sm:$0xff]  }
 0x28f   : > { %v2937_v39 = vpop.f32.mrf.mxu1 }
 0x290   : > { %777 = vst.msk [vmem:[#allocation3 + $0x4] sm:$0xf] %vm765_vm1, %v3971_v36  ;;  %v989_v41 = vmul.f32 0.17677669, %v985_v38 }
 0x292   : > { %v3977_v42 = vpack.c.bf16 %v989_v41, %v988_v40 }
 0x294   : > { %1131 = vrot.lane.b32.xlu1 %v3977_v42, %s3643_s16 }
 0x295   : > { %v3189_v43 = vld [vmem:[#allocation2] sm:$0xff]  }
 0x296   : > { %v1003_v44 = vsel %vm998_vm2, %v3189_v43, 0 }
 0x297   : > { %v3190_v45 = vld [vmem:[#allocation3] sm:$0xff]   ;;  %2939 = vmatpush3.bf16.xpose.msra.mxu0 %v1003_v44 }
 0x298   : > { %2945 = vmatpush3.bf16.msra.mxu1 %v3190_v45  ;;  %2950 = vmatprep.subr.bf16.mxu0 %v3640_v23 }
 0x299   : > { %2956 = vmatprep.subr.bf16.mxu1 %v3640_v23 }
 0x29e   : > { %2941 = vmatmul.mubr.msk.bf16.vlgmr.msra.gmra.mxu0 %vm998_vm2, %v3977_v42 }
 0x29f   : > { %2952 = vmatprep.mubr.msk.bf16.mxu0 %vm3642_vm0, %v3640_v23 }
 0x2fc   : > { %v779_v46 = vpop.permute.xlu0 %778 }
 0x2fd   : > { %785 = vst.msk [vmem:[#allocation2 + $0x8] sm:$0xf] %vm765_vm1, %v779_v46 }
 0x300   : > { %v781_v47 = vpop.permute.xlu1 %780 }
 0x301   : > { %786 = vst.msk [vmem:[#allocation2 + $0xc] sm:$0xf] %vm765_vm1, %v781_v47 }
 0x306   : > { %v1132_v50 = vpop.permute.xlu1 %1131 }
 0x308   : > { %v3191_v48 = vld [vmem:[#allocation2 + $0x8] sm:$0xff]  }
 0x309   : > { %v1142_v49 = vsel %vm998_vm2, %v3191_v48, 0 }
 0x30a   : > { %2951 = vmatpush3.bf16.xpose.msra.mxu0 %v1142_v49 }
 0x30b   : > { %2962 = vmatprep.subr.bf16.mxu0 %v3640_v23 }
 0x311   : > { %2953 = vmatmul.mubr.msk.bf16.vlgmr.msra.gmra.mxu0 %vm998_vm2, %v1132_v50 }
 0x312   : > { %2966 = vmatprep.mubr.msk.bf16.mxu0 %vm3642_vm0, %v3640_v23  ;;  %2963 = vmatpush3.bf16.msra.mxu0 %v3193_v30 }
 0x313   : > { %2964 = vmatprep.subr.bf16.mxu0 %v3640_v23 }
 0x316   : > { %2965 = vmatpush3.bf16.msra.mxu0 %v3194_v31 }
 0x317   : > { %2978 = vmatprep.subr.bf16.mxu0 %v3640_v23 }
 0x35e   : > { %v1039_v51 = vpop.f32.mrf.mxu0 }
 0x35f   : > { %v1047_v52 = vsel %vm1046_vm3, %v1039_v51, -inf }
 0x360   : > { %1048 = vmax.xlane.f32.xlu1 %v1047_v52  ;;  %v2942_v53 = vpop.f32.mrf.mxu0 }
 0x362   : > { %v1042_v54 = vpop.f32.mrf.mxu0 }
 0x363   : > { %v1050_v55 = vsel %vm1046_vm3, %v1042_v54, -inf }
 0x364   : > { %1051 = vmax.xlane.f32.xlu0 %v1050_v55  ;;  %v2943_v56 = vpop.f32.mrf.mxu0 }
 0x371   : > { %787 = vrot.lane.b32.xlu1 %v3961_v28, %s3643_s16 }
 0x3d1   : > { %v1178_v57 = vpop.f32.mrf.mxu0 }
 0x3d2   : > { %v1185_v58 = vsel %vm1046_vm3, %v1178_v57, -inf }
 0x3d3   : > { %1186 = vmax.xlane.f32.xlu0 %v1185_v58  ;;  %v2954_v59 = vpop.f32.mrf.mxu0 }
 0x3d5   : > { %v1181_v60 = vpop.f32.mrf.mxu0 }
 0x3d6   : > { %v1188_v61 = vsel %vm1046_vm3, %v1181_v60, -inf }
 0x3d7   : > { %1189 = vmax.xlane.f32.xlu0 %v1188_v61  ;;  %v2955_v62 = vpop.f32.mrf.mxu0 }
 0x3e9   : > { %v1049_v63 = vpop.xlane.xlu1 %1048 }
 0x3ea   : > { %v1053_v0 = vsub.f32 %v1039_v51, %v1049_v63 }
 0x3ec   : > { %v1055_v1 = vmul.f32 1.442695, %v1053_v0 }
 0x3ed   : > { %v788_v2 = vpop.permute.xlu1 %787  ;;  %v1052_v3 = vpop.xlane.xlu0 %1051  ;;  %789 = vrot.lane.b32.xlu0 %v3971_v36, %s3643_s16  ;;  %s555_s16 = scalar_lea.vmem [#allocation16], %s2691_s11  ;;  %s2519_s11 = scalar_lea.sflag [#allocation6], %s3880_s18 }
 0x3ee   : > { %794 = vst.msk [vmem:[#allocation3 + $0x8] sm:$0xf] %vm765_vm1, %v788_v2  ;;  %v1054_v4 = vsub.f32 %v1042_v54, %v1052_v3  ;;  %3293 = vpow2.f32 %v1055_v1 }
 0x3f0   : > { %v1057_v5 = vmul.f32 1.442695, %v1054_v4 }
 0x3f2   : > { %3295 = vpow2.f32 %v1057_v5 }
 0x3fb   : > { %v3294_v6 = vpop.eup %3293 }
 0x3fc   : > { %v1059_v27 = vsel %vm1046_vm3, %v3294_v6, 0.0 }
 0x3ff   : > { %v3296_v7 = vpop.eup %3295 }
 0x400   : > { %v1065_v10 = vpack.c.bf16 %v3296_v7, %v3294_v6  ;;  %v1062_v29 = vsel %vm1046_vm3, %v3296_v7, 0.0 }
 0x402   : > { %2947 = vmatmul.mubr.msk.bf16.vlgmr.msra.gmra.mxu1 %vm1046_vm3, %v1065_v10 }
 0x403   : > { %2958 = vmatprep.mubr.msk.bf16.mxu1 %vm3642_vm0, %v3640_v23 }
 0x45c   : > { %v1187_v8 = vpop.xlane.xlu0 %1186 }
 0x45d   : > { %v1191_v11 = vsub.f32 %v1178_v57, %v1187_v8 }
 0x45f   : > { %v1193_v12 = vmul.f32 1.442695, %v1191_v11 }
 0x460   : > { %v1190_v9 = vpop.xlane.xlu0 %1189 }
 0x461   : > { %3297 = vpow2.f32 %v1193_v12  ;;  %v1192_v15 = vsub.f32 %v1181_v60, %v1190_v9 }
 0x463   : > { %v1195_v17 = vmul.f32 1.442695, %v1192_v15 }
 0x464   : > { %v790_v18 = vpop.permute.xlu0 %789 }
 0x465   : > { %3299 = vpow2.f32 %v1195_v17  ;;  %795 = vst.msk [vmem:[#allocation3 + $0xc] sm:$0xf] %vm765_vm1, %v790_v18 }
 0x46c   : > { %v3192_v19 = vld [vmem:[#allocation3 + $0x8] sm:$0xff]  }
 0x46d   : > { %2957 = vmatpush3.bf16.msra.mxu1 %v3192_v19 }
 0x46e   : > { %v3298_v20 = vpop.eup %3297  ;;  %2970 = vmatprep.subr.bf16.mxu1 %v3640_v23 }
 0x46f   : > { %v1197_v21 = vsel %vm1046_vm3, %v3298_v20, 0.0 }
 0x470   : > { %1198 = vadd.xlane.f32.xlu1 %v1197_v21 }
 0x472   : > { %v3300_v24 = vpop.eup %3299 }
 0x473   : > { %v1200_v25 = vsel %vm1046_vm3, %v3300_v24, 0.0  ;;  %v1203_v26 = vpack.c.bf16 %v3300_v24, %v3298_v20 }
 0x474   : > { %1201 = vadd.xlane.f32.xlu0 %v1200_v25 }
 0x475   : > { %2959 = vmatmul.mubr.msk.bf16.vlgmr.msra.gmra.mxu1 %vm1046_vm3, %v1203_v26 }
 0x476   : > { %2974 = vmatprep.mubr.msk.bf16.mxu1 %vm3642_vm0, %v3640_v23  ;;  %2971 = vmatpush3.bf16.msra.mxu1 %v3195_v33 }
 0x477   : > { %2972 = vmatprep.subr.bf16.mxu1 %v3640_v23 }
 0x47a   : > { %2973 = vmatpush3.bf16.msra.mxu1 %v3197_v34 }
 0x47b   : > { %2984 = vmatprep.subr.bf16.mxu1 %v3640_v23 }
 0x481   : > { %796 = vrot.lane.b32.xlu1 %v3954_v22, %s3644_s20 }
 0x485   : > { %1382 = vrot.lane.b32.xlu1 %v3977_v42, %s3644_s20 }
 0x48a   : > { %798 = vrot.lane.b32.xlu0 %v3967_v32, %s3644_s20 }
 0x4a9   : > { %1060 = vadd.xlane.f32.xlu1 %v1059_v27  ;;  %1063 = vadd.xlane.f32.xlu0 %v1062_v29 }
 0x4ba   : > { %807 = vrot.lane.b32.xlu1 %v3971_v36, %s3644_s20 }
 0x4be   : > { %814 = vrot.lane.b32.xlu1 %v3954_v22, %s3645_s23 }
 0x4c2   : > { %v1111_v35 = vpop.f32.mrf.mxu1 }
 0x4c4   : > { %v2948_v38 = vpop.f32.mrf.mxu1 }
 0x4c6   : > { %v1114_v39 = vpop.f32.mrf.mxu1 }
 0x4c8   : > { %v2949_v40 = vpop.f32.mrf.mxu1 }
 0x4f9   : > { %v1199_v41 = vpop.xlane.xlu1 %1198 }
 0x4fa   : > { %3301 = vrcp.f32 %v1199_v41 }
 0x4fd   : > { %v797_v43 = vpop.permute.xlu1 %796  ;;  %v1202_v44 = vpop.xlane.xlu0 %1201 }
 0x4fe   : > { %803 = vst.msk [vmem:[#allocation2 + $0x10] sm:$0xf] %vm765_vm1, %v797_v43  ;;  %3303 = vrcp.f32 %v1202_v44  ;;  %v3200_v43 = vld [vmem:[#allocation12 + $0x28] sm:$0xff]   ;;  %v3201_v44 = vld [vmem:[#allocation12 + $0x20] sm:$0xff]  }
 0x501   : > { %v799_v45 = vpop.permute.xlu0 %798  ;;  %v1383_v22 = vpop.permute.xlu1 %1382 }
 0x502   : > { %804 = vst.msk [vmem:[#allocation2 + $0x14] sm:$0xf] %vm765_vm1, %v799_v45 }
 0x507   : > { %v3302_v51 = vpop.eup %3301 }
 0x509   : > { %v3196_v57 = vld [vmem:[#allocation2 + $0x10] sm:$0xff]  }
 0x50a   : > { %v1393_v60 = vsel %vm998_vm2, %v3196_v57, 0 }
 0x50b   : > { %v3304_v52 = vpop.eup %3303 }
 0x532   : > { %v1061_v46 = vpop.xlane.xlu1 %1060  ;;  %v1064_v47 = vpop.xlane.xlu0 %1063 }
 0x533   : > { %3305 = vrcp.f32 %v1061_v46 }
 0x534   : > { %3307 = vrcp.f32 %v1064_v47 }
 0x535   : > { %v1250_v48 = vpop.f32.mrf.mxu1 }
 0x536   : > { %v808_v49 = vpop.permute.xlu1 %807  ;;  %v1259_v54 = vmul.f32 %v3302_v51, %v1250_v48 }
 0x537   : > { %813 = vst.msk [vmem:[#allocation3 + $0x14] sm:$0xf] %vm765_vm1, %v808_v49  ;;  %v2960_v50 = vpop.f32.mrf.mxu1 }
 0x539   : > { %v1253_v53 = vpop.f32.mrf.mxu1 }
 0x53a   : > { %v1260_v55 = vmul.f32 %v3304_v52, %v1253_v53  ;;  %v815_v56 = vpop.permute.xlu1 %814 }
 0x53b   : > { %821 = vst.msk [vmem:[#allocation2 + $0x18] sm:$0xf] %vm765_vm1, %v815_v56  ;;  %v2961_v58 = vpop.f32.mrf.mxu1 }
 0x53c   : > { %v1261_v59 = vpack.c.bf16 %v1260_v55, %v1259_v54 }
 0x53e   : > { %2967 = vmatmul.mubr.msk.bf16.vlgmr.msra.gmra.mxu0 %vm998_vm2, %v1261_v59 }
 0x53f   : > { %2979 = vmatpush3.bf16.xpose.msra.mxu0 %v1393_v60  ;;  %2980 = vmatprep.mubr.msk.bf16.mxu0 %vm3642_vm0, %v3640_v23 }
 0x540   : > { %v3306_v61 = vpop.eup %3305  ;;  %2990 = vmatprep.subr.bf16.mxu0 %v3640_v23 }
 0x541   : > { %v3308_v62 = vpop.eup %3307  ;;  %v1120_v63 = vmul.f32 %v3306_v61, %v1111_v35 }
 0x542   : > { %v1121_v0 = vmul.f32 %v3308_v62, %v1114_v39 }
 0x544   : > { %v1122_v1 = vpack.c.bf16 %v1121_v0, %v1120_v63 }
 0x546   : > { %2975 = vmatmul.mubr.msk.bf16.vlgmr.msra.gmra.mxu1 %vm998_vm2, %v1122_v1  ;;  %2981 = vmatmul.mubr.msk.bf16.vlgmr.msra.gmra.mxu0 %vm998_vm2, %v1383_v22 }
 0x547   : > { %2986 = vmatprep.mubr.msk.bf16.mxu1 %vm3642_vm0, %v3640_v23  ;;  %2994 = vmatprep.mubr.msk.bf16.mxu0 %vm3642_vm0, %v3640_v23 }
 0x548   : > { %2991 = vmatpush3.bf16.msra.mxu0 %v3200_v43 }
 0x549   : > { %2992 = vmatprep.subr.bf16.mxu0 %v3640_v23 }
 0x54c   : > { %2993 = vmatpush3.bf16.msra.mxu0 %v3201_v44 }
 0x54d   : > { %3004 = vmatprep.subr.bf16.mxu0 %v3640_v23 }
 0x5fe   : > { %v1316_v2 = vpop.f32.mrf.mxu0 }
 0x600   : > { %v2968_v3 = vpop.f32.mrf.mxu0 }
 0x602   : > { %v1319_v4 = vpop.f32.mrf.mxu0 }
 0x604   : > { %v2969_v5 = vpop.f32.mrf.mxu0 }
 0x606   : > { %v1372_v6 = vpop.f32.mrf.mxu1  ;;  %v1429_v7 = vpop.f32.mrf.mxu0 }
 0x607   : > { %v4045_v10 = vadd.f32 %v1372_v6, %v1316_v2  ;;  %v1436_v8 = vsel %vm1046_vm3, %v1429_v7, -inf }
 0x608   : > { %v2976_v11 = vpop.f32.mrf.mxu1  ;;  %1437 = vmax.xlane.f32.xlu0 %v1436_v8  ;;  %v2982_v12 = vpop.f32.mrf.mxu0 }
 0x60a   : > { %v1375_v9 = vpop.f32.mrf.mxu1  ;;  %v1432_v15 = vpop.f32.mrf.mxu0 }
 0x60b   : > { %v4048_v17 = vadd.f32 %v1375_v9, %v1319_v4  ;;  %v1439_v18 = vsel %vm1046_vm3, %v1432_v15, -inf }
 0x60c   : > { %v2977_v19 = vpop.f32.mrf.mxu1  ;;  %1440 = vmax.xlane.f32.xlu1 %v1439_v18  ;;  %v2983_v20 = vpop.f32.mrf.mxu0 }
 0x60d   : > { %v3203_v20 = vld [vmem:[#allocation12 + $0x38] sm:$0xff]  }
 0x61d   : > { %816 = vrot.lane.b32.xlu1 %v3967_v32, %s3645_s23 }
 0x61e   : > { %805 = vrot.lane.b32.xlu0 %v3961_v28, %s3644_s20  ;;  %s2534_s20 = sshll.u32 %s555_s16, 4  ;;  %s4137_s20 = int_to_ptr.vmem [resolvable:$true] %s2534_s20 }
 0x61f   : > { %s3531_s3 = scalar_lea.vmem %s4137_s20, 256  ;;  %p3538_p9 = scmp.lt.s32.totalorder %s4137_s20, %s3536_s19 }
 0x620   : > { %p3532_p0 = scmp.ne.s32.totalorder %s4137_s20, %s3531_s3 }
 0x622   : > { %1579 = vrot.lane.b32.xlu0 %v3977_v42, %s3645_s23  ;;  %p3533_p5 = pnand %p3532_p0, %p3850_p2 }
 0x624   : > { %p3534_p7 = pneg %p3533_p5 }
 0x691   : > { %v1438_v21 = vpop.xlane.xlu0 %1437 }
 0x692   : > { %v1442_v24 = vsub.f32 %v1429_v7, %v1438_v21  ;;  %v3204_v21 = vld [vmem:[#allocation12 + $0x30] sm:$0xff]  }
 0x694   : > { %v1444_v25 = vmul.f32 1.442695, %v1442_v24 }
 0x695   : > { %v806_v26 = vpop.permute.xlu0 %805  ;;  %v1441_v27 = vpop.xlane.xlu1 %1440 }
 0x696   : > { %3309 = vpow2.f32 %v1444_v25  ;;  %812 = vst.msk [vmem:[#allocation3 + $0x10] sm:$0xf] %vm765_vm1, %v806_v26  ;;  %v1443_v29 = vsub.f32 %v1432_v15, %v1441_v27 }
 0x698   : > { %v1446_v30 = vmul.f32 1.442695, %v1443_v29 }
 0x699   : > { %v817_v31 = vpop.permute.xlu1 %816  ;;  %v1580_v41 = vpop.permute.xlu0 %1579 }
 0x69a   : > { %3311 = vpow2.f32 %v1446_v30  ;;  %822 = vst.msk [vmem:[#allocation2 + $0x1c] sm:$0xf] %vm765_vm1, %v817_v31 }
 0x69d   : > { %v3198_v32 = vld [vmem:[#allocation3 + $0x10] sm:$0xff]  }
 0x69e   : > { %2985 = vmatpush3.bf16.msra.mxu1 %v3198_v32 }
 0x69f   : > { %2998 = vmatprep.subr.bf16.mxu1 %v3640_v23 }
 0x6a1   : > { %v3199_v34 = vld [vmem:[#allocation2 + $0x18] sm:$0xff]  }
 0x6a2   : > { %v1590_v40 = vsel %vm998_vm2, %v3199_v34, 0 }
 0x6a3   : > { %v3310_v33 = vpop.eup %3309 }
 0x6a4   : > { %v1448_v42 = vsel %vm1046_vm3, %v3310_v33, 0.0 }
 0x6a5   : > { %1449 = vadd.xlane.f32.xlu1 %v1448_v42  ;;  %v2756_v42 = vld [vmem:[%s4197_s6] ss:$0 sm:$0xff] }
 0x6a7   : > { %v3312_v35 = vpop.eup %3311 }
 0x6a8   : > { %v1451_v38 = vsel %vm1046_vm3, %v3312_v35, 0.0  ;;  %v1454_v39 = vpack.c.bf16 %v3312_v35, %v3310_v33 }
 0x6a9   : > { %1452 = vadd.xlane.f32.xlu0 %v1451_v38 }
 0x6aa   : > { %2987 = vmatmul.mubr.msk.bf16.vlgmr.msra.gmra.mxu1 %vm1046_vm3, %v1454_v39 }
 0x6ab   : > { %2999 = vmatpush3.bf16.xpose.msra.mxu1 %v1590_v40  ;;  %3000 = vmatprep.mubr.msk.bf16.mxu1 %vm3642_vm0, %v3640_v23 }
 0x6ac   : > { %3010 = vmatprep.subr.bf16.mxu1 %v3640_v23 }
 0x6b2   : > { %3001 = vmatmul.mubr.msk.bf16.vlgmr.msra.gmra.mxu1 %vm998_vm2, %v1580_v41  ;;  %v3345_v41 = vld [vmem:[%s3886_s1] sm:$0xff] }
 0x6b3   : > { %3014 = vmatprep.mubr.msk.bf16.mxu1 %vm3642_vm0, %v3640_v23  ;;  %3011 = vmatpush3.bf16.msra.mxu1 %v3203_v20  ;;  %v3244_v20 = vld [vmem:[#allocation13 + $0x28] ss:$16 sps:$4 sm:$0xff]  }
 0x6b4   : > { %3012 = vmatprep.subr.bf16.mxu1 %v3640_v23 }
 0x6b6   : > { %823 = vrot.lane.b32.xlu1 %v3961_v28, %s3645_s23 }
 0x6b7   : > { %3013 = vmatpush3.bf16.msra.mxu1 %v3204_v21  ;;  %v3249_v21 = vld [vmem:[#allocation13 + $0x4] ss:$16 sps:$4 sm:$0xff]  }
 0x72e   : > { %v1450_v45 = vpop.xlane.xlu1 %1449 }
 0x72f   : > { %3313 = vrcp.f32 %v1450_v45 }
 0x732   : > { %v824_v22 = vpop.permute.xlu1 %823  ;;  %v1453_v46 = vpop.xlane.xlu0 %1452 }
 0x733   : > { %830 = vst.msk [vmem:[#allocation3 + $0x18] sm:$0xf] %vm765_vm1, %v824_v22  ;;  %3315 = vrcp.f32 %v1453_v46  ;;  %v3346_v22 = vld [vmem:[%s3886_s1 + $0x8] sm:$0xff]  ;;  %s3537_s1 = scalar_lea.vmem %s3536_s19, 512 }
 0x734   : > { %p3539_p8 = scmp.lt.s32.totalorder %s3537_s1, %s3531_s3 }
 0x736   : > { %p3540_p10 = por %p3539_p8, %p3538_p9 }
 0x738   : > { %p3541_p6 = pnand %p3540_p10, %p3534_p7 }
 0x73c   : > { %v3314_v49 = vpop.eup %3313 }
 0x740   : > { %v3316_v50 = vpop.eup %3315 }
 0x76a   : > { %v1501_v47 = vpop.f32.mrf.mxu1 }
 0x76b   : > { %v1510_v51 = vmul.f32 %v3314_v49, %v1501_v47  ;;  %v3207_v47 = vld [vmem:[#allocation13 + $0xe4] ss:$16 sps:$4 sm:$0xff]   ;;  %v3210_v49 = vld [vmem:[#allocation13 + $0xec] ss:$16 sps:$4 sm:$0xff]  }
 0x76c   : > { %v2988_v48 = vpop.f32.mrf.mxu1  ;;  %2082 = vmatprep.subr.bf16.mxu1 %v3210_v49  ;;  %v3258_v49 = vld [vmem:[#allocation15 + $0xf0] sm:$0xff]  }
 0x76d   : > { %v3208_v48 = vld [vmem:[#allocation13 + $0xe8] ss:$16 sps:$4 sm:$0xff]  }
 0x76e   : > { %v1504_v28 = vpop.f32.mrf.mxu1 }
 0x76f   : > { %v1511_v52 = vmul.f32 %v3316_v50, %v1504_v28 }
 0x770   : > { %v2989_v53 = vpop.f32.mrf.mxu1 }
 0x771   : > { %v1512_v54 = vpack.c.bf16 %v1511_v52, %v1510_v51 }
 0x772   : > { %v1626_v55 = vpop.f32.mrf.mxu1 }
 0x773   : > { %2995 = vmatmul.mubr.msk.bf16.vlgmr.msra.gmra.mxu0 %vm998_vm2, %v1512_v54  ;;  %v1633_v56 = vsel %vm1046_vm3, %v1626_v55, -inf }
 0x774   : > { %1634 = vmax.xlane.f32.xlu0 %v1633_v56  ;;  %v3002_v57 = vpop.f32.mrf.mxu1  ;;  %3006 = vmatprep.mubr.msk.bf16.mxu0 %vm3642_vm0, %v3640_v23 }
 0x775   : > { %v3213_v57 = vld [vmem:[#allocation13 + $0xc4] ss:$16 sps:$4 sm:$0xff]  }
 0x776   : > { %v1629_v58 = vpop.f32.mrf.mxu1 }
 0x777   : > { %v1636_v59 = vsel %vm1046_vm3, %v1629_v58, -inf }
 0x778   : > { %1637 = vmax.xlane.f32.xlu0 %v1636_v59  ;;  %v3003_v60 = vpop.f32.mrf.mxu1  ;;  %v3211_v59 = vld [vmem:[#allocation13 + $0xc0] ss:$16 sps:$4 sm:$0xff]  }
 0x779   : > { %v3214_v60 = vld [vmem:[#allocation13 + $0xc8] ss:$16 sps:$4 sm:$0xff]  }
 0x78e   : > { %825 = vrot.lane.b32.xlu0 %v3971_v36, %s3645_s23  ;;  %s2834_s23 = sshll.u32 %s4241_s15, 8 }
 0x78f   : > { %s4142_s12 = scalar_lea.hbm %s4242_s21, %s2834_s23 }
 0x7fd   : > { %v1635_v61 = vpop.xlane.xlu0 %1634 }
 0x7fe   : > { %v1639_v62 = vsub.f32 %v1626_v55, %v1635_v61  ;;  %v3219_v61 = vld [vmem:[#allocation13 + $0xa4] ss:$16 sps:$4 sm:$0xff]  }
 0x800   : > { %v1641_v63 = vmul.f32 1.442695, %v1639_v62  ;;  %v3222_v62 = vld [vmem:[#allocation13 + $0xac] ss:$16 sps:$4 sm:$0xff]  }
 0x801   : > { %v1638_v0 = vpop.xlane.xlu0 %1637 }
 0x802   : > { %3317 = vpow2.f32 %v1641_v63  ;;  %v1640_v1 = vsub.f32 %v1629_v58, %v1638_v0  ;;  %v3216_v58 = vld [vmem:[#allocation13 + $0xcc] ss:$16 sps:$4 sm:$0xff]   ;;  %v3217_v63 = vld [vmem:[#allocation13 + $0xa0] ss:$16 sps:$4 sm:$0xff]   ;;  %v3220_v0 = vld [vmem:[#allocation13 + $0xa8] ss:$16 sps:$4 sm:$0xff]  }
 0x804   : > { %v1643_v2 = vmul.f32 1.442695, %v1640_v1  ;;  %v3223_v1 = vld [vmem:[#allocation13 + $0x80] ss:$16 sps:$4 sm:$0xff]  }
 0x805   : > { %v826_v3 = vpop.permute.xlu0 %825 }
 0x806   : > { %3319 = vpow2.f32 %v1643_v2  ;;  %831 = vst.msk [vmem:[#allocation3 + $0x1c] sm:$0xf] %vm765_vm1, %v826_v3  ;;  %v3225_v2 = vld [vmem:[#allocation13 + $0x84] ss:$16 sps:$4 sm:$0xff]   ;;  %v3226_v3 = vld [vmem:[#allocation13 + $0x88] ss:$16 sps:$4 sm:$0xff]  }
 0x80d   : > { %v3202_v4 = vld [vmem:[#allocation3 + $0x18] sm:$0xff]  }
 0x80e   : > { %3005 = vmatpush3.bf16.msra.mxu0 %v3202_v4  ;;  %v3228_v4 = vld [vmem:[#allocation13 + $0x8c] ss:$16 sps:$4 sm:$0xff]  }
 0x80f   : > { %v3318_v5 = vpop.eup %3317  ;;  %2039 = vmatprep.subr.bf16.mxu0 %v3207_v47  ;;  %v3256_v47 = vld [vmem:[#allocation15 + $0xb8] sm:$0xff]  }
 0x810   : > { %v1645_v6 = vsel %vm1046_vm3, %v3318_v5, 0.0 }
 0x811   : > { %1646 = vadd.xlane.f32.xlu1 %v1645_v6  ;;  %v3234_v6 = vld [vmem:[#allocation13 + $0x6c] ss:$16 sps:$4 sm:$0xff]  }
 0x813   : > { %v3320_v7 = vpop.eup %3319 }
 0x814   : > { %v1648_v36 = vsel %vm1046_vm3, %v3320_v7, 0.0  ;;  %v1651_v8 = vpack.c.bf16 %v3320_v7, %v3318_v5  ;;  %v3231_v5 = vld [vmem:[#allocation13 + $0x64] ss:$16 sps:$4 sm:$0xff]   ;;  %v3229_v7 = vld [vmem:[#allocation13 + $0x60] ss:$16 sps:$4 sm:$0xff]  }
 0x815   : > { %1649 = vadd.xlane.f32.xlu0 %v1648_v36  ;;  %v3232_v36 = vld [vmem:[#allocation13 + $0x68] ss:$16 sps:$4 sm:$0xff]  }
 0x816   : > { %3007 = vmatmul.mubr.msk.bf16.vlgmr.msra.gmra.mxu0 %vm1046_vm3, %v1651_v8  ;;  %v3237_v8 = vld [vmem:[#allocation13 + $0x44] ss:$16 sps:$4 sm:$0xff]  }
 0x817   : > { %2071 = vmatprep.mubr.bf16.mxu0 %v3641_v37 }
 0x833   : > { %v1567_v11 = vpop.f32.mrf.mxu0 }
 0x834   : > { %v1574_v12 = vadd.f32 %v1567_v11, %v4045_v10  ;;  %v3240_v11 = vld [vmem:[#allocation13 + $0x4c] ss:$16 sps:$4 sm:$0xff]  }
 0x835   : > { %v2996_v9 = vpop.f32.mrf.mxu0 }
 0x836   : > { %v3238_v9 = vld [vmem:[#allocation13 + $0x48] ss:$16 sps:$4 sm:$0xff]  }
 0x837   : > { %v1570_v15 = vpop.f32.mrf.mxu0 }
 0x838   : > { %v1575_v18 = vadd.f32 %v1570_v15, %v4048_v17  ;;  %v3243_v15 = vld [vmem:[#allocation13 + $0x24] ss:$16 sps:$4 sm:$0xff]  }
 0x839   : > { %v2997_v19 = vpop.f32.mrf.mxu0 }
 0x83a   : > { %v3241_v19 = vld [vmem:[#allocation13 + $0x20] ss:$16 sps:$4 sm:$0xff]  }
 0x89a   : > { %v1647_v24 = vpop.xlane.xlu1 %1646 }
 0x89b   : > { %3321 = vrcp.f32 %v1647_v24  ;;  %v3252_v24 = vld [vmem:[#allocation13 + $0xc] ss:$16 sps:$4 sm:$0xff]  }
 0x89e   : > { %v1650_v25 = vpop.xlane.xlu0 %1649 }
 0x89f   : > { %3323 = vrcp.f32 %v1650_v25  ;;  %v3247_v25 = vld [vmem:[#allocation13] ss:$16 sps:$4 sm:$0xff]  }
 0x8a8   : > { %v3322_v29 = vpop.eup %3321 }
 0x8ac   : > { %v3324_v10 = vpop.eup %3323 }
 0x8d6   : > { %v1698_v26 = vpop.f32.mrf.mxu0 }
 0x8d7   : > { %v1707_v31 = vmul.f32 %v3322_v29, %v1698_v26  ;;  %v3250_v26 = vld [vmem:[#allocation13 + $0x8] ss:$16 sps:$4 sm:$0xff]  }
 0x8d8   : > { %v3008_v27 = vpop.f32.mrf.mxu0 }
 0x8da   : > { %v1701_v30 = vpop.f32.mrf.mxu0 }
 0x8db   : > { %v1708_v32 = vmul.f32 %v3324_v10, %v1701_v30 }
 0x8dc   : > { %v3009_v17 = vpop.f32.mrf.mxu0 }
 0x8dd   : > { %v1709_v33 = vpack.c.bf16 %v1708_v32, %v1707_v31 }
 0x8df   : > { %3015 = vmatmul.mubr.msk.bf16.vlgmr.msra.gmra.mxu1 %vm998_vm2, %v1709_v33 }
 0x8e0   : > { %2114 = vmatprep.mubr.bf16.mxu1 %v3641_v37  ;;  %v3205_v37 = vld [vmem:[#allocation13 + $0xe0] ss:$16 sps:$4 sm:$0xff]   ;;  %2083 = vmatpush1.bf16.msra.mxu1 %v3208_v48 }
 0x8e1   : > { %2040 = vmatpush1.bf16.msra.mxu0 %v3205_v37  ;;  %2084 = vmatprep.subr.bf16.mxu1 %v3216_v58  ;;  %v3255_v37 = vld [vmem:[#allocation15 + $0x38] sm:$0xff]   ;;  %v3257_v48 = vld [vmem:[#allocation15 + $0x70] sm:$0xff]   ;;  %v3268_v58 = vld [vmem:[#allocation15 + $0xa0] sm:$0xff]  }
 0x8e2   : > { %2041 = vmatprep.subr.bf16.mxu0 %v3213_v57  ;;  %v3267_v57 = vld [vmem:[#allocation15 + $0x20] sm:$0xff]  }
 0x8e4   : > { %2085 = vmatpush1.bf16.msra.mxu1 %v3214_v60  ;;  %v3270_v60 = vld [vmem:[#allocation15 + $0xd8] sm:$0xff]  }
 0x8e5   : > { %2042 = vmatpush1.bf16.msra.mxu0 %v3211_v59  ;;  %2086 = vmatprep.subr.bf16.mxu1 %v3222_v62  ;;  %v3269_v59 = vld [vmem:[#allocation15 + $0x58] sm:$0xff]  }
 0x8e6   : > { %2043 = vmatprep.subr.bf16.mxu0 %v3219_v61  ;;  %v3271_v61 = vld [vmem:[#allocation15 + $0x18] sm:$0xff]  }
 0x8e7   : > { %v3272_v62 = vld [vmem:[#allocation15 + $0x98] sm:$0xff]  }
 0x8e8   : > { %2087 = vmatpush1.bf16.msra.mxu1 %v3220_v0  ;;  %v3274_v0 = vld [vmem:[#allocation15 + $0xd0] sm:$0xff]  }
 0x8e9   : > { %2044 = vmatpush1.bf16.msra.mxu0 %v3217_v63  ;;  %2088 = vmatprep.subr.bf16.mxu1 %v3228_v4  ;;  %v3273_v63 = vld [vmem:[#allocation15 + $0x50] sm:$0xff]   ;;  %v3278_v4 = vld [vmem:[#allocation15 + $0xc8] sm:$0xff]  }
 0x8ea   : > { %2045 = vmatprep.subr.bf16.mxu0 %v3225_v2  ;;  %v3276_v2 = vld [vmem:[#allocation15 + $0x90] sm:$0xff]  }
 0x8ec   : > { %2089 = vmatpush1.bf16.msra.mxu1 %v3226_v3  ;;  %v3277_v3 = vld [vmem:[#allocation15 + $0x48] sm:$0xff]  }
 0x8ed   : > { %2046 = vmatpush1.bf16.msra.mxu0 %v3223_v1  ;;  %2090 = vmatprep.subr.bf16.mxu1 %v3234_v6  ;;  %v3275_v1 = vld [vmem:[#allocation15 + $0x10] sm:$0xff]   ;;  %v3280_v6 = vld [vmem:[#allocation15 + $0x88] sm:$0xff]  }
 0x8ee   : > { %2047 = vmatprep.subr.bf16.mxu0 %v3231_v5  ;;  %v3279_v5 = vld [vmem:[#allocation15 + $0x8] sm:$0xff]  }
 0x8f0   : > { %2091 = vmatpush1.bf16.msra.mxu1 %v3232_v36  ;;  %v3282_v36 = vld [vmem:[#allocation15 + $0xc0] sm:$0xff]  }
 0x8f1   : > { %2048 = vmatpush1.bf16.msra.mxu0 %v3229_v7  ;;  %2092 = vmatprep.subr.bf16.mxu1 %v3240_v11  ;;  %v3281_v7 = vld [vmem:[#allocation15 + $0x40] sm:$0xff]  }
 0x8f2   : > { %2049 = vmatprep.subr.bf16.mxu0 %v3237_v8  ;;  %v3283_v8 = vld [vmem:[#allocation15] sm:$0xff]  }
 0x8f3   : > { %v3284_v11 = vld [vmem:[#allocation15 + $0x80] sm:$0xff]  }
 0x8f4   : > { %2093 = vmatpush1.bf16.msra.mxu1 %v3238_v9  ;;  %v1857_v9 = vld [vmem:[%s4201_s10] sm:$0xf] }
 0x99f   : > { %v1764_v23 = vpop.f32.mrf.mxu1 }
 0x9a0   : > { %v1771_v34 = vadd.f32 %v1764_v23, %v1574_v12  ;;  %v3235_v12 = vld [vmem:[#allocation13 + $0x40] ss:$16 sps:$4 sm:$0xff]   ;;  %v2757_v23 = vld [vmem:[%s4198_s7] ss:$0 sm:$0xff] }
 0x9a1   : > { %v3016_v35 = vpop.f32.mrf.mxu1  ;;  %2050 = vmatpush1.bf16.msra.mxu0 %v3235_v12  ;;  %v1869_v12 = vsub.s32 2, %v3943_v13 }
 0x9a2   : > { %v1780_v38 = vadd.f32 %v2756_v42, %v1771_v34  ;;  %2051 = vmatprep.subr.bf16.mxu0 %v3243_v15  ;;  %v1873_v15 = vsub.s32 3, %v3943_v13 }
 0x9a3   : > { %v1767_v39 = vpop.f32.mrf.mxu1 }
 0x9a4   : > { %v1772_v40 = vadd.f32 %v1767_v39, %v1575_v18  ;;  %v4096_v43 = vadd.f32 %v3345_v41, %v1780_v38  ;;  %v3246_v18 = vld [vmem:[#allocation13 + $0x2c] ss:$16 sps:$4 sm:$0xff]  }
 0x9a5   : > { %v3017_v44 = vpop.f32.mrf.mxu1  ;;  %2094 = vmatprep.subr.bf16.mxu1 %v3246_v18  ;;  %2052 = vmatpush1.bf16.msra.mxu0 %v3241_v19  ;;  %v2758_v38 = vld [vmem:[%s4199_s8] ss:$0 sm:$0xff]  ;;  %v1862_v18 = vrot.slane %v1857_v9, %v592_v14  ;;  %v1870_v19 = vrot.slane %v1857_v9, %v1869_v12 }
 0x9a6   : > { %v1781_v45 = vadd.f32 %v2756_v42, %v1772_v40  ;;  %1786 = vadd.xlane.f32.xlu1 %v4096_v43  ;;  %2095 = vmatpush1.bf16.msra.mxu1 %v3244_v20 }
 0x9a7   : > { %2053 = vmatprep.subr.bf16.mxu0 %v3249_v21  ;;  %2096 = vmatprep.subr.bf16.mxu1 %v3252_v24  ;;  %v1866_v24 = vrot.slane %v1857_v9, %v630_v16 }
 0x9a8   : > { %v4100_v46 = vadd.f32 %v3346_v22, %v1781_v45  ;;  %v3253_v45 = vld [vmem:[#allocation15 + $0x78] sm:$0xff]  }
 0x9a9   : > { %2054 = vmatpush1.bf16.msra.mxu0 %v3247_v25  ;;  %v3254_v22 = vld [vmem:[#allocation15 + $0xf8] sm:$0xff]   ;;  %v1874_v25 = vrot.slane %v1857_v9, %v1873_v15 }
 0x9aa   : > { %1788 = vadd.xlane.f32.xlu0 %v4100_v46  ;;  %2097 = vmatpush1.bf16.msra.mxu1 %v3250_v26 }
 0x9ab   : > { %2874 = vmatprep.subr.bf16.mxu0 %v3253_v45  ;;  %2896 = vmatprep.subr.bf16.mxu1 %v3254_v22 }
 0xa2f   : > { %v1787_v50 = vpop.xlane.xlu1 %1786 }
 0xa30   : > { %v1790_v28 = vmul.f32 0.0078125, %v1787_v50  ;;  %v3259_v50 = vld [vmem:[#allocation15 + $0x30] sm:$0xff]  }
 0xa32   : > { %v4104_v51 = vsub.f32 %v4096_v43, %v1790_v28  ;;  %v3260_v28 = vld [vmem:[#allocation15 + $0xb0] sm:$0xff]  }
 0xa33   : > { %v1789_v52 = vpop.xlane.xlu0 %1788 }
 0xa34   : > { %v1791_v53 = vmul.f32 0.0078125, %v1789_v52  ;;  %v1794_v54 = vmul.f32 %v4104_v51, %v4104_v51  ;;  %v3262_v52 = vld [vmem:[#allocation15 + $0xe8] sm:$0xff]  }
 0xa36   : > { %v4109_v55 = vsub.f32 %v4100_v46, %v1791_v53  ;;  %1796 = vadd.xlane.f32.xlu1 %v1794_v54  ;;  %v3263_v53 = vld [vmem:[#allocation15 + $0x28] sm:$0xff]  }
 0xa37   : > { %v3264_v54 = vld [vmem:[#allocation15 + $0xa8] sm:$0xff]  }
 0xa38   : > { %v1795_v56 = vmul.f32 %v4109_v55, %v4109_v55 }
 0xa3a   : > { %1798 = vadd.xlane.f32.xlu0 %v1795_v56  ;;  %v3266_v56 = vld [vmem:[#allocation15 + $0xe0] sm:$0xff]  }
 0xabf   : > { %v1797_v27 = vpop.xlane.xlu1 %1796 }
 0xac0   : > { %v1800_v29 = vmul.f32 0.0078125, %v1797_v27 }
 0xac2   : > { %v1802_v10 = vadd.f32 1e-06, %v1800_v29 }
 0xac3   : > { %v1799_v30 = vpop.xlane.xlu0 %1798 }
 0xac4   : > { %3325 = vrsqrt.f32 %v1802_v10  ;;  %v1801_v31 = vmul.f32 0.0078125, %v1799_v30 }
 0xac6   : > { %v1803_v32 = vadd.f32 1e-06, %v1801_v31 }
 0xac8   : > { %3327 = vrsqrt.f32 %v1803_v32 }
 0xad1   : > { %v3326_v17 = vpop.eup %3325 }
 0xad2   : > { %v1806_v33 = vmul.f32 %v3326_v17, %v4104_v51  ;;  %v3261_v51 = vld [vmem:[#allocation15 + $0x68] sm:$0xff]  }
 0xad4   : > { %v1814_v35 = vmul.f32 %v2757_v23, %v1806_v33 }
 0xad5   : > { %v3328_v42 = vpop.eup %3327 }
 0xad6   : > { %v1807_v34 = vmul.f32 %v3328_v42, %v4109_v55  ;;  %v1822_v40 = vadd.f32 %v2758_v38, %v1814_v35  ;;  %v3265_v55 = vld [vmem:[#allocation15 + $0x60] sm:$0xff]  }
 0xad8   : > { %v1815_v39 = vmul.f32 %v2757_v23, %v1807_v34 }
 0xada   : > { %v1823_v41 = vadd.f32 %v2758_v38, %v1815_v39 }
 0xadc   : > { %v1824_v44 = vpack.c.bf16 %v1823_v41, %v1822_v40 }
 0xade   : > { %2072 = vmatmul.mubr.bf16.vlgmr.msra.gmra.mxu0 %v1824_v44  ;;  %2115 = vmatmul.mubr.bf16.vlgmr.msra.gmra.mxu1 %v1824_v44 }
 0xadf   : > { %2875 = vmatpush3.bf16.msra.mxu0 %v3255_v37  ;;  %2897 = vmatpush3.bf16.msra.mxu1 %v3256_v47 }
 0xae0   : > { %2876 = vmatprep.subr.bf16.mxu0 %v3257_v48  ;;  %2898 = vmatprep.subr.bf16.mxu1 %v3258_v49 }
 0xae3   : > { %2877 = vmatpush3.bf16.msra.mxu0 %v3259_v50  ;;  %2899 = vmatpush3.bf16.msra.mxu1 %v3260_v28 }
 0xae4   : > { %2878 = vmatprep.subr.bf16.mxu0 %v3261_v51  ;;  %2900 = vmatprep.subr.bf16.mxu1 %v3262_v52 }
 0xae7   : > { %2879 = vmatpush3.bf16.msra.mxu0 %v3263_v53  ;;  %2901 = vmatpush3.bf16.msra.mxu1 %v3264_v54 }
 0xae8   : > { %2880 = vmatprep.subr.bf16.mxu0 %v3265_v55  ;;  %2902 = vmatprep.subr.bf16.mxu1 %v3266_v56 }
 0xaeb   : > { %2881 = vmatpush3.bf16.msra.mxu0 %v3267_v57  ;;  %2903 = vmatpush3.bf16.msra.mxu1 %v3268_v58 }
 0xaec   : > { %2882 = vmatprep.subr.bf16.mxu0 %v3269_v59  ;;  %2904 = vmatprep.subr.bf16.mxu1 %v3270_v60 }
 0xaef   : > { %2883 = vmatpush3.bf16.msra.mxu0 %v3271_v61  ;;  %2905 = vmatpush3.bf16.msra.mxu1 %v3272_v62 }
 0xaf0   : > { %2884 = vmatprep.subr.bf16.mxu0 %v3273_v63  ;;  %2906 = vmatprep.subr.bf16.mxu1 %v3274_v0 }
 0xaf3   : > { %2885 = vmatpush3.bf16.msra.mxu0 %v3275_v1  ;;  %2907 = vmatpush3.bf16.msra.mxu1 %v3276_v2 }
 0xaf4   : > { %2886 = vmatprep.subr.bf16.mxu0 %v3277_v3  ;;  %2908 = vmatprep.subr.bf16.mxu1 %v3278_v4 }
 0xaf7   : > { %2887 = vmatpush3.bf16.msra.mxu0 %v3279_v5  ;;  %2909 = vmatpush3.bf16.msra.mxu1 %v3280_v6 }
 0xaf8   : > { %2888 = vmatprep.subr.bf16.mxu0 %v3281_v7  ;;  %2910 = vmatprep.subr.bf16.mxu1 %v3282_v36 }
 0xafb   : > { %2889 = vmatpush3.bf16.msra.mxu0 %v3283_v8  ;;  %2911 = vmatpush3.bf16.msra.mxu1 %v3284_v11 }
 0xb9e   : > { %v2073_v20 = vpop.f32.mrf.mxu0  ;;  %v2116_v21 = vpop.f32.mrf.mxu1 }
 0xb9f   : > { %v2074_v26 = vadd.f32 %v2073_v20, %v1862_v18  ;;  %v2117_v27 = vadd.f32 %v2116_v21, %v1870_v19 }
 0xba0   : > { %v2075_v29 = vpop.f32.mrf.mxu0  ;;  %v2118_v10 = vpop.f32.mrf.mxu1 }
 0xba1   : > { %v2133_v30 = vmul.f32 0.70710677, %v2074_v26  ;;  %v2135_v31 = vmul.f32 0.70710677, %v2117_v27  ;;  %v2076_v32 = vadd.f32 %v2075_v29, %v1866_v24  ;;  %v2119_v17 = vadd.f32 %v2118_v10, %v1874_v25 }
 0xba2   : > { %v2077_v33 = vpop.f32.mrf.mxu0  ;;  %v2120_v23 = vpop.f32.mrf.mxu1  ;;  %v2125_v28 = vmul.f32 0.5, %v2074_v26  ;;  %v2127_v4 = vmul.f32 0.5, %v2117_v27 }
 0xba3   : > { %v2078_v42 = vadd.f32 %v2077_v33, %v1862_v18  ;;  %v2121_v34 = vadd.f32 %v2120_v23, %v1870_v19  ;;  %3329 = verf.f32 %v2133_v30  ;;  %v2134_v14 = vmul.f32 0.70710677, %v2076_v32 }
 0xba4   : > { %v2079_v35 = vpop.f32.mrf.mxu0  ;;  %v2122_v38 = vpop.f32.mrf.mxu1  ;;  %3331 = verf.f32 %v2135_v31  ;;  %v2136_v13 = vmul.f32 0.70710677, %v2119_v17  ;;  %v2126_v51 = vmul.f32 0.5, %v2076_v32  ;;  %v2128_v0 = vmul.f32 0.5, %v2119_v17 }
 0xba5   : > { %v2137_v16 = vmul.f32 0.70710677, %v2078_v42  ;;  %3333 = verf.f32 %v2134_v14  ;;  %v2139_v39 = vmul.f32 0.70710677, %v2121_v34  ;;  %v2080_v40 = vadd.f32 %v2079_v35, %v1866_v24  ;;  %v2791_v24 = vld [vmem:[%s4240_s9] ss:$0 sm:$0xff] }
 0xba6   : > { %v2123_v41 = vadd.f32 %v2122_v38, %v1874_v25  ;;  %3335 = verf.f32 %v2136_v13  ;;  %v2129_v57 = vmul.f32 0.5, %v2078_v42  ;;  %v2131_v61 = vmul.f32 0.5, %v2121_v34 }
 0xba7   : > { %3337 = verf.f32 %v2137_v16  ;;  %v2138_v44 = vmul.f32 0.70710677, %v2080_v40  ;;  %v2130_v62 = vmul.f32 0.5, %v2080_v40 }
 0xba8   : > { %3339 = verf.f32 %v2139_v39  ;;  %v2140_v45 = vmul.f32 0.70710677, %v2123_v41  ;;  %v2132_v2 = vmul.f32 0.5, %v2123_v41 }
 0xba9   : > { %3341 = verf.f32 %v2138_v44 }
 0xbaa   : > { %3343 = verf.f32 %v2140_v45 }
 0xbb0   : > { %v3330_v22 = vpop.eup %3329 }
 0xbb1   : > { %v3332_v37 = vpop.eup %3331  ;;  %v2149_v55 = vadd.f32 1.0, %v3330_v22 }
 0xbb2   : > { %v3334_v47 = vpop.eup %3333  ;;  %v2151_v60 = vadd.f32 1.0, %v3332_v37 }
 0xbb3   : > { %v3336_v48 = vpop.eup %3335  ;;  %v2150_v52 = vadd.f32 1.0, %v3334_v47  ;;  %v2157_v36 = vmul.f32 %v2149_v55, %v2125_v28 }
 0xbb4   : > { %v3338_v49 = vpop.eup %3337  ;;  %v2152_v56 = vadd.f32 1.0, %v3336_v48  ;;  %v2159_v12 = vmul.f32 %v2151_v60, %v2127_v4 }
 0xbb5   : > { %v3340_v50 = vpop.eup %3339  ;;  %v2153_v53 = vadd.f32 1.0, %v3338_v49  ;;  %v2158_v5 = vmul.f32 %v2150_v52, %v2126_v51 }
 0xbb6   : > { %v3342_v54 = vpop.eup %3341  ;;  %v2155_v58 = vadd.f32 1.0, %v3340_v50  ;;  %v2160_v8 = vmul.f32 %v2152_v56, %v2128_v0 }
 0xbb7   : > { %v3344_v59 = vpop.eup %3343  ;;  %v2154_v63 = vadd.f32 1.0, %v3342_v54  ;;  %v2161_v1 = vmul.f32 %v2153_v53, %v2129_v57 }
 0xbb8   : > { %v2156_v3 = vadd.f32 1.0, %v3344_v59  ;;  %v2163_v6 = vmul.f32 %v2155_v58, %v2131_v61 }
 0xbb9   : > { %v2162_v7 = vmul.f32 %v2154_v63, %v2130_v62  ;;  %v2165_v15 = vpack.c.bf16 %v2161_v1, %v2157_v36 }
 0xbba   : > { %v2164_v11 = vmul.f32 %v2156_v3, %v2132_v2  ;;  %v2167_v19 = vpack.c.bf16 %v2163_v6, %v2159_v12 }
 0xbbb   : > { %v2166_v9 = vpack.c.bf16 %v2162_v7, %v2158_v5 }
 0xbbc   : > { %v2168_v18 = vpack.c.bf16 %v2164_v11, %v2160_v8 }
 0xbbd   : > { %2464 = vmatprep.mubr.bf16.mxu0 %v2166_v9 }
 0xbbe   : > { %2505 = vmatprep.mubr.bf16.mxu1 %v2168_v18  ;;  %2465 = vmatmul.mubr.bf16.vlgmr.msra.gmra.mxu0 %v2165_v15 }
 0xbbf   : > { %2506 = vmatmul.mubr.bf16.vlgmr.msra.gmra.mxu1 %v2167_v19 }
 0xc7e   : > { %v2890_v20 = vpop.f32.mrf.mxu0 }
 0xc7f   : > { %v2912_v21 = vpop.f32.mrf.mxu1 }
 0xc80   : > { %v2891_v25 = vpop.f32.mrf.mxu0 }
 0xc81   : > { %v2892_v26 = vadd.f32 %v2891_v25, %v2890_v20  ;;  %v2913_v27 = vpop.f32.mrf.mxu1 }
 0xc82   : > { %v2893_v29 = vpop.f32.mrf.mxu0  ;;  %v2914_v30 = vadd.f32 %v2913_v27, %v2912_v21 }
 0xc83   : > { %v2467_v10 = vadd.f32 %v2892_v26, %v2791_v24  ;;  %v2915_v31 = vpop.f32.mrf.mxu1 }
 0xc84   : > { %v2894_v32 = vpop.f32.mrf.mxu0 }
 0xc85   : > { %v2508_v17 = vadd.f32 %v2914_v30, %v2467_v10  ;;  %v2895_v33 = vadd.f32 %v2894_v32, %v2893_v29  ;;  %v2916_v23 = vpop.f32.mrf.mxu1 }
 0xc86   : > { %v2917_v14 = vadd.f32 %v2916_v23, %v2915_v31 }
 0xc87   : > { %v2514_v42 = vadd.f32 %v2508_v17, %v4096_v43  ;;  %v2470_v34 = vadd.f32 %v2895_v33, %v2791_v24 }
 0xc89   : > { %2516 = vst [vmem:[%s555_s16] sm:$0xff] %v2514_v42  ;;  %v2511_v35 = vadd.f32 %v2917_v14, %v2470_v34 }
 0xc8b   : > { %v2515_v38 = vadd.f32 %v2511_v35, %v4100_v46 }
 0xc8d   : > { %2517 = vst [vmem:[%s555_s16 + $0x8] sm:$0xff] %v2515_v38 }
 0xc8e   : > { %3544 = shalt.err (!%p3541_p6)
}
 0xc8f   : > { %s3545_s2 = scalar_lea.hbm %s4142_s12, 256  ;;  %s3549_s15 = scalar_lea.hbm %s4242_s21, 512 }
 0xc90   : > { %p3546_p12 = scmp.ne.s32.totalorder %s4142_s12, %s3545_s2  ;;  %p3550_p4 = scmp.lt.s32.totalorder %s4142_s12, %s4242_s21 }
 0xc91   : > { %p3551_p1 = scmp.lt.s32.totalorder %s3549_s15, %s3545_s2 }
 0xc92   : > { %p3547_p13 = pnand %p3546_p12, %p3850_p2 }
 0xc93   : > { %p3552_p0 = por %p3551_p1, %p3550_p4 }
 0xc94   : > { %p3548_p11 = pneg %p3547_p13 }
 0xc96   : > { %p3553_p5 = pnand %p3552_p0, %p3548_p11 }
 0xc98   : > { %3556 = shalt.err (!%p3553_p5)
}
 0xc99   : > { %s3647_s13 = smov 128   ;;  %s3648_s24 = smov 8  }
 0xc9a   : > { %3044 = dma.vmem_to_hbm [thread:$0]  (%p3850_p2), %s4137_s20, 256, %s4142_s12, %s2519_s11, %s3647_s13, %s3647_s13, %s3648_s24  }
 0xc9b PF: > { %s2549_s3 = sand.u32 1, %s3603_s25   ;;  %p4243_p7 = scmp.ge.s32.totalorder %s3623_s30, 2 }
 0xc9c   : > { %s2550_s28 = scalar_lea.sflag [#allocation6], %s2549_s3 }
 0xc9d   : > { %p3070_p9 = pnand %p4243_p7, %p3857_p3 }
 0xc9f   : > { %p3071_p8 = pneg %p3070_p9 }
 0xca1   : > { %3598 = dma.done.wait (%p3071_p8), %s2550_s28, 256  }
 0xca2   : > { %3600 = vsyncadd (%p3071_p8), %s2550_s28, 4294967040  ;;  %s32_s30 = sadd.s32 1, %s3623_s30   ;;  %s4244_s14 = sld [smem:[#allocation23_spill]] }
 0xca3   : > { %p29_p10 = scmp.ge.s32.totalorder %s32_s30, 4   ;;  %s4245_s25 = smov %s3607_s26 }
 0xca4   : > { %s4246_s26 = smov %s3611_s27  ;;  %s4247_s27 = smov %s3855_s17 }
 0xca5   : > { %s4248_s28 = smov %s3619_s29  ;;  %31 = sbr.rel (!%p29_p10) target bundleno = 18 (0x12), region = 161 }
 0xca8   : > { %s4249_s29 = smov %s4244_s14 }
 0xcaa   :  { %2555 = vsyncpa [#allocation5], 1 }
 0xcab   :  { %2557 = vsyncpa [#allocation5 + $0x1], 1 }
 0xcac   :  { %2558 = vsyncpa [#allocation8], 1 }
 0xcad   :  { %2559 = vsyncpa [#allocation11], 1 }
 0xcae   :  { %2560 = vsyncpa [#allocation14], 1 }
 0xcaf   :  { %2561 = vsyncpa [#allocation6], 1 }
 0xcb0   :  { %2563 = vsyncpa [#allocation6 + $0x1], 1 }

</bundles_post_ra>
